<compile_context>
chip_gen: v7x
topology: tpu7x:2x2x1
jax: 0.10.0
libtpu: 0.0.40
codegen_flags: <defaults>
</compile_context>

<pallas_src>
import functools

import jax
import jax.numpy as jnp
from jax.experimental import pallas as pl
from jax.experimental.pallas import tpu as pltpu


_VMEM_LIMIT = 32 * 1024 * 1024   # explicit scoped-VMEM limit (>= default on all TPU gens)
_ROW_TILE = 512                  # pointwise row tile; mem-bound sweet spot (~85% HBM roofline)


def _swish(x):
    return x * jax.nn.sigmoid(x)


def _row_tile(m):
    """Full array if small, otherwise a fixed 512-row tile (ragged last tile is fine)."""
    return m if m <= _ROW_TILE else _ROW_TILE


# -------------------- 1x1 expand conv + BN + swish --------------------

def _pw_kernel(x_ref, w_ref, shift_ref, o_ref):
    # BN scale is folded into w at trace time; only the per-channel shift remains.
    y = jnp.dot(x_ref[...], w_ref[...], preferred_element_type=jnp.float32)
    y = y + shift_ref[...].astype(jnp.float32)
    o_ref[...] = _swish(y).astype(o_ref.dtype)


def pointwise_conv_bn_swish(x_2d, w_folded, shift):
    """x_2d: (M, Cin) rows; w_folded: (Cin, Cout) with BN scale folded in."""
    M, Cin = x_2d.shape
    Cout = w_folded.shape[1]
    tm = _row_tile(M)
    grid = (pl.cdiv(M, tm),)
    return pl.pallas_call(
        _pw_kernel,
        out_shape=jax.ShapeDtypeStruct((M, Cout), x_2d.dtype),
        grid=grid,
        in_specs=[
            pl.BlockSpec((tm, Cin), lambda i: (i, 0)),
            pl.BlockSpec((Cin, Cout), lambda i: (0, 0)),
            pl.BlockSpec((1, Cout), lambda i: (0, 0)),
        ],
        out_specs=pl.BlockSpec((tm, Cout), lambda i: (i, 0)),
        compiler_params=pltpu.CompilerParams(
            dimension_semantics=("parallel",),
            vmem_limit_bytes=_VMEM_LIMIT),
    )(x_2d, w_folded, shift.reshape(1, Cout))


# ---------- depthwise KxK conv + BN + swish (+ fused SE channel sums) ----------

def _dw_kernel(x_ref, w_ref, shift_ref, o_ref, sums_ref, xpad_ref, *,
               K, stride, pad, Ho, Wo):
    Hin, Win = x_ref.shape[1], x_ref.shape[2]
    C = x_ref.shape[3]

    # Fuse spatial zero-padding into the kernel: build the padded tile in VMEM scratch
    # instead of materializing a padded activation in HBM.
    xpad_ref[...] = jnp.zeros_like(xpad_ref)
    xpad_ref[pl.ds(pad, Hin), pl.ds(pad, Win), :] = x_ref[0]

    w = w_ref[...].astype(jnp.float32)            # (K*K, C); BN scale pre-folded
    acc = jnp.zeros((Ho, Wo, C), jnp.float32)
    for kh in range(K):
        for kw in range(K):
            # Slice the padded scratch ref per tap (keeps live ranges small).
            if stride == 1:
                patch = xpad_ref[pl.ds(kh, Ho), pl.ds(kw, Wo), :]
            else:
                patch = xpad_ref[pl.ds(kh, Ho, stride), pl.ds(kw, Wo, stride), :]
            acc = acc + patch.astype(jnp.float32) * w[kh * K + kw][None, None, :]

    y = acc + shift_ref[...].astype(jnp.float32)  # (1, C) broadcasts over (Ho, Wo, C)
    out = _swish(y)
    o_ref[0] = out.astype(o_ref.dtype)
    # Per-(image, channel-block) activation sums feeding the SE gate (avoids a separate
    # full-activation SE pass over HBM).
    sums_ref[...] = jnp.sum(out, axis=(0, 1), keepdims=True)


def depthwise_conv_bn_swish(x_exp, w_folded, shift, K, stride, pad, Ho, Wo):
    """x_exp: (N, H, W, Cexp) unpadded; w_folded: (K*K, Cexp) with BN scale folded in.

    Returns (dw_out (N,Ho,Wo,Cexp), channel_sums (N,1,Cexp) in f32).
    """
    N, Hin, Win, Cexp = x_exp.shape
    tc = 128 if Cexp % 128 == 0 else Cexp      # channel tiling (no halo needed)
    grid = (N, Cexp // tc)
    kern = functools.partial(_dw_kernel, K=K, stride=stride, pad=pad, Ho=Ho, Wo=Wo)
    return pl.pallas_call(
        kern,
        out_shape=(jax.ShapeDtypeStruct((N, Ho, Wo, Cexp), x_exp.dtype),
                   jax.ShapeDtypeStruct((N, 1, Cexp), jnp.float32)),
        grid=grid,
        in_specs=[
            pl.BlockSpec((1, Hin, Win, tc), lambda n, c: (n, 0, 0, c)),
            pl.BlockSpec((K * K, tc), lambda n, c: (0, c)),
            pl.BlockSpec((1, tc), lambda n, c: (0, c)),
        ],
        out_specs=(
            pl.BlockSpec((1, Ho, Wo, tc), lambda n, c: (n, 0, 0, c)),
            pl.BlockSpec((1, 1, tc), lambda n, c: (n, 0, c)),
        ),
        scratch_shapes=[pltpu.VMEM((Hin + 2 * pad, Win + 2 * pad, tc), x_exp.dtype)],
        compiler_params=pltpu.CompilerParams(
            dimension_semantics=("parallel", "parallel"),
            vmem_limit_bytes=_VMEM_LIMIT),
    )(x_exp, w_folded, shift.reshape(1, Cexp))


# ---------- 1x1 project conv + BN + swish, with fused SE gate (+ residual) ----------

def _proj_kernel(x_ref, w_ref, shift_ref, gate_ref, o_ref):
    xg = x_ref[0].astype(jnp.float32) * gate_ref[0].astype(jnp.float32)   # SE gate
    y = jnp.dot(xg, w_ref[...], preferred_element_type=jnp.float32)
    y = y + shift_ref[...].astype(jnp.float32)
    o_ref[0] = _swish(y).astype(o_ref.dtype)


def _proj_res_kernel(x_ref, w_ref, shift_ref, gate_ref, res_ref, o_ref):
    xg = x_ref[0].astype(jnp.float32) * gate_ref[0].astype(jnp.float32)   # SE gate
    y = jnp.dot(xg, w_ref[...], preferred_element_type=jnp.float32)
    y = y + shift_ref[...].astype(jnp.float32)
    y = _swish(y) + res_ref[0].astype(jnp.float32)   # residual added in f32 before cast
    o_ref[0] = y.astype(o_ref.dtype)


def project_conv_bn_swish(x_3d, w_folded, shift, gate, residual=None):
    """x_3d: (N, M, Cexp); gate: (N, 1, Cexp); residual: (N, M, Cout) or None."""
    N, M, Cexp = x_3d.shape
    Cout = w_folded.shape[1]
    tm = _row_tile(M)
    grid = (N, pl.cdiv(M, tm))

    in_specs = [
        pl.BlockSpec((1, tm, Cexp), lambda n, i: (n, i, 0)),
        pl.BlockSpec((Cexp, Cout), lambda n, i: (0, 0)),
        pl.BlockSpec((1, Cout), lambda n, i: (0, 0)),
        pl.BlockSpec((1, 1, Cexp), lambda n, i: (n, 0, 0)),
    ]
    args = [x_3d, w_folded, shift.reshape(1, Cout), gate]
    kern = _proj_kernel
    if residual is not None:
        in_specs.append(pl.BlockSpec((1, tm, Cout), lambda n, i: (n, i, 0)))
        args.append(residual)
        kern = _proj_res_kernel

    return pl.pallas_call(
        kern,
        out_shape=jax.ShapeDtypeStruct((N, M, Cout), x_3d.dtype),
        grid=grid,
        in_specs=in_specs,
        out_specs=pl.BlockSpec((1, tm, Cout), lambda n, i: (n, i, 0)),
        compiler_params=pltpu.CompilerParams(
            dimension_semantics=("parallel", "parallel"),
            vmem_limit_bytes=_VMEM_LIMIT),
    )(*args)


# -------------------- MBConv forward --------------------

def mbconv_forward(x_nchw, params, *, kernel_size, stride, expand_ratio,
                   use_seblock, in_channel, out_channel):
    N, C, H, W = x_nchw.shape
    assert C == in_channel
    x_nhwc = jnp.transpose(x_nchw, (0, 2, 3, 1))        # NCHW -> NHWC
    Cexp = in_channel * expand_ratio
    K = kernel_size
    pad = (K - 1) // 2
    Ho = (H + 2 * pad - K) // stride + 1
    Wo = (W + 2 * pad - K) // stride + 1

    # expand: 1x1 conv + BN + swish  (BN scale folded into the weight)
    if expand_ratio != 1:
        ew = params["expand_w"] * params["expand_scale"][None, :]
        x2 = pointwise_conv_bn_swish(x_nhwc.reshape(N * H * W, in_channel),
                                     ew, params["expand_shift"])
        x_exp = x2.reshape(N, H, W, Cexp)
    else:
        x_exp = x_nhwc

    # depthwise KxK conv + BN + swish; padding fused in-kernel; SE channel sums fused out
    dw_w = (params["dw_w"] * params["dw_scale"][None, None, :]).reshape(K * K, Cexp)
    dw_out, dw_sums = depthwise_conv_bn_swish(x_exp, dw_w, params["dw_shift"],
                                              K, stride, pad, Ho, Wo)

    # SE gate: tiny (N,Cexp)x(Cexp,Ci) matmuls, plain XLA on the pooled sums
    if use_seblock:
        pooled = dw_sums.reshape(N, Cexp) * (1.0 / (Ho * Wo))
        r = jnp.maximum(pooled @ params["se_rw"] + params["se_rb"], 0.0)
        gate = jax.nn.sigmoid(r @ params["se_ew"] + params["se_eb"])      # (N, Cexp)
        gate = gate.reshape(N, 1, Cexp).astype(x_nhwc.dtype)
    else:
        gate = jnp.ones((N, 1, Cexp), x_nhwc.dtype)

    # project: 1x1 conv + BN + swish, with SE gate and residual fused into the kernel
    pw_w = params["pw_w"] * params["pw_scale"][None, :]
    residual = None
    if in_channel == out_channel and stride == 1:
        residual = x_nhwc.reshape(N, H * W, in_channel)
    y = project_conv_bn_swish(dw_out.reshape(N, Ho * Wo, Cexp),
                              pw_w, params["pw_shift"], gate, residual)
    y = y.reshape(N, Ho, Wo, out_channel)
    return jnp.transpose(y, (0, 3, 1, 2))               # NHWC -> NCHW


# -------------------- deterministic parameter init --------------------

def init_params(key, in_channel, out_channel, kernel_size, expand_ratio,
                use_seblock, se_ratio=16, dtype=jnp.float32):
    Cexp = in_channel * expand_ratio
    keys = iter(jax.random.split(key, 24))
    p = {}

    def bn(kk, c):
        k1, k2, k3, k4 = jax.random.split(kk, 4)
        gamma = 1.0 + 0.1 * jax.random.normal(k1, (c,), dtype)
        beta = 0.1 * jax.random.normal(k2, (c,), dtype)
        rmean = 0.05 * jax.random.normal(k3, (c,), dtype)
        rvar = 1.0 + 0.1 * jnp.abs(jax.random.normal(k4, (c,), dtype))
        scale = gamma * jax.lax.rsqrt(rvar + 1e-5)
        shift = beta - rmean * scale
        return scale, shift

    if expand_ratio != 1:
        p["expand_w"] = 0.2 * jax.random.normal(next(keys), (in_channel, Cexp), dtype)
        p["expand_scale"], p["expand_shift"] = bn(next(keys), Cexp)
    p["dw_w"] = 0.2 * jax.random.normal(next(keys), (kernel_size, kernel_size, Cexp), dtype)
    p["dw_scale"], p["dw_shift"] = bn(next(keys), Cexp)
    if use_seblock:
        Ci = Cexp // se_ratio
        p["se_rw"] = 0.2 * jax.random.normal(next(keys), (Cexp, Ci), dtype)
        p["se_rb"] = 0.1 * jax.random.normal(next(keys), (1, Ci), dtype)
        p["se_ew"] = 0.2 * jax.random.normal(next(keys), (Ci, Cexp), dtype)
        p["se_eb"] = 0.1 * jax.random.normal(next(keys), (1, Cexp), dtype)
    p["pw_w"] = 0.2 * jax.random.normal(next(keys), (Cexp, out_channel), dtype)
    p["pw_scale"], p["pw_shift"] = bn(next(keys), out_channel)
    return p


# -------------------- pure-JAX reference (for correctness check) --------------------

def mbconv_reference(x_nchw, params, *, kernel_size, stride, expand_ratio,
                     use_seblock, in_channel, out_channel):
    x = jnp.transpose(x_nchw, (0, 2, 3, 1))
    inputs = x
    if expand_ratio != 1:
        y = jnp.einsum("nhwc,cd->nhwd", x, params["expand_w"])
        x = _swish(y * params["expand_scale"] + params["expand_shift"])
    Cexp = x.shape[-1]
    K = kernel_size
    pad = (K - 1) // 2
    w = params["dw_w"].reshape(K, K, 1, Cexp)
    y = jax.lax.conv_general_dilated(
        x, w, window_strides=(stride, stride),
        padding=[(pad, pad), (pad, pad)],
        dimension_numbers=("NHWC", "HWIO", "NHWC"),
        feature_group_count=Cexp)
    x = _swish(y * params["dw_scale"] + params["dw_shift"])
    if use_seblock:
        pooled = jnp.mean(x, axis=(1, 2))
        r = jnp.maximum(pooled @ params["se_rw"] + params["se_rb"], 0.0)
        e = jax.nn.sigmoid(r @ params["se_ew"] + params["se_eb"])
        x = x * e[:, None, None, :]
    y = jnp.einsum("nhwc,cd->nhwd", x, params["pw_w"])
    x = _swish(y * params["pw_scale"] + params["pw_shift"])
    if in_channel == out_channel and stride == 1:
        x = x + inputs
    return jnp.transpose(x, (0, 3, 1, 2))


if __name__ == "__main__":
    key = jax.random.PRNGKey(0)
    kx, kp = jax.random.split(key)

    # MBConv(in_channel=8, out_channel=8, kernel_size=3, stride=1,
    #        expand_ratio=4, activation='swish', use_seblock=True)
    N, Cin, H, W = 2, 8, 16, 16
    Cout, K, stride, er, use_se = 8, 3, 1, 4, True

    x = jax.random.normal(kx, (N, Cin, H, W), jnp.float32)
    params = init_params(kp, Cin, Cout, K, er, use_se)

    fn = functools.partial(mbconv_forward, kernel_size=K, stride=stride,
                           expand_ratio=er, use_seblock=use_se,
                           in_channel=Cin, out_channel=Cout)
    out = jax.jit(fn)(x, params)
    out = jax.block_until_ready(out)

    ref = mbconv_reference(x, params, kernel_size=K, stride=stride,
                           expand_ratio=er, use_seblock=use_se,
                           in_channel=Cin, out_channel=Cout)

    assert out.shape == (N, Cout, H, W), out.shape
    err = float(jnp.max(jnp.abs(out - ref)))
    assert err < 2e-4, f"max abs error {err}"
    print("KERNEL_OK")
</pallas_src>

<mosaic_0001>
module attributes {stable_mosaic.version = 11 : i64} {
  func.func @_pw_kernel(%arg0: i32, %arg1: memref<512x8xf32, #tpu.memory_space<vmem>>, %arg2: memref<8x32xf32, #tpu.memory_space<vmem>>, %arg3: memref<1x32xf32, #tpu.memory_space<vmem>>, %arg4: memref<512x32xf32, #tpu.memory_space<vmem>>) attributes {dimension_semantics = [#tpu.dimension_semantics<parallel>], iteration_bounds = array<i64: 1>, scalar_prefetch = 0 : i64, scratch_operands = 0 : i64, tpu.core_type = #tpu.core_type<tc>, window_params = [{transform_indices = @transform_0, window_bounds = array<i64: 512, 8>}, {pipeline_mode = #tpu.pipeline_mode<synchronous>, transform_indices = @transform_1, window_bounds = array<i64: 8, 32>}, {pipeline_mode = #tpu.pipeline_mode<synchronous>, transform_indices = @transform_2, window_bounds = array<i64: 1, 32>}, {transform_indices = @transform_3, window_bounds = array<i64: 512, 32>}]} {
    %c0 = arith.constant 0 : index
    %c0_0 = arith.constant 0 : index
    %0 = vector.load %arg1[%c0, %c0_0] : memref<512x8xf32, #tpu.memory_space<vmem>>, vector<512x8xf32>
    %c0_1 = arith.constant 0 : index
    %c0_2 = arith.constant 0 : index
    %1 = vector.load %arg2[%c0_1, %c0_2] : memref<8x32xf32, #tpu.memory_space<vmem>>, vector<8x32xf32>
    %cst = arith.constant dense<0.000000e+00> : vector<512x32xf32>
    %2 = tpu.matmul %0, %1, %cst {dimension_numbers = #tpu.dot_dimension_numbers<[1], [0], [0], [1], [0, 0, 1, 1], [], []>} : vector<512x8xf32>, vector<8x32xf32>, vector<512x32xf32> -> vector<512x32xf32>
    %c0_3 = arith.constant 0 : index
    %c0_4 = arith.constant 0 : index
    %3 = vector.load %arg3[%c0_3, %c0_4] : memref<1x32xf32, #tpu.memory_space<vmem>>, vector<1x32xf32>
    %4 = vector.broadcast %3 : vector<1x32xf32> to vector<512x32xf32>
    %5 = arith.addf %2, %4 : vector<512x32xf32>
    %6 = arith.negf %5 : vector<512x32xf32>
    %7 = math.exp %6 : vector<512x32xf32>
    %cst_5 = arith.constant 1.000000e+00 : f32
    %8 = vector.broadcast %cst_5 : f32 to vector<512x32xf32>
    %9 = arith.addf %8, %7 : vector<512x32xf32>
    %10 = arith.divf %8, %9 : vector<512x32xf32>
    %11 = arith.mulf %5, %10 : vector<512x32xf32>
    %c0_6 = arith.constant 0 : index
    %c0_7 = arith.constant 0 : index
    %12 = vector.load %arg4[%c0_6, %c0_7] : memref<512x32xf32, #tpu.memory_space<vmem>>, vector<512x32xf32>
    tpu.vector_store %arg4[%c0_6, %c0_7], %11 {strides = array<i32>} : memref<512x32xf32, #tpu.memory_space<vmem>>, vector<512x32xf32>,
    return
  }
  func.func @transform_0(%arg0: i32) -> (i32, i32) {
    %c0_i32 = arith.constant 0 : i32
    %c0_i32_0 = arith.constant 0 : i32
    return %arg0, %c0_i32 : i32, i32
  }
  func.func @transform_1(%arg0: i32) -> (i32, i32) {
    %c0_i32 = arith.constant 0 : i32
    %c0_i32_0 = arith.constant 0 : i32
    %c0_i32_1 = arith.constant 0 : i32
    return %c0_i32, %c0_i32_0 : i32, i32
  }
  func.func @transform_2(%arg0: i32) -> (i32, i32) {
    %c0_i32 = arith.constant 0 : i32
    %c0_i32_0 = arith.constant 0 : i32
    %c0_i32_1 = arith.constant 0 : i32
    return %c0_i32, %c0_i32_0 : i32, i32
  }
  func.func @transform_3(%arg0: i32) -> (i32, i32) {
    %c0_i32 = arith.constant 0 : i32
    %c0_i32_0 = arith.constant 0 : i32
    return %arg0, %c0_i32 : i32, i32
  }
}

module attributes {stable_mosaic.version = 11 : i64} {
  func.func @_dw_kernel(%arg0: i32, %arg1: i32, %arg2: memref<1x16x16x32xf32, #tpu.memory_space<vmem>>, %arg3: memref<9x32xf32, #tpu.memory_space<vmem>>, %arg4: memref<1x32xf32, #tpu.memory_space<vmem>>, %arg5: memref<1x16x16x32xf32, #tpu.memory_space<vmem>>, %arg6: memref<1x1x32xf32, #tpu.memory_space<vmem>>, %arg7: memref<18x18x32xf32, #tpu.memory_space<vmem>>) attributes {dimension_semantics = [#tpu.dimension_semantics<parallel>, #tpu.dimension_semantics<parallel>], iteration_bounds = array<i64: 2, 1>, scalar_prefetch = 0 : i64, scratch_operands = 1 : i64, tpu.core_type = #tpu.core_type<tc>, window_params = [{transform_indices = @transform_0, window_bounds = array<i64: 1, 16, 16, 32>}, {transform_indices = @transform_1, window_bounds = array<i64: 9, 32>}, {transform_indices = @transform_2, window_bounds = array<i64: 1, 32>}, {transform_indices = @transform_3, window_bounds = array<i64: 1, 16, 16, 32>}, {transform_indices = @transform_4, window_bounds = array<i64: 1, 1, 32>}]} {
    %cst = arith.constant 0.000000e+00 : f32
    %0 = vector.broadcast %cst : f32 to vector<18x18x32xf32>
    %c0 = arith.constant 0 : index
    %c0_0 = arith.constant 0 : index
    %c0_1 = arith.constant 0 : index
    %1 = vector.load %arg7[%c0, %c0_0, %c0_1] : memref<18x18x32xf32, #tpu.memory_space<vmem>>, vector<18x18x32xf32>
    tpu.vector_store %arg7[%c0, %c0_0, %c0_1], %0 {strides = array<i32>} : memref<18x18x32xf32, #tpu.memory_space<vmem>>, vector<18x18x32xf32>,
    %c0_2 = arith.constant 0 : index
    %c0_3 = arith.constant 0 : index
    %c0_4 = arith.constant 0 : index
    %c0_5 = arith.constant 0 : index
    %2 = vector.load %arg2[%c0_2, %c0_3, %c0_4, %c0_5] : memref<1x16x16x32xf32, #tpu.memory_space<vmem>>, vector<1x16x16x32xf32>
    %3 = vector.shape_cast %2 : vector<1x16x16x32xf32> to vector<16x16x32xf32>
    %c1 = arith.constant 1 : index
    %c1_6 = arith.constant 1 : index
    %c0_7 = arith.constant 0 : index
    %4 = vector.load %arg7[%c1, %c1_6, %c0_7] : memref<18x18x32xf32, #tpu.memory_space<vmem>>, vector<16x16x32xf32>
    tpu.vector_store %arg7[%c1, %c1_6, %c0_7], %3 {strides = array<i32>} : memref<18x18x32xf32, #tpu.memory_space<vmem>>, vector<16x16x32xf32>,
    %c0_8 = arith.constant 0 : index
    %c0_9 = arith.constant 0 : index
    %5 = vector.load %arg3[%c0_8, %c0_9] : memref<9x32xf32, #tpu.memory_space<vmem>>, vector<9x32xf32>
    %cst_10 = arith.constant 0.000000e+00 : f32
    %6 = vector.broadcast %cst_10 : f32 to vector<16x16x32xf32>
    %c0_11 = arith.constant 0 : index
    %c0_12 = arith.constant 0 : index
    %c0_13 = arith.constant 0 : index
    %7 = vector.load %arg7[%c0_11, %c0_12, %c0_13] : memref<18x18x32xf32, #tpu.memory_space<vmem>>, vector<16x16x32xf32>
    %8 = vector.extract_strided_slice %5 {offsets = [0, 0], sizes = [1, 32], strides = [1, 1]} : vector<9x32xf32> to vector<1x32xf32>
    %9 = vector.shape_cast %8 : vector<1x32xf32> to vector<32xf32>
    %10 = vector.shape_cast %9 : vector<32xf32> to vector<1x1x32xf32>
    %11 = vector.broadcast %10 : vector<1x1x32xf32> to vector<16x16x32xf32>
    %12 = arith.mulf %7, %11 : vector<16x16x32xf32>
    %13 = arith.addf %6, %12 : vector<16x16x32xf32>
    %c0_14 = arith.constant 0 : index
    %c1_15 = arith.constant 1 : index
    %c0_16 = arith.constant 0 : index
    %14 = vector.load %arg7[%c0_14, %c1_15, %c0_16] : memref<18x18x32xf32, #tpu.memory_space<vmem>>, vector<16x16x32xf32>
    %15 = vector.extract_strided_slice %5 {offsets = [1, 0], sizes = [1, 32], strides = [1, 1]} : vector<9x32xf32> to vector<1x32xf32>
    %16 = vector.shape_cast %15 : vector<1x32xf32> to vector<32xf32>
    %17 = vector.shape_cast %16 : vector<32xf32> to vector<1x1x32xf32>
    %18 = vector.broadcast %17 : vector<1x1x32xf32> to vector<16x16x32xf32>
    %19 = arith.mulf %14, %18 : vector<16x16x32xf32>
    %20 = arith.addf %13, %19 : vector<16x16x32xf32>
    %c0_17 = arith.constant 0 : index
    %c2 = arith.constant 2 : index
    %c0_18 = arith.constant 0 : index
    %21 = vector.load %arg7[%c0_17, %c2, %c0_18] : memref<18x18x32xf32, #tpu.memory_space<vmem>>, vector<16x16x32xf32>
    %22 = vector.extract_strided_slice %5 {offsets = [2, 0], sizes = [1, 32], strides = [1, 1]} : vector<9x32xf32> to vector<1x32xf32>
    %23 = vector.shape_cast %22 : vector<1x32xf32> to vector<32xf32>
    %24 = vector.shape_cast %23 : vector<32xf32> to vector<1x1x32xf32>
    %25 = vector.broadcast %24 : vector<1x1x32xf32> to vector<16x16x32xf32>
    %26 = arith.mulf %21, %25 : vector<16x16x32xf32>
    %27 = arith.addf %20, %26 : vector<16x16x32xf32>
    %c1_19 = arith.constant 1 : index
    %c0_20 = arith.constant 0 : index
    %c0_21 = arith.constant 0 : index
    %28 = vector.load %arg7[%c1_19, %c0_20, %c0_21] : memref<18x18x32xf32, #tpu.memory_space<vmem>>, vector<16x16x32xf32>
    %29 = vector.extract_strided_slice %5 {offsets = [3, 0], sizes = [1, 32], strides = [1, 1]} : vector<9x32xf32> to vector<1x32xf32>
    %30 = vector.shape_cast %29 : vector<1x32xf32> to vector<32xf32>
    %31 = vector.shape_cast %30 : vector<32xf32> to vector<1x1x32xf32>
    %32 = vector.broadcast %31 : vector<1x1x32xf32> to vector<16x16x32xf32>
    %33 = arith.mulf %28, %32 : vector<16x16x32xf32>
    %34 = arith.addf %27, %33 : vector<16x16x32xf32>
    %c1_22 = arith.constant 1 : index
    %c1_23 = arith.constant 1 : index
    %c0_24 = arith.constant 0 : index
    %35 = vector.load %arg7[%c1_22, %c1_23, %c0_24] : memref<18x18x32xf32, #tpu.memory_space<vmem>>, vector<16x16x32xf32>
    %36 = vector.extract_strided_slice %5 {offsets = [4, 0], sizes = [1, 32], strides = [1, 1]} : vector<9x32xf32> to vector<1x32xf32>
    %37 = vector.shape_cast %36 : vector<1x32xf32> to vector<32xf32>
    %38 = vector.shape_cast %37 : vector<32xf32> to vector<1x1x32xf32>
    %39 = vector.broadcast %38 : vector<1x1x32xf32> to vector<16x16x32xf32>
    %40 = arith.mulf %35, %39 : vector<16x16x32xf32>
    %41 = arith.addf %34, %40 : vector<16x16x32xf32>
    %c1_25 = arith.constant 1 : index
    %c2_26 = arith.constant 2 : index
    %c0_27 = arith.constant 0 : index
    %42 = vector.load %arg7[%c1_25, %c2_26, %c0_27] : memref<18x18x32xf32, #tpu.memory_space<vmem>>, vector<16x16x32xf32>
    %43 = vector.extract_strided_slice %5 {offsets = [5, 0], sizes = [1, 32], strides = [1, 1]} : vector<9x32xf32> to vector<1x32xf32>
    %44 = vector.shape_cast %43 : vector<1x32xf32> to vector<32xf32>
    %45 = vector.shape_cast %44 : vector<32xf32> to vector<1x1x32xf32>
    %46 = vector.broadcast %45 : vector<1x1x32xf32> to vector<16x16x32xf32>
    %47 = arith.mulf %42, %46 : vector<16x16x32xf32>
    %48 = arith.addf %41, %47 : vector<16x16x32xf32>
    %c2_28 = arith.constant 2 : index
    %c0_29 = arith.constant 0 : index
    %c0_30 = arith.constant 0 : index
    %49 = vector.load %arg7[%c2_28, %c0_29, %c0_30] : memref<18x18x32xf32, #tpu.memory_space<vmem>>, vector<16x16x32xf32>
    %50 = vector.extract_strided_slice %5 {offsets = [6, 0], sizes = [1, 32], strides = [1, 1]} : vector<9x32xf32> to vector<1x32xf32>
    %51 = vector.shape_cast %50 : vector<1x32xf32> to vector<32xf32>
    %52 = vector.shape_cast %51 : vector<32xf32> to vector<1x1x32xf32>
    %53 = vector.broadcast %52 : vector<1x1x32xf32> to vector<16x16x32xf32>
    %54 = arith.mulf %49, %53 : vector<16x16x32xf32>
    %55 = arith.addf %48, %54 : vector<16x16x32xf32>
    %c2_31 = arith.constant 2 : index
    %c1_32 = arith.constant 1 : index
    %c0_33 = arith.constant 0 : index
    %56 = vector.load %arg7[%c2_31, %c1_32, %c0_33] : memref<18x18x32xf32, #tpu.memory_space<vmem>>, vector<16x16x32xf32>
    %57 = vector.extract_strided_slice %5 {offsets = [7, 0], sizes = [1, 32], strides = [1, 1]} : vector<9x32xf32> to vector<1x32xf32>
    %58 = vector.shape_cast %57 : vector<1x32xf32> to vector<32xf32>
    %59 = vector.shape_cast %58 : vector<32xf32> to vector<1x1x32xf32>
    %60 = vector.broadcast %59 : vector<1x1x32xf32> to vector<16x16x32xf32>
    %61 = arith.mulf %56, %60 : vector<16x16x32xf32>
    %62 = arith.addf %55, %61 : vector<16x16x32xf32>
    %c2_34 = arith.constant 2 : index
    %c2_35 = arith.constant 2 : index
    %c0_36 = arith.constant 0 : index
    %63 = vector.load %arg7[%c2_34, %c2_35, %c0_36] : memref<18x18x32xf32, #tpu.memory_space<vmem>>, vector<16x16x32xf32>
    %64 = vector.extract_strided_slice %5 {offsets = [8, 0], sizes = [1, 32], strides = [1, 1]} : vector<9x32xf32> to vector<1x32xf32>
    %65 = vector.shape_cast %64 : vector<1x32xf32> to vector<32xf32>
    %66 = vector.shape_cast %65 : vector<32xf32> to vector<1x1x32xf32>
    %67 = vector.broadcast %66 : vector<1x1x32xf32> to vector<16x16x32xf32>
    %68 = arith.mulf %63, %67 : vector<16x16x32xf32>
    %69 = arith.addf %62, %68 : vector<16x16x32xf32>
    %c0_37 = arith.constant 0 : index
    %c0_38 = arith.constant 0 : index
    %70 = vector.load %arg4[%c0_37, %c0_38] : memref<1x32xf32, #tpu.memory_space<vmem>>, vector<1x32xf32>
    %71 = vector.shape_cast %70 : vector<1x32xf32> to vector<1x1x32xf32>
    %72 = vector.broadcast %71 : vector<1x1x32xf32> to vector<16x16x32xf32>
    %73 = arith.addf %69, %72 : vector<16x16x32xf32>
    %74 = arith.negf %73 : vector<16x16x32xf32>
    %75 = math.exp %74 : vector<16x16x32xf32>
    %cst_39 = arith.constant 1.000000e+00 : f32
    %76 = vector.broadcast %cst_39 : f32 to vector<16x16x32xf32>
    %77 = arith.addf %76, %75 : vector<16x16x32xf32>
    %78 = arith.divf %76, %77 : vector<16x16x32xf32>
    %79 = arith.mulf %73, %78 : vector<16x16x32xf32>
    %c0_40 = arith.constant 0 : index
    %c0_41 = arith.constant 0 : index
    %c0_42 = arith.constant 0 : index
    %c0_43 = arith.constant 0 : index
    %80 = vector.load %arg5[%c0_40, %c0_41, %c0_42, %c0_43] : memref<1x16x16x32xf32, #tpu.memory_space<vmem>>, vector<1x16x16x32xf32>
    %81 = vector.shape_cast %80 : vector<1x16x16x32xf32> to vector<16x16x32xf32>
    %82 = vector.shape_cast %79 : vector<16x16x32xf32> to vector<1x16x16x32xf32>
    tpu.vector_store %arg5[%c0_40, %c0_41, %c0_42, %c0_43], %82 {strides = array<i32>} : memref<1x16x16x32xf32, #tpu.memory_space<vmem>>, vector<1x16x16x32xf32>,
    %cst_44 = arith.constant dense<0.000000e+00> : vector<32xf32>
    %83 = vector.multi_reduction <add>, %79, %cst_44 [0, 1] : vector<16x16x32xf32> to vector<32xf32>
    %84 = vector.shape_cast %83 : vector<32xf32> to vector<1x1x32xf32>
    %c0_45 = arith.constant 0 : index
    %c0_46 = arith.constant 0 : index
    %c0_47 = arith.constant 0 : index
    %85 = vector.load %arg6[%c0_45, %c0_46, %c0_47] : memref<1x1x32xf32, #tpu.memory_space<vmem>>, vector<1x1x32xf32>
    tpu.vector_store %arg6[%c0_45, %c0_46, %c0_47], %84 {strides = array<i32>} : memref<1x1x32xf32, #tpu.memory_space<vmem>>, vector<1x1x32xf32>,
    return
  }
  func.func @transform_0(%arg0: i32, %arg1: i32) -> (i32, i32, i32, i32) {
    %c0_i32 = arith.constant 0 : i32
    %c0_i32_0 = arith.constant 0 : i32
    %c0_i32_1 = arith.constant 0 : i32
    return %arg0, %c0_i32, %c0_i32_0, %arg1 : i32, i32, i32, i32
  }
  func.func @transform_1(%arg0: i32, %arg1: i32) -> (i32, i32) {
    %c0_i32 = arith.constant 0 : i32
    %c0_i32_0 = arith.constant 0 : i32
    return %c0_i32, %arg1 : i32, i32
  }
  func.func @transform_2(%arg0: i32, %arg1: i32) -> (i32, i32) {
    %c0_i32 = arith.constant 0 : i32
    %c0_i32_0 = arith.constant 0 : i32
    return %c0_i32, %arg1 : i32, i32
  }
  func.func @transform_3(%arg0: i32, %arg1: i32) -> (i32, i32, i32, i32) {
    %c0_i32 = arith.constant 0 : i32
    %c0_i32_0 = arith.constant 0 : i32
    %c0_i32_1 = arith.constant 0 : i32
    return %arg0, %c0_i32, %c0_i32_0, %arg1 : i32, i32, i32, i32
  }
  func.func @transform_4(%arg0: i32, %arg1: i32) -> (i32, i32, i32) {
    %c0_i32 = arith.constant 0 : i32
    %c0_i32_0 = arith.constant 0 : i32
    return %arg0, %c0_i32, %arg1 : i32, i32, i32
  }
}

module attributes {stable_mosaic.version = 11 : i64} {
  func.func @_proj_res_kernel(%arg0: i32, %arg1: i32, %arg2: memref<1x256x32xf32, #tpu.memory_space<vmem>>, %arg3: memref<32x8xf32, #tpu.memory_space<vmem>>, %arg4: memref<1x8xf32, #tpu.memory_space<vmem>>, %arg5: memref<1x1x32xf32, #tpu.memory_space<vmem>>, %arg6: memref<1x256x8xf32, #tpu.memory_space<vmem>>, %arg7: memref<1x256x8xf32, #tpu.memory_space<vmem>>) attributes {dimension_semantics = [#tpu.dimension_semantics<parallel>, #tpu.dimension_semantics<parallel>], iteration_bounds = array<i64: 2, 1>, scalar_prefetch = 0 : i64, scratch_operands = 0 : i64, tpu.core_type = #tpu.core_type<tc>, window_params = [{transform_indices = @transform_0, window_bounds = array<i64: 1, 256, 32>}, {pipeline_mode = #tpu.pipeline_mode<synchronous>, transform_indices = @transform_1, window_bounds = array<i64: 32, 8>}, {pipeline_mode = #tpu.pipeline_mode<synchronous>, transform_indices = @transform_2, window_bounds = array<i64: 1, 8>}, {transform_indices = @transform_3, window_bounds = array<i64: 1, 1, 32>}, {transform_indices = @transform_4, window_bounds = array<i64: 1, 256, 8>}, {transform_indices = @transform_5, window_bounds = array<i64: 1, 256, 8>}]} {
    %c0 = arith.constant 0 : index
    %c0_0 = arith.constant 0 : index
    %c0_1 = arith.constant 0 : index
    %0 = vector.load %arg2[%c0, %c0_0, %c0_1] : memref<1x256x32xf32, #tpu.memory_space<vmem>>, vector<1x256x32xf32>
    %1 = vector.shape_cast %0 : vector<1x256x32xf32> to vector<256x32xf32>
    %c0_2 = arith.constant 0 : index
    %c0_3 = arith.constant 0 : index
    %c0_4 = arith.constant 0 : index
    %2 = vector.load %arg5[%c0_2, %c0_3, %c0_4] : memref<1x1x32xf32, #tpu.memory_space<vmem>>, vector<1x1x32xf32>
    %3 = vector.shape_cast %2 : vector<1x1x32xf32> to vector<1x32xf32>
    %4 = vector.broadcast %3 : vector<1x32xf32> to vector<256x32xf32>
    %5 = arith.mulf %1, %4 : vector<256x32xf32>
    %c0_5 = arith.constant 0 : index
    %c0_6 = arith.constant 0 : index
    %6 = vector.load %arg3[%c0_5, %c0_6] : memref<32x8xf32, #tpu.memory_space<vmem>>, vector<32x8xf32>
    %cst = arith.constant dense<0.000000e+00> : vector<256x8xf32>
    %7 = tpu.matmul %5, %6, %cst {dimension_numbers = #tpu.dot_dimension_numbers<[1], [0], [0], [1], [0, 0, 1, 1], [], []>} : vector<256x32xf32>, vector<32x8xf32>, vector<256x8xf32> -> vector<256x8xf32>
    %c0_7 = arith.constant 0 : index
    %c0_8 = arith.constant 0 : index
    %8 = vector.load %arg4[%c0_7, %c0_8] : memref<1x8xf32, #tpu.memory_space<vmem>>, vector<1x8xf32>
    %9 = vector.broadcast %8 : vector<1x8xf32> to vector<256x8xf32>
    %10 = arith.addf %7, %9 : vector<256x8xf32>
    %11 = arith.negf %10 : vector<256x8xf32>
    %12 = math.exp %11 : vector<256x8xf32>
    %cst_9 = arith.constant 1.000000e+00 : f32
    %13 = vector.broadcast %cst_9 : f32 to vector<256x8xf32>
    %14 = arith.addf %13, %12 : vector<256x8xf32>
    %15 = arith.divf %13, %14 : vector<256x8xf32>
    %16 = arith.mulf %10, %15 : vector<256x8xf32>
    %c0_10 = arith.constant 0 : index
    %c0_11 = arith.constant 0 : index
    %c0_12 = arith.constant 0 : index
    %17 = vector.load %arg6[%c0_10, %c0_11, %c0_12] : memref<1x256x8xf32, #tpu.memory_space<vmem>>, vector<1x256x8xf32>
    %18 = vector.shape_cast %17 : vector<1x256x8xf32> to vector<256x8xf32>
    %19 = arith.addf %16, %18 : vector<256x8xf32>
    %c0_13 = arith.constant 0 : index
    %c0_14 = arith.constant 0 : index
    %c0_15 = arith.constant 0 : index
    %20 = vector.load %arg7[%c0_13, %c0_14, %c0_15] : memref<1x256x8xf32, #tpu.memory_space<vmem>>, vector<1x256x8xf32>
    %21 = vector.shape_cast %20 : vector<1x256x8xf32> to vector<256x8xf32>
    %22 = vector.shape_cast %19 : vector<256x8xf32> to vector<1x256x8xf32>
    tpu.vector_store %arg7[%c0_13, %c0_14, %c0_15], %22 {strides = array<i32>} : memref<1x256x8xf32, #tpu.memory_space<vmem>>, vector<1x256x8xf32>,
    return
  }
  func.func @transform_0(%arg0: i32, %arg1: i32) -> (i32, i32, i32) {
    %c0_i32 = arith.constant 0 : i32
    %c0_i32_0 = arith.constant 0 : i32
    return %arg0, %arg1, %c0_i32 : i32, i32, i32
  }
  func.func @transform_1(%arg0: i32, %arg1: i32) -> (i32, i32) {
    %c0_i32 = arith.constant 0 : i32
    %c0_i32_0 = arith.constant 0 : i32
    %c0_i32_1 = arith.constant 0 : i32
    return %c0_i32, %c0_i32_0 : i32, i32
  }
  func.func @transform_2(%arg0: i32, %arg1: i32) -> (i32, i32) {
    %c0_i32 = arith.constant 0 : i32
    %c0_i32_0 = arith.constant 0 : i32
    %c0_i32_1 = arith.constant 0 : i32
    return %c0_i32, %c0_i32_0 : i32, i32
  }
  func.func @transform_3(%arg0: i32, %arg1: i32) -> (i32, i32, i32) {
    %c0_i32 = arith.constant 0 : i32
    %c0_i32_0 = arith.constant 0 : i32
    %c0_i32_1 = arith.constant 0 : i32
    return %arg0, %c0_i32, %c0_i32_0 : i32, i32, i32
  }
  func.func @transform_4(%arg0: i32, %arg1: i32) -> (i32, i32, i32) {
    %c0_i32 = arith.constant 0 : i32
    %c0_i32_0 = arith.constant 0 : i32
    return %arg0, %arg1, %c0_i32 : i32, i32, i32
  }
  func.func @transform_5(%arg0: i32, %arg1: i32) -> (i32, i32, i32) {
    %c0_i32 = arith.constant 0 : i32
    %c0_i32_0 = arith.constant 0 : i32
    return %arg0, %arg1, %c0_i32 : i32, i32, i32
  }
}

</mosaic_0001>

<bundles_post_ra>
// kernel: mbconv_forward.3
= control target key start
LH: loop header
LB: loop body
LE: loop exit
PB: predicated region body
PF: predicated region fallthrough
CT: control target
= control target key end

     0   :  { %vm86_vm0 = vcmask 64512   ;;  %vm1112_vm1 = vcmask 261120   ;;  %s2654_s1 = inlined_call_operand.vmem [shape: f32[8,32], index: 1, kind: input, shape index: {}]   ;;  %s2655_s0 = inlined_call_operand.vmem [shape: f32[512,8], index: 0, kind: input, shape index: {}]   ;;  %s2656_s2 = inlined_call_operand.vmem [shape: f32[1,32], index: 2, kind: input, shape index: {}]   ;;  %s2657_s3 = inlined_call_operand.vmem [shape: f32[512,32], index: 3, kind: output, shape index: {}]  }
   0x1   :  { %v78_v0 = vld [vmem:[%s2654_s1] sm:$0xff]  ;;  %v15_v3 = vld [vmem:[%s2655_s0 + $0x8] sm:$0xff]  ;;  %v16_v5 = vld [vmem:[%s2655_s0 + $0x10] sm:$0xff] }
   0x2   :  { %v14_v1 = vld [vmem:[%s2655_s0] sm:$0xff]  ;;  %1375 = vmatprep.subr.mxu0 %v78_v0  ;;  %1473 = vmatprep.subr.mxu1 %v78_v0  ;;  %v47_v4 = vld [vmem:[%s2655_s0 + $0x108] sm:$0xff]  ;;  %v48_v6 = vld [vmem:[%s2655_s0 + $0x110] sm:$0xff] }
   0x3   :  { %v46_v2 = vld [vmem:[%s2655_s0 + $0x100] sm:$0xff]  ;;  %1376 = vmatpush3.msra.mxu0 %v78_v0  ;;  %1474 = vmatpush3.msra.mxu1 %v78_v0  ;;  %v17_v7 = vld [vmem:[%s2655_s0 + $0x18] sm:$0xff]  ;;  %v19_v11 = vld [vmem:[%s2655_s0 + $0x28] sm:$0xff] }
   0x4   :  { %1377 = vmatprep.mubr.msk.f32.mxu0 %vm86_vm0, %v14_v1  ;;  %1425 = vmatprep.mubr.msk.f32.mxu1 %vm86_vm0, %v46_v2  ;;  %v49_v8 = vld [vmem:[%s2655_s0 + $0x118] sm:$0xff]  ;;  %v18_v9 = vld [vmem:[%s2655_s0 + $0x20] sm:$0xff]  ;;  %v51_v12 = vld [vmem:[%s2655_s0 + $0x128] sm:$0xff] }
   0x5   :  { %1378 = vmatmul.mubr.msk.f32.vlgmr.msra.gmra.mrb[0].mxu0 %vm86_vm0, %v15_v3  ;;  %1426 = vmatmul.mubr.msk.f32.vlgmr.msra.gmra.mrb[0].mxu1 %vm86_vm0, %v47_v4  ;;  %v50_v10 = vld [vmem:[%s2655_s0 + $0x120] sm:$0xff]  ;;  %v20_v13 = vld [vmem:[%s2655_s0 + $0x30] sm:$0xff]  ;;  %v21_v15 = vld [vmem:[%s2655_s0 + $0x38] sm:$0xff] }
   0x6   :  { %1380 = vmatprep.mubr.msk.f32.mxu0 %vm86_vm0, %v16_v5  ;;  %1428 = vmatprep.mubr.msk.f32.mxu1 %vm86_vm0, %v48_v6  ;;  %v52_v14 = vld [vmem:[%s2655_s0 + $0x130] sm:$0xff]  ;;  %v53_v16 = vld [vmem:[%s2655_s0 + $0x138] sm:$0xff]  ;;  %v22_v17 = vld [vmem:[%s2655_s0 + $0x40] sm:$0xff] }
   0x7   :  { %v54_v18 = vld [vmem:[%s2655_s0 + $0x140] sm:$0xff]  ;;  %v23_v19 = vld [vmem:[%s2655_s0 + $0x48] sm:$0xff]  ;;  %v24_v21 = vld [vmem:[%s2655_s0 + $0x50] sm:$0xff] }
   0x8   :  { %v55_v20 = vld [vmem:[%s2655_s0 + $0x148] sm:$0xff]  ;;  %v56_v22 = vld [vmem:[%s2655_s0 + $0x150] sm:$0xff]  ;;  %v25_v23 = vld [vmem:[%s2655_s0 + $0x58] sm:$0xff] }
   0x9   :  { %1381 = vmatmul.mubr.msk.f32.gmra.mrb[2].mxu0 %vm86_vm0, %v17_v7  ;;  %1429 = vmatmul.mubr.msk.f32.gmra.mrb[2].mxu1 %vm86_vm0, %v49_v8  ;;  %v57_v24 = vld [vmem:[%s2655_s0 + $0x158] sm:$0xff]  ;;  %v26_v25 = vld [vmem:[%s2655_s0 + $0x60] sm:$0xff]  ;;  %v27_v27 = vld [vmem:[%s2655_s0 + $0x68] sm:$0xff] }
   0xa   :  { %1383 = vmatprep.mubr.msk.f32.mxu0 %vm86_vm0, %v18_v9  ;;  %1431 = vmatprep.mubr.msk.f32.mxu1 %vm86_vm0, %v50_v10  ;;  %v58_v26 = vld [vmem:[%s2655_s0 + $0x160] sm:$0xff]  ;;  %v59_v28 = vld [vmem:[%s2655_s0 + $0x168] sm:$0xff]  ;;  %v28_v29 = vld [vmem:[%s2655_s0 + $0x70] sm:$0xff] }
   0xb   :  { %v60_v30 = vld [vmem:[%s2655_s0 + $0x170] sm:$0xff]  ;;  %v29_v31 = vld [vmem:[%s2655_s0 + $0x78] sm:$0xff]  ;;  %v30_v33 = vld [vmem:[%s2655_s0 + $0x80] sm:$0xff] }
   0xc   :  { %v61_v32 = vld [vmem:[%s2655_s0 + $0x178] sm:$0xff]  ;;  %v62_v34 = vld [vmem:[%s2655_s0 + $0x180] sm:$0xff]  ;;  %v31_v35 = vld [vmem:[%s2655_s0 + $0x88] sm:$0xff] }
   0xd   :  { %1384 = vmatmul.mubr.msk.f32.gmra.mrb[4].mxu0 %vm86_vm0, %v19_v11  ;;  %1432 = vmatmul.mubr.msk.f32.gmra.mrb[4].mxu1 %vm86_vm0, %v51_v12  ;;  %v63_v36 = vld [vmem:[%s2655_s0 + $0x188] sm:$0xff]  ;;  %v32_v37 = vld [vmem:[%s2655_s0 + $0x90] sm:$0xff]  ;;  %v33_v39 = vld [vmem:[%s2655_s0 + $0x98] sm:$0xff] }
   0xe   :  { %1386 = vmatprep.mubr.msk.f32.mxu0 %vm86_vm0, %v20_v13  ;;  %1434 = vmatprep.mubr.msk.f32.mxu1 %vm86_vm0, %v52_v14  ;;  %v64_v38 = vld [vmem:[%s2655_s0 + $0x190] sm:$0xff]  ;;  %v65_v40 = vld [vmem:[%s2655_s0 + $0x198] sm:$0xff]  ;;  %v34_v41 = vld [vmem:[%s2655_s0 + $0xa0] sm:$0xff] }
   0xf   :  { %v66_v42 = vld [vmem:[%s2655_s0 + $0x1a0] sm:$0xff]  ;;  %v35_v43 = vld [vmem:[%s2655_s0 + $0xa8] sm:$0xff]  ;;  %v36_v45 = vld [vmem:[%s2655_s0 + $0xb0] sm:$0xff] }
  0x10   :  { %v67_v44 = vld [vmem:[%s2655_s0 + $0x1a8] sm:$0xff]  ;;  %v68_v46 = vld [vmem:[%s2655_s0 + $0x1b0] sm:$0xff]  ;;  %v37_v47 = vld [vmem:[%s2655_s0 + $0xb8] sm:$0xff] }
  0x11   :  { %1387 = vmatmul.mubr.msk.f32.gmra.mrb[6].mxu0 %vm86_vm0, %v21_v15  ;;  %1435 = vmatmul.mubr.msk.f32.gmra.mrb[6].mxu1 %vm86_vm0, %v53_v16  ;;  %v69_v48 = vld [vmem:[%s2655_s0 + $0x1b8] sm:$0xff]  ;;  %v38_v49 = vld [vmem:[%s2655_s0 + $0xc0] sm:$0xff]  ;;  %v39_v51 = vld [vmem:[%s2655_s0 + $0xc8] sm:$0xff] }
  0x12   :  { %1389 = vmatprep.mubr.msk.f32.mxu0 %vm86_vm0, %v22_v17  ;;  %1437 = vmatprep.mubr.msk.f32.mxu1 %vm86_vm0, %v54_v18  ;;  %v70_v50 = vld [vmem:[%s2655_s0 + $0x1c0] sm:$0xff]  ;;  %v71_v52 = vld [vmem:[%s2655_s0 + $0x1c8] sm:$0xff]  ;;  %v40_v53 = vld [vmem:[%s2655_s0 + $0xd0] sm:$0xff] }
  0x13   :  { %v72_v54 = vld [vmem:[%s2655_s0 + $0x1d0] sm:$0xff]  ;;  %v41_v55 = vld [vmem:[%s2655_s0 + $0xd8] sm:$0xff]  ;;  %v42_v57 = vld [vmem:[%s2655_s0 + $0xe0] sm:$0xff] }
  0x14   :  { %v73_v56 = vld [vmem:[%s2655_s0 + $0x1d8] sm:$0xff]  ;;  %v74_v58 = vld [vmem:[%s2655_s0 + $0x1e0] sm:$0xff]  ;;  %v43_v59 = vld [vmem:[%s2655_s0 + $0xe8] sm:$0xff] }
  0x15   :  { %1390 = vmatmul.mubr.msk.f32.gmra.mrb[8].mxu0 %vm86_vm0, %v23_v19  ;;  %1438 = vmatmul.mubr.msk.f32.gmra.mrb[8].mxu1 %vm86_vm0, %v55_v20  ;;  %v75_v60 = vld [vmem:[%s2655_s0 + $0x1e8] sm:$0xff]  ;;  %v44_v61 = vld [vmem:[%s2655_s0 + $0xf0] sm:$0xff]  ;;  %v45_v63 = vld [vmem:[%s2655_s0 + $0xf8] sm:$0xff] }
  0x16   :  { %1392 = vmatprep.mubr.msk.f32.mxu0 %vm86_vm0, %v24_v21  ;;  %1440 = vmatprep.mubr.msk.f32.mxu1 %vm86_vm0, %v56_v22  ;;  %v76_v62 = vld [vmem:[%s2655_s0 + $0x1f0] sm:$0xff]  ;;  %v77_v0 = vld [vmem:[%s2655_s0 + $0x1f8] sm:$0xff]  ;;  %v2013_v1 = vld [vmem:[%s2656_s2] ss:$0 sm:$0xff] }
  0x19   :  { %1393 = vmatmul.mubr.msk.f32.gmra.mrb[10].mxu0 %vm86_vm0, %v25_v23  ;;  %1441 = vmatmul.mubr.msk.f32.gmra.mrb[10].mxu1 %vm86_vm0, %v57_v24 }
  0x1a   :  { %1395 = vmatprep.mubr.msk.f32.mxu0 %vm86_vm0, %v26_v25  ;;  %1443 = vmatprep.mubr.msk.f32.mxu1 %vm86_vm0, %v58_v26 }
  0x1d   :  { %1396 = vmatmul.mubr.msk.f32.gmra.mrb[12].mxu0 %vm86_vm0, %v27_v27  ;;  %1444 = vmatmul.mubr.msk.f32.gmra.mrb[12].mxu1 %vm86_vm0, %v59_v28 }
  0x1e   :  { %1398 = vmatprep.mubr.msk.f32.mxu0 %vm86_vm0, %v28_v29  ;;  %1446 = vmatprep.mubr.msk.f32.mxu1 %vm86_vm0, %v60_v30 }
  0x21   :  { %1399 = vmatmul.mubr.msk.f32.gmra.mrb[14].mxu0 %vm86_vm0, %v29_v31  ;;  %1447 = vmatmul.mubr.msk.f32.gmra.mrb[14].mxu1 %vm86_vm0, %v61_v32 }
  0x22   :  { %1401 = vmatprep.mubr.msk.f32.mxu0 %vm86_vm0, %v30_v33  ;;  %1449 = vmatprep.mubr.msk.f32.mxu1 %vm86_vm0, %v62_v34 }
  0x25   :  { %1402 = vmatmul.mubr.msk.f32.gmra.mrb[16].mxu0 %vm86_vm0, %v31_v35  ;;  %1450 = vmatmul.mubr.msk.f32.gmra.mrb[16].mxu1 %vm86_vm0, %v63_v36 }
  0x26   :  { %1404 = vmatprep.mubr.msk.f32.mxu0 %vm86_vm0, %v32_v37  ;;  %1452 = vmatprep.mubr.msk.f32.mxu1 %vm86_vm0, %v64_v38 }
  0x29   :  { %1405 = vmatmul.mubr.msk.f32.gmra.mrb[18].mxu0 %vm86_vm0, %v33_v39  ;;  %1453 = vmatmul.mubr.msk.f32.gmra.mrb[18].mxu1 %vm86_vm0, %v65_v40 }
  0x2a   :  { %1407 = vmatprep.mubr.msk.f32.mxu0 %vm86_vm0, %v34_v41  ;;  %1455 = vmatprep.mubr.msk.f32.mxu1 %vm86_vm0, %v66_v42 }
  0x2d   :  { %1408 = vmatmul.mubr.msk.f32.gmra.mrb[20].mxu0 %vm86_vm0, %v35_v43  ;;  %1456 = vmatmul.mubr.msk.f32.gmra.mrb[20].mxu1 %vm86_vm0, %v67_v44 }
  0x2e   :  { %1410 = vmatprep.mubr.msk.f32.mxu0 %vm86_vm0, %v36_v45  ;;  %1458 = vmatprep.mubr.msk.f32.mxu1 %vm86_vm0, %v68_v46 }
  0x31   :  { %1411 = vmatmul.mubr.msk.f32.gmra.mrb[22].mxu0 %vm86_vm0, %v37_v47  ;;  %1459 = vmatmul.mubr.msk.f32.gmra.mrb[22].mxu1 %vm86_vm0, %v69_v48 }
  0x32   :  { %1413 = vmatprep.mubr.msk.f32.mxu0 %vm86_vm0, %v38_v49  ;;  %1461 = vmatprep.mubr.msk.f32.mxu1 %vm86_vm0, %v70_v50 }
  0x35   :  { %1414 = vmatmul.mubr.msk.f32.gmra.mrb[24].mxu0 %vm86_vm0, %v39_v51  ;;  %1462 = vmatmul.mubr.msk.f32.gmra.mrb[24].mxu1 %vm86_vm0, %v71_v52 }
  0x36   :  { %1416 = vmatprep.mubr.msk.f32.mxu0 %vm86_vm0, %v40_v53  ;;  %1464 = vmatprep.mubr.msk.f32.mxu1 %vm86_vm0, %v72_v54 }
  0x39   :  { %1417 = vmatmul.mubr.msk.f32.gmra.mrb[26].mxu0 %vm86_vm0, %v41_v55  ;;  %1465 = vmatmul.mubr.msk.f32.gmra.mrb[26].mxu1 %vm86_vm0, %v73_v56 }
  0x3a   :  { %1419 = vmatprep.mubr.msk.f32.mxu0 %vm86_vm0, %v42_v57  ;;  %1467 = vmatprep.mubr.msk.f32.mxu1 %vm86_vm0, %v74_v58 }
  0x3d   :  { %1420 = vmatmul.mubr.msk.f32.gmra.mrb[28].mxu0 %vm86_vm0, %v43_v59  ;;  %1468 = vmatmul.mubr.msk.f32.gmra.mrb[28].mxu1 %vm86_vm0, %v75_v60 }
  0x3e   :  { %1422 = vmatprep.mubr.msk.f32.mxu0 %vm86_vm0, %v44_v61  ;;  %1470 = vmatprep.mubr.msk.f32.mxu1 %vm86_vm0, %v76_v62 }
  0x41   :  { %1423 = vmatmul.mubr.msk.f32.gmra.mrb[30].mxu0 %vm86_vm0, %v45_v63  ;;  %1471 = vmatmul.mubr.msk.f32.gmra.mrb[30].mxu1 %vm86_vm0, %v77_v0 }
  0xd8   :  { %v1379_v2 = vpop.f32.mrb[0].mxu0  ;;  %v1427_v3 = vpop.f32.mrb[0].mxu1 }
  0xd9   :  { %v2016_v4 = vadd.f32 %v1379_v2, %v2013_v1  ;;  %v2019_v5 = vadd.f32 %v1427_v3, %v2013_v1  ;;  %v345_v6 = vpop.f32.mrb[1].mxu0  ;;  %v505_v7 = vpop.f32.mrb[1].mxu1 }
  0xda   :  { %v2022_v8 = vadd.f32 %v2013_v1, %v345_v6  ;;  %v2025_v9 = vadd.f32 %v2013_v1, %v505_v7 }
  0xdb   :  { %v1247_v10 = vmul.f32 -1.442695, %v2016_v4  ;;  %v1279_v11 = vmul.f32 -1.442695, %v2019_v5 }
  0xdc   :  { %v1246_v12 = vmul.f32 -1.442695, %v2022_v8  ;;  %v1278_v13 = vmul.f32 -1.442695, %v2025_v9  ;;  %v1382_v14 = vpop.f32.mrb[2].mxu0  ;;  %v1430_v15 = vpop.f32.mrb[2].mxu1 }
  0xdd   :  { %1475 = vpow2.f32 %v1247_v10  ;;  %v2032_v16 = vadd.f32 %v1382_v14, %v2013_v1  ;;  %v2035_v17 = vadd.f32 %v1430_v15, %v2013_v1  ;;  %v355_v18 = vpop.f32.mrb[3].mxu0  ;;  %v515_v19 = vpop.f32.mrb[3].mxu1 }
  0xde   :  { %1477 = vpow2.f32 %v1279_v11  ;;  %v2038_v20 = vadd.f32 %v2013_v1, %v355_v18  ;;  %v2041_v21 = vadd.f32 %v2013_v1, %v515_v19 }
  0xdf   :  { %1479 = vpow2.f32 %v1246_v12  ;;  %v1249_v22 = vmul.f32 -1.442695, %v2032_v16  ;;  %v1281_v23 = vmul.f32 -1.442695, %v2035_v17 }
  0xe0   :  { %1481 = vpow2.f32 %v1278_v13  ;;  %v1248_v24 = vmul.f32 -1.442695, %v2038_v20  ;;  %v1280_v25 = vmul.f32 -1.442695, %v2041_v21  ;;  %v1385_v26 = vpop.f32.mrb[4].mxu0  ;;  %v1433_v27 = vpop.f32.mrb[4].mxu1 }
  0xe1   :  { %1483 = vpow2.f32 %v1249_v22  ;;  %v2048_v28 = vadd.f32 %v1385_v26, %v2013_v1  ;;  %v2051_v29 = vadd.f32 %v1433_v27, %v2013_v1  ;;  %v365_v30 = vpop.f32.mrb[5].mxu0  ;;  %v525_v31 = vpop.f32.mrb[5].mxu1 }
  0xe2   :  { %1485 = vpow2.f32 %v1281_v23  ;;  %v2054_v32 = vadd.f32 %v2013_v1, %v365_v30  ;;  %v2057_v33 = vadd.f32 %v2013_v1, %v525_v31 }
  0xe3   :  { %1487 = vpow2.f32 %v1248_v24  ;;  %v1251_v34 = vmul.f32 -1.442695, %v2048_v28  ;;  %v1283_v35 = vmul.f32 -1.442695, %v2051_v29 }
  0xe4   :  { %1489 = vpow2.f32 %v1280_v25  ;;  %v1250_v36 = vmul.f32 -1.442695, %v2054_v32  ;;  %v1282_v37 = vmul.f32 -1.442695, %v2057_v33  ;;  %v1388_v38 = vpop.f32.mrb[6].mxu0  ;;  %v1436_v39 = vpop.f32.mrb[6].mxu1 }
  0xe5   :  { %1491 = vpow2.f32 %v1251_v34  ;;  %v2064_v40 = vadd.f32 %v1388_v38, %v2013_v1  ;;  %v375_v41 = vpop.f32.mrb[7].mxu0  ;;  %v535_v42 = vpop.f32.mrb[7].mxu1  ;;  %v2070_v10 = vadd.f32 %v1436_v39, %v2013_v1 }
  0xe6   :  { %1493 = vpow2.f32 %v1283_v35  ;;  %v2073_v13 = vadd.f32 %v2013_v1, %v375_v41  ;;  %v2078_v19 = vadd.f32 %v2013_v1, %v535_v42 }
  0xe7   :  { %v1476_v43 = vpop.eup %1475  ;;  %1495 = vpow2.f32 %v1250_v36  ;;  %v1253_v44 = vmul.f32 -1.442695, %v2064_v40  ;;  %v1285_v34 = vmul.f32 -1.442695, %v2070_v10 }
  0xe8   :  { %v1478_v45 = vpop.eup %1477  ;;  %v857_v46 = vadd.f32 1.0, %v1476_v43  ;;  %1497 = vpow2.f32 %v1282_v37  ;;  %v1391_v47 = vpop.f32.mrb[8].mxu0  ;;  %v1252_v38 = vmul.f32 -1.442695, %v2073_v13 }
  0xe9   :  { %v1480_v48 = vpop.eup %1479  ;;  %v889_v49 = vadd.f32 1.0, %v1478_v45  ;;  %1499 = vpow2.f32 %v1253_v44  ;;  %v1439_v50 = vpop.f32.mrb[8].mxu1  ;;  %v2085_v26 = vadd.f32 %v1391_v47, %v2013_v1  ;;  %v1284_v44 = vmul.f32 -1.442695, %v2078_v19 }
  0xea   :  { %v385_v51 = vpop.f32.mrb[9].mxu0  ;;  %v1482_v52 = vpop.eup %1481  ;;  %1501 = vrcp.f32 %v857_v46  ;;  %v856_v53 = vadd.f32 1.0, %v1480_v48  ;;  %v2091_v35 = vadd.f32 %v1439_v50, %v2013_v1 }
  0xeb   :  { %v545_v54 = vpop.f32.mrb[9].mxu1  ;;  %v1484_v55 = vpop.eup %1483  ;;  %1503 = vrcp.f32 %v889_v49  ;;  %v888_v56 = vadd.f32 1.0, %v1482_v52  ;;  %v2095_v39 = vadd.f32 %v2013_v1, %v385_v51  ;;  %v1255_v50 = vmul.f32 -1.442695, %v2085_v26 }
  0xec   :  { %v1486_v57 = vpop.eup %1485  ;;  %1505 = vrcp.f32 %v856_v53  ;;  %v859_v58 = vadd.f32 1.0, %v1484_v55  ;;  %v1394_v59 = vpop.f32.mrb[10].mxu0  ;;  %v2102_v45 = vadd.f32 %v2013_v1, %v545_v54  ;;  %v1287_v54 = vmul.f32 -1.442695, %v2091_v35 }
  0xed   :  { %v1488_v60 = vpop.eup %1487  ;;  %1507 = vrcp.f32 %v888_v56  ;;  %v891_v61 = vadd.f32 1.0, %v1486_v57  ;;  %v1442_v62 = vpop.f32.mrb[10].mxu1  ;;  %v2111_v51 = vadd.f32 %v1394_v59, %v2013_v1  ;;  %v1254_v57 = vmul.f32 -1.442695, %v2095_v39 }
  0xee   :  { %v395_v63 = vpop.f32.mrb[11].mxu0  ;;  %v1490_v0 = vpop.eup %1489  ;;  %1509 = vrcp.f32 %v859_v58  ;;  %v858_v2 = vadd.f32 1.0, %v1488_v60 }
  0xef   :  { %v2067_v3 = vpop.f32.mrb[11].mxu1  ;;  %v1492_v6 = vpop.eup %1491  ;;  %1511 = vrcp.f32 %v891_v61  ;;  %v890_v7 = vadd.f32 1.0, %v1490_v0  ;;  %v2131_v58 = vadd.f32 %v2013_v1, %v395_v63 }
  0xf0   :  { %v1494_v11 = vpop.eup %1493  ;;  %1513 = vrcp.f32 %v858_v2  ;;  %v861_v12 = vadd.f32 1.0, %v1492_v6  ;;  %v2075_v14 = vpop.f32.mrb[12].mxu0 }
  0xf1   :  { %v1496_v15 = vpop.eup %1495  ;;  %1515 = vrcp.f32 %v890_v7  ;;  %v893_v18 = vadd.f32 1.0, %v1494_v11  ;;  %v2080_v22 = vpop.f32.mrb[12].mxu1  ;;  %v2159_v7 = vadd.f32 %v2075_v14, %v2013_v1 }
  0xf2   :  { %v2082_v23 = vpop.f32.mrb[13].mxu0  ;;  %v1498_v24 = vpop.eup %1497  ;;  %1517 = vrcp.f32 %v861_v12  ;;  %v860_v25 = vadd.f32 1.0, %v1496_v15 }
  0xf3   :  { %v2087_v27 = vpop.f32.mrb[13].mxu1  ;;  %v1500_v30 = vpop.eup %1499  ;;  %1519 = vrcp.f32 %v893_v18  ;;  %v892_v31 = vadd.f32 1.0, %v1498_v24  ;;  %v1256_v18 = vmul.f32 -1.442695, %v2131_v58 }
  0xf4   :  { %v1502_v36 = vpop.eup %1501  ;;  %1521 = vrcp.f32 %v860_v25  ;;  %v863_v37 = vadd.f32 1.0, %v1500_v30  ;;  %v2097_v41 = vpop.f32.mrb[14].mxu0 }
  0xf5   :  { %v1504_v42 = vpop.eup %1503  ;;  %v1049_v43 = vmul.f32 %v1502_v36, %v2016_v4  ;;  %1523 = vrcp.f32 %v892_v31  ;;  %v2104_v46 = vpop.f32.mrb[14].mxu1 }
  0xf6   :  { %v2106_v47 = vpop.f32.mrb[15].mxu0  ;;  %v1506_v48 = vpop.eup %1505  ;;  %v1081_v49 = vmul.f32 %v1504_v42, %v2019_v5  ;;  %1525 = vrcp.f32 %v863_v37  ;;  %v2122_v5 = vadd.f32 %v1442_v62, %v2013_v1  ;;  %v2145_v62 = vadd.f32 %v2013_v1, %v2067_v3 }
  0xf7   :  { %v2113_v4 = vpop.f32.mrb[15].mxu1  ;;  %v1508_v52 = vpop.eup %1507  ;;  %1114 = vst.msk [vmem:[%s2657_s3 + $0x8] sm:$0xff] %vm1112_vm1, %v1049_v43  ;;  %v1048_v53 = vmul.f32 %v1506_v48, %v2022_v8  ;;  %1527 = vpow2.f32 %v1285_v34 }
  0xf8   :  { %v1510_v55 = vpop.eup %1509  ;;  %1146 = vst.msk [vmem:[%s2657_s3 + $0x108] sm:$0xff] %vm1112_vm1, %v1081_v49  ;;  %v1080_v56 = vmul.f32 %v1508_v52, %v2025_v9  ;;  %1529 = vpow2.f32 %v1252_v38  ;;  %v2133_v8 = vpop.f32.mrb[16].mxu0  ;;  %v1286_v9 = vmul.f32 -1.442695, %v2102_v45  ;;  %v1289_v12 = vmul.f32 -1.442695, %v2122_v5 }
  0xf9   :  { %v2135_v59 = vpop.f32.mrb[16].mxu1  ;;  %v1512_v60 = vpop.eup %1511  ;;  %1113 = vst.msk [vmem:[%s2657_s3] sm:$0xff] %vm1112_vm1, %v1048_v53  ;;  %v1051_v61 = vmul.f32 %v1510_v55, %v2032_v16  ;;  %1531 = vpow2.f32 %v1284_v44  ;;  %v1257_v16 = vmul.f32 -1.442695, %v2111_v51  ;;  %v1288_v30 = vmul.f32 -1.442695, %v2145_v62 }
  0xfa   :  { %v2147_v63 = vpop.f32.mrb[17].mxu0  ;;  %v2149_v0 = vpop.f32.mrb[17].mxu1  ;;  %1145 = vst.msk [vmem:[%s2657_s3 + $0x100] sm:$0xff] %vm1112_vm1, %v1080_v56  ;;  %v1083_v6 = vmul.f32 %v1512_v60, %v2035_v17  ;;  %1533 = vpow2.f32 %v1255_v50  ;;  %v2169_v17 = vadd.f32 %v2080_v22, %v2013_v1  ;;  %v2216_v49 = vadd.f32 %v2013_v1, %v2087_v27 }
  0xfb   :  { %v1514_v2 = vpop.eup %1513  ;;  %1116 = vst.msk [vmem:[%s2657_s3 + $0x18] sm:$0xff] %vm1112_vm1, %v1051_v61  ;;  %1535 = vpow2.f32 %v1287_v54 }
  0xfc   :  { %v1516_v3 = vpop.eup %1515  ;;  %v1050_v11 = vmul.f32 %v1514_v2, %v2038_v20  ;;  %1148 = vst.msk [vmem:[%s2657_s3 + $0x118] sm:$0xff] %vm1112_vm1, %v1083_v6  ;;  %1537 = vpow2.f32 %v1254_v57  ;;  %v2177_v24 = vpop.f32.mrb[18].mxu0  ;;  %v1291_v43 = vmul.f32 -1.442695, %v2169_v17 }
  0xfd   :  { %v1518_v15 = vpop.eup %1517  ;;  %v1082_v14 = vmul.f32 %v1516_v3, %v2041_v21  ;;  %v2179_v20 = vpop.f32.mrb[18].mxu1  ;;  %1539 = vpow2.f32 %v1286_v9  ;;  %v2189_v21 = vadd.f32 %v2013_v1, %v2082_v23  ;;  %v2247_v3 = vmul.f32 -1.442695, %v2216_v49 }
  0xfe   :  { %v1520_v25 = vpop.eup %1519  ;;  %1115 = vst.msk [vmem:[%s2657_s3 + $0x10] sm:$0xff] %vm1112_vm1, %v1050_v11  ;;  %v1053_v22 = vmul.f32 %v1518_v15, %v2048_v28  ;;  %v435_v31 = vpop.f32.mrb[19].mxu0  ;;  %1541 = vpow2.f32 %v1257_v16  ;;  %v1259_v28 = vmul.f32 -1.442695, %v2159_v7  ;;  %v2251_v11 = vadd.f32 %v2097_v41, %v2013_v1 }
  0xff   :  { %v595_v34 = vpop.f32.mrb[19].mxu1  ;;  %v1522_v36 = vpop.eup %1521  ;;  %1147 = vst.msk [vmem:[%s2657_s3 + $0x110] sm:$0xff] %vm1112_vm1, %v1082_v14  ;;  %v1085_v37 = vmul.f32 %v1520_v25, %v2051_v29  ;;  %v2198_v38 = vadd.f32 %v2013_v1, %v435_v31  ;;  %1543 = vpow2.f32 %v1289_v12  ;;  %v2241_v9 = vmul.f32 -1.442695, %v2189_v21 }
 0x100   :  { %v1524_v42 = vpop.eup %1523  ;;  %1118 = vst.msk [vmem:[%s2657_s3 + $0x28] sm:$0xff] %vm1112_vm1, %v1053_v22  ;;  %v1052_v23 = vmul.f32 %v1522_v36, %v2054_v32  ;;  %v2207_v44 = vadd.f32 %v2013_v1, %v595_v34  ;;  %1545 = vpow2.f32 %v1256_v18  ;;  %v1409_v32 = vpop.f32.mrb[20].mxu0  ;;  %v2255_v18 = vadd.f32 %v2104_v46, %v2013_v1 }
 0x101   :  { %v1526_v29 = vpop.eup %1525  ;;  %1150 = vst.msk [vmem:[%s2657_s3 + $0x128] sm:$0xff] %vm1112_vm1, %v1085_v37  ;;  %v1084_v48 = vmul.f32 %v1524_v42, %v2057_v33  ;;  %v1457_v50 = vpop.f32.mrb[20].mxu1  ;;  %1547 = vpow2.f32 %v1288_v30  ;;  %v2224_v54 = vadd.f32 %v1409_v32, %v2013_v1  ;;  %v2268_v46 = vadd.f32 %v2013_v1, %v2106_v47 }
 0x102   :  { %v1528_v52 = vpop.eup %1527  ;;  %1117 = vst.msk [vmem:[%s2657_s3 + $0x20] sm:$0xff] %vm1112_vm1, %v1052_v23  ;;  %v1055_v53 = vmul.f32 %v1526_v29, %v2064_v40  ;;  %v445_v33 = vpop.f32.mrb[21].mxu0  ;;  %1549 = vpow2.f32 %v1259_v28  ;;  %v2231_v57 = vadd.f32 %v1457_v50, %v2013_v1  ;;  %v2278_v32 = vadd.f32 %v2013_v1, %v2113_v4 }
 0x103   :  { %v605_v55 = vpop.f32.mrb[21].mxu1  ;;  %v1530_v56 = vpop.eup %1529  ;;  %1149 = vst.msk [vmem:[%s2657_s3 + $0x120] sm:$0xff] %vm1112_vm1, %v1084_v48  ;;  %v895_v27 = vadd.f32 1.0, %v1528_v52  ;;  %v2234_v60 = vadd.f32 %v2013_v1, %v445_v33  ;;  %1551 = vpow2.f32 %v1291_v43  ;;  %v2274_v48 = vmul.f32 -1.442695, %v2251_v11 }
 0x104   :  { %v1532_v40 = vpop.eup %1531  ;;  %1120 = vst.msk [vmem:[%s2657_s3 + $0x38] sm:$0xff] %vm1112_vm1, %v1055_v53  ;;  %v862_v61 = vadd.f32 1.0, %v1530_v56  ;;  %v2244_v2 = vadd.f32 %v2013_v1, %v605_v55  ;;  %v1412_v12 = vpop.f32.mrb[22].mxu0  ;;  %v2281_v47 = vmul.f32 -1.442695, %v2255_v18 }
 0x105   :  { %v1534_v6 = vpop.eup %1533  ;;  %1553 = vrcp.f32 %v895_v27  ;;  %v894_v16 = vadd.f32 1.0, %v1532_v40  ;;  %v2258_v25 = vadd.f32 %v1412_v12, %v2013_v1  ;;  %v1460_v22 = vpop.f32.mrb[22].mxu1 }
 0x106   :  { %v1536_v15 = vpop.eup %1535  ;;  %1555 = vrcp.f32 %v862_v61  ;;  %v865_v14 = vadd.f32 1.0, %v1534_v6  ;;  %v455_v30 = vpop.f32.mrb[23].mxu0  ;;  %v2261_v36 = vadd.f32 %v1460_v22, %v2013_v1 }
 0x107   :  { %v1538_v31 = vpop.eup %1537  ;;  %1557 = vrcp.f32 %v894_v16  ;;  %v897_v34 = vadd.f32 1.0, %v1536_v15  ;;  %v2264_v41 = vadd.f32 %v2013_v1, %v455_v30  ;;  %v615_v37 = vpop.f32.mrb[23].mxu1  ;;  %v2293_v15 = vmul.f32 -1.442695, %v2268_v46 }
 0x108   :  { %v1540_v28 = vpop.eup %1539  ;;  %1559 = vrcp.f32 %v865_v14  ;;  %v864_v42 = vadd.f32 1.0, %v1538_v31  ;;  %v2271_v23 = vadd.f32 %v2013_v1, %v615_v37  ;;  %v1415_v50 = vpop.f32.mrb[24].mxu0  ;;  %v2299_v31 = vmul.f32 -1.442695, %v2278_v32 }
 0x109   :  { %v1542_v43 = vpop.eup %1541  ;;  %1561 = vrcp.f32 %v897_v34  ;;  %v896_v29 = vadd.f32 1.0, %v1540_v28  ;;  %v2284_v33 = vadd.f32 %v1415_v50, %v2013_v1  ;;  %v1463_v55 = vpop.f32.mrb[24].mxu1  ;;  %v2303_v34 = vadd.f32 %v2133_v8, %v2013_v1 }
 0x10a   :  { %v1544_v52 = vpop.eup %1543  ;;  %1563 = vrcp.f32 %v864_v42  ;;  %v867_v53 = vadd.f32 1.0, %v1542_v43  ;;  %v465_v56 = vpop.f32.mrb[25].mxu0  ;;  %v2287_v61 = vadd.f32 %v1463_v55, %v2013_v1  ;;  %v2307_v43 = vadd.f32 %v2135_v59, %v2013_v1 }
 0x10b   :  { %v1546_v27 = vpop.eup %1545  ;;  %1565 = vrcp.f32 %v896_v29  ;;  %v899_v40 = vadd.f32 1.0, %v1544_v52  ;;  %v2290_v4 = vadd.f32 %v2013_v1, %v465_v56  ;;  %v625_v6 = vpop.f32.mrb[25].mxu1  ;;  %v2321_v59 = vadd.f32 %v2013_v1, %v2147_v63 }
 0x10c   :  { %v1548_v16 = vpop.eup %1547  ;;  %1567 = vrcp.f32 %v867_v53  ;;  %v866_v12 = vadd.f32 1.0, %v1546_v27  ;;  %v2296_v14 = vadd.f32 %v2013_v1, %v625_v6  ;;  %v1418_v37 = vpop.f32.mrb[26].mxu0 }
 0x10d   :  { %v1550_v22 = vpop.eup %1549  ;;  %1569 = vrcp.f32 %v899_v40  ;;  %v898_v30 = vadd.f32 1.0, %v1548_v16  ;;  %v2310_v29 = vadd.f32 %v1418_v37, %v2013_v1  ;;  %v1466_v50 = vpop.f32.mrb[26].mxu1  ;;  %v2330_v37 = vadd.f32 %v2013_v1, %v2149_v0 }
 0x10e   :  { %v1552_v28 = vpop.eup %1551  ;;  %1571 = vrcp.f32 %v866_v12  ;;  %v869_v42 = vadd.f32 1.0, %v1550_v22  ;;  %v475_v52 = vpop.f32.mrb[27].mxu0  ;;  %v2313_v56 = vadd.f32 %v1466_v50, %v2013_v1 }
 0x10f   :  { %v1554_v53 = vpop.eup %1553  ;;  %1573 = vrcp.f32 %v898_v30  ;;  %v901_v55 = vadd.f32 1.0, %v1552_v28  ;;  %v2316_v8 = vadd.f32 %v2013_v1, %v475_v52  ;;  %v635_v27 = vpop.f32.mrb[27].mxu1  ;;  %v1263_v30 = vmul.f32 -1.442695, %v2303_v34 }
 0x110   :  { %v1556_v40 = vpop.eup %1555  ;;  %v1087_v6 = vmul.f32 %v1554_v53, %v2070_v10  ;;  %1575 = vrcp.f32 %v869_v42  ;;  %v2324_v16 = vadd.f32 %v2013_v1, %v635_v27  ;;  %v1421_v28 = vpop.f32.mrb[28].mxu0 }
 0x111   :  { %v1558_v12 = vpop.eup %1557  ;;  %v1054_v22 = vmul.f32 %v1556_v40, %v2073_v13  ;;  %1577 = vrcp.f32 %v901_v55  ;;  %v1469_v10 = vpop.f32.mrb[28].mxu1  ;;  %v1295_v13 = vmul.f32 -1.442695, %v2307_v43  ;;  %v2340_v50 = vadd.f32 %v1421_v28, %v2013_v1 }
 0x112   :  { %v1560_v42 = vpop.eup %1559  ;;  %1152 = vst.msk [vmem:[%s2657_s3 + $0x138] sm:$0xff] %vm1112_vm1, %v1087_v6  ;;  %v1086_v63 = vmul.f32 %v1558_v12, %v2078_v19  ;;  %1579 = vpow2.f32 %v2241_v9  ;;  %v485_v52 = vpop.f32.mrb[29].mxu0  ;;  %v2349_v19 = vadd.f32 %v1469_v10, %v2013_v1 }
 0x113   :  { %v645_v0 = vpop.f32.mrb[29].mxu1  ;;  %v1562_v53 = vpop.eup %1561  ;;  %1119 = vst.msk [vmem:[%s2657_s3 + $0x30] sm:$0xff] %vm1112_vm1, %v1054_v22  ;;  %v1057_v55 = vmul.f32 %v1560_v42, %v2085_v26  ;;  %1581 = vpow2.f32 %v2247_v3  ;;  %v2352_v9 = vadd.f32 %v2013_v1, %v485_v52  ;;  %v2362_v26 = vadd.f32 %v2177_v24, %v2013_v1 }
 0x114   :  { %v1564_v27 = vpop.eup %1563  ;;  %1151 = vst.msk [vmem:[%s2657_s3 + $0x130] sm:$0xff] %vm1112_vm1, %v1086_v63  ;;  %v1089_v40 = vmul.f32 %v1562_v53, %v2091_v35  ;;  %1583 = vpow2.f32 %v2274_v48  ;;  %v2365_v3 = vadd.f32 %v2013_v1, %v645_v0  ;;  %v1262_v35 = vmul.f32 -1.442695, %v2321_v59  ;;  %v1424_v24 = vpop.f32.mrb[30].mxu0 }
 0x115   :  { %v1566_v6 = vpop.eup %1565  ;;  %1122 = vst.msk [vmem:[%s2657_s3 + $0x48] sm:$0xff] %vm1112_vm1, %v1057_v55  ;;  %v1056_v12 = vmul.f32 %v1564_v27, %v2095_v39  ;;  %1585 = vpow2.f32 %v2281_v47  ;;  %v2376_v48 = vadd.f32 %v2179_v20, %v2013_v1  ;;  %v1472_v22 = vpop.f32.mrb[30].mxu1  ;;  %v1294_v39 = vmul.f32 -1.442695, %v2330_v37 }
 0x116   :  { %v1568_v28 = vpop.eup %1567  ;;  %1154 = vst.msk [vmem:[%s2657_s3 + $0x148] sm:$0xff] %vm1112_vm1, %v1089_v40  ;;  %v1088_v10 = vmul.f32 %v1566_v6, %v2102_v45  ;;  %1587 = vpow2.f32 %v2293_v15  ;;  %v2386_v47 = vadd.f32 %v1424_v24, %v2013_v1  ;;  %v495_v42 = vpop.f32.mrb[31].mxu0  ;;  %v2395_v45 = vadd.f32 %v1472_v22, %v2013_v1 }
 0x117   :  { %v655_v20 = vpop.f32.mrb[31].mxu1  ;;  %v1570_v63 = vpop.eup %1569  ;;  %1121 = vst.msk [vmem:[%s2657_s3 + $0x40] sm:$0xff] %vm1112_vm1, %v1056_v12  ;;  %v1059_v52 = vmul.f32 %v1568_v28, %v2111_v51  ;;  %1589 = vpow2.f32 %v2299_v31  ;;  %v2398_v15 = vadd.f32 %v2013_v1, %v495_v42  ;;  %v1265_v55 = vmul.f32 -1.442695, %v2362_v26 }
 0x118   :  { %v1572_v0 = vpop.eup %1571  ;;  %1153 = vst.msk [vmem:[%s2657_s3 + $0x140] sm:$0xff] %vm1112_vm1, %v1088_v10  ;;  %v1091_v53 = vmul.f32 %v1570_v63, %v2122_v5  ;;  %1591 = vpow2.f32 %v1263_v30  ;;  %v2407_v51 = vadd.f32 %v2013_v1, %v655_v20  ;;  %v1297_v40 = vmul.f32 -1.442695, %v2376_v48 }
 0x119   :  { %v1574_v31 = vpop.eup %1573  ;;  %1124 = vst.msk [vmem:[%s2657_s3 + $0x58] sm:$0xff] %vm1112_vm1, %v1059_v52  ;;  %v1058_v27 = vmul.f32 %v1572_v0, %v2131_v58  ;;  %1593 = vpow2.f32 %v1295_v13  ;;  %v1264_v5 = vmul.f32 -1.442695, %v2198_v38 }
 0x11a   :  { %v1576_v6 = vpop.eup %1575  ;;  %1156 = vst.msk [vmem:[%s2657_s3 + $0x158] sm:$0xff] %vm1112_vm1, %v1091_v53  ;;  %v1090_v1 = vmul.f32 %v1574_v31, %v2145_v62  ;;  %1595 = vpow2.f32 %v1262_v35 }
 0x11b   :  { %v1578_v30 = vpop.eup %1577  ;;  %1123 = vst.msk [vmem:[%s2657_s3 + $0x50] sm:$0xff] %vm1112_vm1, %v1058_v27  ;;  %v1061_v58 = vmul.f32 %v1576_v6, %v2159_v7  ;;  %1597 = vpow2.f32 %v1294_v39 }
 0x11c   :  { %v1580_v13 = vpop.eup %1579  ;;  %1155 = vst.msk [vmem:[%s2657_s3 + $0x150] sm:$0xff] %vm1112_vm1, %v1090_v1  ;;  %v1093_v62 = vmul.f32 %v1578_v30, %v2169_v17  ;;  %1599 = vpow2.f32 %v1265_v55 }
 0x11d   :  { %v1582_v12 = vpop.eup %1581  ;;  %1126 = vst.msk [vmem:[%s2657_s3 + $0x68] sm:$0xff] %vm1112_vm1, %v1061_v58  ;;  %v868_v35 = vadd.f32 1.0, %v1580_v13  ;;  %1601 = vpow2.f32 %v1297_v40  ;;  %v1296_v13 = vmul.f32 -1.442695, %v2207_v44 }
 0x11e   :  { %v1584_v24 = vpop.eup %1583  ;;  %1158 = vst.msk [vmem:[%s2657_s3 + $0x168] sm:$0xff] %vm1112_vm1, %v1093_v62  ;;  %v900_v7 = vadd.f32 1.0, %v1582_v12  ;;  %1603 = vpow2.f32 %v1264_v5 }
 0x11f   :  { %v1586_v22 = vpop.eup %1585  ;;  %1605 = vrcp.f32 %v868_v35  ;;  %v871_v17 = vadd.f32 1.0, %v1584_v24  ;;  %v1267_v35 = vmul.f32 -1.442695, %v2224_v54 }
 0x120   :  { %v1588_v28 = vpop.eup %1587  ;;  %1607 = vrcp.f32 %v900_v7  ;;  %v903_v10 = vadd.f32 1.0, %v1586_v22  ;;  %v1299_v22 = vmul.f32 -1.442695, %v2231_v57 }
 0x121   :  { %v1590_v39 = vpop.eup %1589  ;;  %1609 = vrcp.f32 %v871_v17  ;;  %v870_v42 = vadd.f32 1.0, %v1588_v28 }
 0x122   :  { %v1592_v20 = vpop.eup %1591  ;;  %1611 = vrcp.f32 %v903_v10  ;;  %v902_v63 = vadd.f32 1.0, %v1590_v39  ;;  %v1266_v10 = vmul.f32 -1.442695, %v2234_v60 }
 0x123   :  { %v1594_v52 = vpop.eup %1593  ;;  %1613 = vrcp.f32 %v870_v42  ;;  %v873_v0 = vadd.f32 1.0, %v1592_v20 }
 0x124   :  { %v1596_v53 = vpop.eup %1595  ;;  %1615 = vrcp.f32 %v902_v63  ;;  %v905_v55 = vadd.f32 1.0, %v1594_v52  ;;  %v1269_v63 = vmul.f32 -1.442695, %v2258_v25 }
 0x125   :  { %v1598_v31 = vpop.eup %1597  ;;  %1617 = vrcp.f32 %v873_v0  ;;  %v872_v27 = vadd.f32 1.0, %v1596_v53  ;;  %v1301_v0 = vmul.f32 -1.442695, %v2261_v36 }
 0x126   :  { %v1600_v40 = vpop.eup %1599  ;;  %1619 = vrcp.f32 %v905_v55  ;;  %v904_v6 = vadd.f32 1.0, %v1598_v31  ;;  %v1268_v55 = vmul.f32 -1.442695, %v2264_v41 }
 0x127   :  { %v1602_v1 = vpop.eup %1601  ;;  %1621 = vrcp.f32 %v872_v27  ;;  %v875_v5 = vadd.f32 1.0, %v1600_v40  ;;  %v1300_v27 = vmul.f32 -1.442695, %v2271_v23 }
 0x128   :  { %v1604_v30 = vpop.eup %1603  ;;  %1623 = vrcp.f32 %v904_v6  ;;  %v907_v58 = vadd.f32 1.0, %v1602_v1  ;;  %v1271_v6 = vmul.f32 -1.442695, %v2284_v33 }
 0x129   :  { %v1606_v62 = vpop.eup %1605  ;;  %1625 = vrcp.f32 %v875_v5  ;;  %v874_v12 = vadd.f32 1.0, %v1604_v30  ;;  %v1303_v5 = vmul.f32 -1.442695, %v2287_v61 }
 0x12a   :  { %v1608_v24 = vpop.eup %1607  ;;  %v1060_v7 = vmul.f32 %v1606_v62, %v2189_v21  ;;  %1627 = vrcp.f32 %v907_v58  ;;  %v1298_v21 = vmul.f32 -1.442695, %v2244_v2  ;;  %v1270_v58 = vmul.f32 -1.442695, %v2290_v4 }
 0x12b   :  { %v1610_v17 = vpop.eup %1609  ;;  %v1092_v28 = vmul.f32 %v1608_v24, %v2216_v49  ;;  %1629 = vrcp.f32 %v874_v12  ;;  %v1302_v62 = vmul.f32 -1.442695, %v2296_v14 }
 0x12c   :  { %v1612_v39 = vpop.eup %1611  ;;  %1125 = vst.msk [vmem:[%s2657_s3 + $0x60] sm:$0xff] %vm1112_vm1, %v1060_v7  ;;  %v1063_v42 = vmul.f32 %v1610_v17, %v2251_v11  ;;  %1631 = vpow2.f32 %v1296_v13 }
 0x12d   :  { %v1614_v20 = vpop.eup %1613  ;;  %1157 = vst.msk [vmem:[%s2657_s3 + $0x160] sm:$0xff] %vm1112_vm1, %v1092_v28  ;;  %v1095_v49 = vmul.f32 %v1612_v39, %v2255_v18  ;;  %1633 = vpow2.f32 %v1267_v35 }
 0x12e   :  { %v1616_v52 = vpop.eup %1615  ;;  %1128 = vst.msk [vmem:[%s2657_s3 + $0x78] sm:$0xff] %vm1112_vm1, %v1063_v42  ;;  %v1062_v11 = vmul.f32 %v1614_v20, %v2268_v46  ;;  %1635 = vpow2.f32 %v1299_v22 }
 0x12f   :  { %v1618_v53 = vpop.eup %1617  ;;  %1160 = vst.msk [vmem:[%s2657_s3 + $0x178] sm:$0xff] %vm1112_vm1, %v1095_v49  ;;  %v1094_v18 = vmul.f32 %v1616_v52, %v2278_v32  ;;  %1637 = vpow2.f32 %v1266_v10 }
 0x130   :  { %v1620_v31 = vpop.eup %1619  ;;  %1127 = vst.msk [vmem:[%s2657_s3 + $0x70] sm:$0xff] %vm1112_vm1, %v1062_v11  ;;  %v1065_v46 = vmul.f32 %v1618_v53, %v2303_v34  ;;  %1639 = vpow2.f32 %v1298_v21 }
 0x131   :  { %v1622_v40 = vpop.eup %1621  ;;  %1159 = vst.msk [vmem:[%s2657_s3 + $0x170] sm:$0xff] %vm1112_vm1, %v1094_v18  ;;  %v1097_v32 = vmul.f32 %v1620_v31, %v2307_v43  ;;  %1641 = vpow2.f32 %v1269_v63 }
 0x132   :  { %v1624_v1 = vpop.eup %1623  ;;  %1130 = vst.msk [vmem:[%s2657_s3 + $0x88] sm:$0xff] %vm1112_vm1, %v1065_v46  ;;  %v1064_v34 = vmul.f32 %v1622_v40, %v2321_v59  ;;  %1643 = vpow2.f32 %v1301_v0 }
 0x133   :  { %v1626_v30 = vpop.eup %1625  ;;  %1162 = vst.msk [vmem:[%s2657_s3 + $0x188] sm:$0xff] %vm1112_vm1, %v1097_v32  ;;  %v1096_v43 = vmul.f32 %v1624_v1, %v2330_v37  ;;  %1645 = vpow2.f32 %v1268_v55  ;;  %v1273_v32 = vmul.f32 -1.442695, %v2310_v29 }
 0x134   :  { %v1628_v13 = vpop.eup %1627  ;;  %1129 = vst.msk [vmem:[%s2657_s3 + $0x80] sm:$0xff] %vm1112_vm1, %v1064_v34  ;;  %v1067_v59 = vmul.f32 %v1626_v30, %v2362_v26  ;;  %1647 = vpow2.f32 %v1300_v27  ;;  %v1305_v34 = vmul.f32 -1.442695, %v2313_v56 }
 0x135   :  { %v1630_v12 = vpop.eup %1629  ;;  %1161 = vst.msk [vmem:[%s2657_s3 + $0x180] sm:$0xff] %vm1112_vm1, %v1096_v43  ;;  %v1099_v37 = vmul.f32 %v1628_v13, %v2376_v48  ;;  %1649 = vpow2.f32 %v1271_v6  ;;  %v1272_v43 = vmul.f32 -1.442695, %v2316_v8 }
 0x136   :  { %v1632_v35 = vpop.eup %1631  ;;  %1132 = vst.msk [vmem:[%s2657_s3 + $0x98] sm:$0xff] %vm1112_vm1, %v1067_v59  ;;  %v1066_v26 = vmul.f32 %v1630_v12, %v2198_v38  ;;  %1651 = vpow2.f32 %v1303_v5  ;;  %v1304_v59 = vmul.f32 -1.442695, %v2324_v16 }
 0x137   :  { %v1634_v24 = vpop.eup %1633  ;;  %1164 = vst.msk [vmem:[%s2657_s3 + $0x198] sm:$0xff] %vm1112_vm1, %v1099_v37  ;;  %v906_v7 = vadd.f32 1.0, %v1632_v35  ;;  %1653 = vpow2.f32 %v1270_v58  ;;  %v1307_v35 = vmul.f32 -1.442695, %v2349_v19 }
 0x138   :  { %v1636_v22 = vpop.eup %1635  ;;  %1131 = vst.msk [vmem:[%s2657_s3 + $0x90] sm:$0xff] %vm1112_vm1, %v1066_v26  ;;  %v877_v48 = vadd.f32 1.0, %v1634_v24  ;;  %1655 = vpow2.f32 %v1302_v62  ;;  %v1274_v24 = vmul.f32 -1.442695, %v2352_v9 }
 0x139   :  { %v1638_v17 = vpop.eup %1637  ;;  %1657 = vrcp.f32 %v906_v7  ;;  %v909_v38 = vadd.f32 1.0, %v1636_v22  ;;  %v1306_v22 = vmul.f32 -1.442695, %v2365_v3 }
 0x13a   :  { %v1640_v28 = vpop.eup %1639  ;;  %1659 = vrcp.f32 %v877_v48  ;;  %v876_v10 = vadd.f32 1.0, %v1638_v17  ;;  %v1277_v17 = vmul.f32 -1.442695, %v2386_v47 }
 0x13b   :  { %v1642_v39 = vpop.eup %1641  ;;  %1661 = vrcp.f32 %v909_v38  ;;  %v908_v42 = vadd.f32 1.0, %v1640_v28  ;;  %v1309_v28 = vmul.f32 -1.442695, %v2395_v45 }
 0x13c   :  { %v1644_v21 = vpop.eup %1643  ;;  %1663 = vrcp.f32 %v876_v10  ;;  %v879_v20 = vadd.f32 1.0, %v1642_v39  ;;  %v1276_v39 = vmul.f32 -1.442695, %v2398_v15 }
 0x13d   :  { %v1646_v49 = vpop.eup %1645  ;;  %1665 = vrcp.f32 %v908_v42  ;;  %v911_v63 = vadd.f32 1.0, %v1644_v21  ;;  %v1308_v21 = vmul.f32 -1.442695, %v2407_v51 }
 0x13e   :  { %v1648_v52 = vpop.eup %1647  ;;  %1667 = vrcp.f32 %v879_v20  ;;  %v878_v11 = vadd.f32 1.0, %v1646_v49 }
 0x13f   :  { %v1650_v0 = vpop.eup %1649  ;;  %1669 = vrcp.f32 %v911_v63  ;;  %v910_v53 = vadd.f32 1.0, %v1648_v52 }
 0x140   :  { %v1652_v18 = vpop.eup %1651  ;;  %1671 = vrcp.f32 %v878_v11  ;;  %v881_v55 = vadd.f32 1.0, %v1650_v0 }
 0x141   :  { %v1654_v31 = vpop.eup %1653  ;;  %1673 = vrcp.f32 %v910_v53  ;;  %v913_v46 = vadd.f32 1.0, %v1652_v18 }
 0x142   :  { %v1656_v27 = vpop.eup %1655  ;;  %1675 = vrcp.f32 %v881_v55  ;;  %v880_v40 = vadd.f32 1.0, %v1654_v31 }
 0x143   :  { %v1658_v6 = vpop.eup %1657  ;;  %1677 = vrcp.f32 %v913_v46  ;;  %v912_v1 = vadd.f32 1.0, %v1656_v27 }
 0x144   :  { %v1660_v5 = vpop.eup %1659  ;;  %v1098_v30 = vmul.f32 %v1658_v6, %v2207_v44  ;;  %1679 = vrcp.f32 %v880_v40  ;;  %v1275_v44 = vmul.f32 -1.442695, %v2340_v50 }
 0x145   :  { %v1662_v58 = vpop.eup %1661  ;;  %v1069_v13 = vmul.f32 %v1660_v5, %v2224_v54  ;;  %1681 = vrcp.f32 %v912_v1 }
 0x146   :  { %v1664_v62 = vpop.eup %1663  ;;  %1163 = vst.msk [vmem:[%s2657_s3 + $0x190] sm:$0xff] %vm1112_vm1, %v1098_v30  ;;  %v1101_v12 = vmul.f32 %v1662_v58, %v2231_v57  ;;  %1683 = vpow2.f32 %v1273_v32 }
 0x147   :  { %v1666_v37 = vpop.eup %1665  ;;  %1134 = vst.msk [vmem:[%s2657_s3 + $0xa8] sm:$0xff] %vm1112_vm1, %v1069_v13  ;;  %v1068_v54 = vmul.f32 %v1664_v62, %v2234_v60  ;;  %1685 = vpow2.f32 %v1305_v34 }
 0x148   :  { %v1668_v26 = vpop.eup %1667  ;;  %1166 = vst.msk [vmem:[%s2657_s3 + $0x1a8] sm:$0xff] %vm1112_vm1, %v1101_v12  ;;  %v1100_v57 = vmul.f32 %v1666_v37, %v2244_v2  ;;  %1687 = vpow2.f32 %v1272_v43 }
 0x149   :  { %v1670_v7 = vpop.eup %1669  ;;  %1133 = vst.msk [vmem:[%s2657_s3 + $0xa0] sm:$0xff] %vm1112_vm1, %v1068_v54  ;;  %v1071_v60 = vmul.f32 %v1668_v26, %v2258_v25  ;;  %1689 = vpow2.f32 %v1304_v59 }
 0x14a   :  { %v1672_v48 = vpop.eup %1671  ;;  %1165 = vst.msk [vmem:[%s2657_s3 + $0x1a0] sm:$0xff] %vm1112_vm1, %v1100_v57  ;;  %v1103_v2 = vmul.f32 %v1670_v7, %v2261_v36  ;;  %1691 = vpow2.f32 %v1275_v44 }
 0x14b   :  { %v1674_v38 = vpop.eup %1673  ;;  %1136 = vst.msk [vmem:[%s2657_s3 + $0xb8] sm:$0xff] %vm1112_vm1, %v1071_v60  ;;  %v1070_v25 = vmul.f32 %v1672_v48, %v2264_v41  ;;  %1693 = vpow2.f32 %v1307_v35 }
 0x14c   :  { %v1676_v10 = vpop.eup %1675  ;;  %1168 = vst.msk [vmem:[%s2657_s3 + $0x1b8] sm:$0xff] %vm1112_vm1, %v1103_v2  ;;  %v1102_v36 = vmul.f32 %v1674_v38, %v2271_v23  ;;  %1695 = vpow2.f32 %v1274_v24 }
 0x14d   :  { %v1678_v42 = vpop.eup %1677  ;;  %1135 = vst.msk [vmem:[%s2657_s3 + $0xb0] sm:$0xff] %vm1112_vm1, %v1070_v25  ;;  %v1073_v41 = vmul.f32 %v1676_v10, %v2284_v33  ;;  %1697 = vpow2.f32 %v1306_v22 }
 0x14e   :  { %v1680_v20 = vpop.eup %1679  ;;  %1167 = vst.msk [vmem:[%s2657_s3 + $0x1b0] sm:$0xff] %vm1112_vm1, %v1102_v36  ;;  %v1105_v23 = vmul.f32 %v1678_v42, %v2287_v61  ;;  %1699 = vpow2.f32 %v1277_v17 }
 0x14f   :  { %v1682_v49 = vpop.eup %1681  ;;  %1138 = vst.msk [vmem:[%s2657_s3 + $0xc8] sm:$0xff] %vm1112_vm1, %v1073_v41  ;;  %v1072_v33 = vmul.f32 %v1680_v20, %v2290_v4  ;;  %1701 = vpow2.f32 %v1309_v28 }
 0x150   :  { %v1684_v63 = vpop.eup %1683  ;;  %1170 = vst.msk [vmem:[%s2657_s3 + $0x1c8] sm:$0xff] %vm1112_vm1, %v1105_v23  ;;  %v1104_v52 = vmul.f32 %v1682_v49, %v2296_v14  ;;  %1703 = vpow2.f32 %v1276_v39 }
 0x151   :  { %v1686_v61 = vpop.eup %1685  ;;  %1137 = vst.msk [vmem:[%s2657_s3 + $0xc0] sm:$0xff] %vm1112_vm1, %v1072_v33  ;;  %v883_v11 = vadd.f32 1.0, %v1684_v63  ;;  %1705 = vpow2.f32 %v1308_v21 }
 0x152   :  { %v1688_v0 = vpop.eup %1687  ;;  %1169 = vst.msk [vmem:[%s2657_s3 + $0x1c0] sm:$0xff] %vm1112_vm1, %v1104_v52  ;;  %v915_v4 = vadd.f32 1.0, %v1686_v61 }
 0x153   :  { %v1690_v53 = vpop.eup %1689  ;;  %1707 = vrcp.f32 %v883_v11  ;;  %v882_v18 = vadd.f32 1.0, %v1688_v0 }
 0x154   :  { %v1692_v14 = vpop.eup %1691  ;;  %1709 = vrcp.f32 %v915_v4  ;;  %v914_v55 = vadd.f32 1.0, %v1690_v53 }
 0x155   :  { %v1694_v31 = vpop.eup %1693  ;;  %1711 = vrcp.f32 %v882_v18  ;;  %v885_v46 = vadd.f32 1.0, %v1692_v14 }
 0x156   :  { %v1696_v27 = vpop.eup %1695  ;;  %1713 = vrcp.f32 %v914_v55  ;;  %v917_v40 = vadd.f32 1.0, %v1694_v31 }
 0x157   :  { %v1698_v32 = vpop.eup %1697  ;;  %1715 = vrcp.f32 %v885_v46  ;;  %v884_v6 = vadd.f32 1.0, %v1696_v27 }
 0x158   :  { %v1700_v1 = vpop.eup %1699  ;;  %1717 = vrcp.f32 %v917_v40  ;;  %v916_v34 = vadd.f32 1.0, %v1698_v32 }
 0x159   :  { %v1702_v5 = vpop.eup %1701  ;;  %1719 = vrcp.f32 %v884_v6  ;;  %v887_v30 = vadd.f32 1.0, %v1700_v1 }
 0x15a   :  { %v1704_v43 = vpop.eup %1703  ;;  %1721 = vrcp.f32 %v916_v34  ;;  %v919_v58 = vadd.f32 1.0, %v1702_v5 }
 0x15b   :  { %v1706_v13 = vpop.eup %1705  ;;  %1723 = vrcp.f32 %v887_v30  ;;  %v886_v59 = vadd.f32 1.0, %v1704_v43 }
 0x15c   :  { %1725 = vrcp.f32 %v919_v58  ;;  %v918_v62 = vadd.f32 1.0, %v1706_v13 }
 0x15d   :  { %v1708_v12 = vpop.eup %1707  ;;  %1727 = vrcp.f32 %v886_v59 }
 0x15e   :  { %v1710_v44 = vpop.eup %1709  ;;  %v1075_v37 = vmul.f32 %v1708_v12, %v2310_v29  ;;  %1729 = vrcp.f32 %v918_v62 }
 0x15f   :  { %v1712_v54 = vpop.eup %1711  ;;  %v1107_v35 = vmul.f32 %v1710_v44, %v2313_v56 }
 0x160   :  { %v1714_v26 = vpop.eup %1713  ;;  %1140 = vst.msk [vmem:[%s2657_s3 + $0xd8] sm:$0xff] %vm1112_vm1, %v1075_v37  ;;  %v1074_v57 = vmul.f32 %v1712_v54, %v2316_v8 }
 0x161   :  { %v1716_v24 = vpop.eup %1715  ;;  %1172 = vst.msk [vmem:[%s2657_s3 + $0x1d8] sm:$0xff] %vm1112_vm1, %v1107_v35  ;;  %v1106_v29 = vmul.f32 %v1714_v26, %v2324_v16 }
 0x162   :  { %v1718_v7 = vpop.eup %1717  ;;  %1139 = vst.msk [vmem:[%s2657_s3 + $0xd0] sm:$0xff] %vm1112_vm1, %v1074_v57  ;;  %v1077_v56 = vmul.f32 %v1716_v24, %v2340_v50 }
 0x163   :  { %v1720_v60 = vpop.eup %1719  ;;  %1171 = vst.msk [vmem:[%s2657_s3 + $0x1d0] sm:$0xff] %vm1112_vm1, %v1106_v29  ;;  %v1109_v8 = vmul.f32 %v1718_v7, %v2349_v19 }
 0x164   :  { %v1722_v22 = vpop.eup %1721  ;;  %1142 = vst.msk [vmem:[%s2657_s3 + $0xe8] sm:$0xff] %vm1112_vm1, %v1077_v56  ;;  %v1076_v16 = vmul.f32 %v1720_v60, %v2352_v9 }
 0x165   :  { %v1724_v48 = vpop.eup %1723  ;;  %1174 = vst.msk [vmem:[%s2657_s3 + $0x1e8] sm:$0xff] %vm1112_vm1, %v1109_v8  ;;  %v1108_v50 = vmul.f32 %v1722_v22, %v2365_v3 }
 0x166   :  { %v1726_v2 = vpop.eup %1725  ;;  %1141 = vst.msk [vmem:[%s2657_s3 + $0xe0] sm:$0xff] %vm1112_vm1, %v1076_v16  ;;  %v1079_v19 = vmul.f32 %v1724_v48, %v2386_v47 }
 0x167   :  { %v1728_v17 = vpop.eup %1727  ;;  %1173 = vst.msk [vmem:[%s2657_s3 + $0x1e0] sm:$0xff] %vm1112_vm1, %v1108_v50  ;;  %v1111_v9 = vmul.f32 %v1726_v2, %v2395_v45 }
 0x168   :  { %v1730_v38 = vpop.eup %1729  ;;  %1144 = vst.msk [vmem:[%s2657_s3 + $0xf8] sm:$0xff] %vm1112_vm1, %v1079_v19  ;;  %v1078_v3 = vmul.f32 %v1728_v17, %v2398_v15 }
 0x169   :  { %1176 = vst.msk [vmem:[%s2657_s3 + $0x1f8] sm:$0xff] %vm1112_vm1, %v1111_v9  ;;  %v1110_v47 = vmul.f32 %v1730_v38, %v2407_v51 }
 0x16a   :  { %1143 = vst.msk [vmem:[%s2657_s3 + $0xf0] sm:$0xff] %vm1112_vm1, %v1078_v3 }
 0x16b   :  { %1175 = vst.msk [vmem:[%s2657_s3 + $0x1f0] sm:$0xff] %vm1112_vm1, %v1110_v47 }

// kernel: mbconv_forward.5
= control target key start
LH: loop header
LB: loop body
LE: loop exit
PB: predicated region body
PF: predicated region fallthrough
CT: control target
= control target key end

     0   :  { %s1545_s18 = smov 0   ;;  %s1547_s19 = smov 0   ;;  %s1993_s0 = inlined_call_operand.vmem [shape: f32[2,256,32], index: 0, kind: input, shape index: {}]   ;;  %s1994_s1 = inlined_call_operand.vmem [shape: f32[32,8], index: 1, kind: input, shape index: {}]   ;;  %s1995_s2 = inlined_call_operand.vmem [shape: f32[1,8], index: 2, kind: input, shape index: {}]   ;;  %s1996_s3 = inlined_call_operand.vmem [shape: f32[2,1,32], index: 3, kind: input, shape index: {}]   ;;  %s1997_s4 = inlined_call_operand.vmem [shape: f32[2,256,8], index: 4, kind: input, shape index: {}]   ;;  %s1998_s5 = inlined_call_operand.vmem [shape: f32[2,256,8], index: 5, kind: output, shape index: {}]  }
   0x1   :  { %s1549_s20 = smov 0  }
   0x2 LB: > { %s27_s21 = sadd.s32 1, %s1509_s19  ;;  %p1157_p0 = scmp.ge.s32.totalorder %s1513_s20, 1  ;;  %s1513_s20 = sphi %s1549_s20, %s15_s20   ;;  %s1509_s19 = sphi %s1547_s19, %s2000_s19   ;;  %s1505_s18 = sphi %s1545_s18, %s1999_s18  }
   0x3   : > { %p29_p1 = scmp.ge.s32.totalorder %s27_s21, 2  ;;  %p233_p2 = scmp.lt.s32.totalorder %s1513_s20, 3 }
   0x5   : > { %s2002_s21 = smov (%p29_p1, %s27_s21), 0  ;;  %p234_p3 = pnand %p1157_p0, %p233_p2 }
   0x6   : > { %v385_v0 = vld [vmem:[%s1994_s1] sm:$0xff] (!%p234_p3)  ;;  %v386_v1 = vld [vmem:[%s1994_s1 + $0x8] sm:$0xff] (!%p234_p3)  ;;  %v387_v2 = vld [vmem:[%s1994_s1 + $0x10] sm:$0xff] (!%p234_p3)  ;;  %p282_p4 = scmp.lt.s32.totalorder (!%p234_p3), %s1505_s18, 1  ;;  %vm396_vm0 = vcmask (!%p234_p3), 261120   ;;  %vm1006_vm1 = vcmask (!%p234_p3), 64512  }
   0x7   : > { %237 = sbr.rel (%p234_p3) target bundleno = 323 (0x143), region = 40  ;;  %v1327_v3 = vpack.c.bf16 (!%p234_p3), %v386_v1, %v385_v0  ;;  %v388_v4 = vld [vmem:[%s1994_s1 + $0x18] sm:$0xff] (!%p234_p3) }
   0x8   : > { %v1331_v5 = vpack.c.bf16 (!%p234_p3), %v388_v4, %v387_v2 }
   0x9   : > { %1328 = vmatprep.subr.bf16.mxu0 (!%p234_p3), %v1327_v3  ;;  %1335 = vmatprep.subr.bf16.mxu1 (!%p234_p3), %v1327_v3 }
   0xa   : > { %1330 = vmatpush3.bf16.msra.mxu0 (!%p234_p3), %v1327_v3  ;;  %1337 = vmatpush3.bf16.msra.mxu1 (!%p234_p3), %v1327_v3 }
   0xb   : > { %1332 = vmatprep.subr.bf16.mxu0 (!%p234_p3), %v1331_v5  ;;  %1336 = vmatprep.subr.bf16.mxu1 (!%p234_p3), %v1331_v5 }
   0xe   : > { %s2004_s18 = smov (!%p282_p4, %s1505_s18), 1  ;;  %1334 = vmatpush3.bf16.msra.mxu0 %v1331_v5  ;;  %1338 = vmatpush3.bf16.msra.mxu1 %v1331_v5 }
   0xf   : > { %s1575_s30 = sshll.u32 %s2004_s18, 8  ;;  %s293_s8 = scalar_lea.vmem %s1996_s3, %s2004_s18 }
  0x10   : > { %s1584_s11 = scalar_lea.vmem %s1993_s0, %s1575_s30  ;;  %v1586_v6 = vld [vmem:[%s293_s8] ss:$0 sm:$0xff]  ;;  %s1756_s16 = scalar_lea.vmem %s1997_s4, %s1575_s30 }
  0x11   : > { %v314_v7 = vld [vmem:[%s1584_s11] sm:$0xff]  ;;  %v315_v9 = vld [vmem:[%s1584_s11 + $0x8] sm:$0xff]  ;;  %v316_v14 = vld [vmem:[%s1584_s11 + $0x10] sm:$0xff]  ;;  %s1803_s22 = scalar_lea.vmem %s1998_s5, %s1575_s30 }
  0x12   : > { %v330_v8 = vld [vmem:[%s1584_s11 + $0x80] sm:$0xff]  ;;  %v353_v10 = vmul.f32 %v1586_v6, %v314_v7  ;;  %v354_v12 = vmul.f32 %v1586_v6, %v315_v9  ;;  %v331_v13 = vld [vmem:[%s1584_s11 + $0x88] sm:$0xff]  ;;  %v332_v15 = vld [vmem:[%s1584_s11 + $0x90] sm:$0xff]  ;;  %v355_v17 = vmul.f32 %v1586_v6, %v316_v14 }
  0x13   : > { %v369_v11 = vmul.f32 %v1586_v6, %v330_v8  ;;  %v370_v16 = vmul.f32 %v1586_v6, %v331_v13  ;;  %v371_v18 = vmul.f32 %v1586_v6, %v332_v15  ;;  %v317_v19 = vld [vmem:[%s1584_s11 + $0x18] sm:$0xff]  ;;  %v318_v21 = vld [vmem:[%s1584_s11 + $0x20] sm:$0xff]  ;;  %v319_v27 = vld [vmem:[%s1584_s11 + $0x28] sm:$0xff] }
  0x14   : > { %v333_v20 = vld [vmem:[%s1584_s11 + $0x98] sm:$0xff]  ;;  %1279 = vmatprep.mubr.msk.f32.mxu0 %vm396_vm0, %v353_v10  ;;  %v334_v22 = vld [vmem:[%s1584_s11 + $0xa0] sm:$0xff]  ;;  %v356_v23 = vmul.f32 %v1586_v6, %v317_v19  ;;  %v357_v25 = vmul.f32 %v1586_v6, %v318_v21  ;;  %v335_v28 = vld [vmem:[%s1584_s11 + $0xa8] sm:$0xff]  ;;  %v358_v31 = vmul.f32 %v1586_v6, %v319_v27 }
  0x15   : > { %1303 = vmatprep.mubr.msk.f32.mxu1 %vm396_vm0, %v369_v11  ;;  %1280 = vmatmul.mubr.msk.f32.vlgmr.msra.gmra.mrb[0].mxu0 %vm396_vm0, %v354_v12  ;;  %v372_v24 = vmul.f32 %v1586_v6, %v333_v20  ;;  %v373_v26 = vmul.f32 %v1586_v6, %v334_v22  ;;  %v320_v29 = vld [vmem:[%s1584_s11 + $0x30] sm:$0xff]  ;;  %v374_v32 = vmul.f32 %v1586_v6, %v335_v28  ;;  %v321_v35 = vld [vmem:[%s1584_s11 + $0x38] sm:$0xff]  ;;  %v322_v37 = vld [vmem:[%s1584_s11 + $0x40] sm:$0xff] }
  0x16   : > { %1304 = vmatmul.mubr.msk.f32.vlgmr.msra.gmra.mrb[0].mxu1 %vm396_vm0, %v370_v16  ;;  %1282 = vmatprep.mubr.msk.f32.mxu0 %vm396_vm0, %v355_v17  ;;  %v336_v30 = vld [vmem:[%s1584_s11 + $0xb0] sm:$0xff]  ;;  %v359_v33 = vmul.f32 %v1586_v6, %v320_v29  ;;  %v337_v36 = vld [vmem:[%s1584_s11 + $0xb8] sm:$0xff]  ;;  %v338_v38 = vld [vmem:[%s1584_s11 + $0xc0] sm:$0xff]  ;;  %v360_v39 = vmul.f32 %v1586_v6, %v321_v35  ;;  %v361_v41 = vmul.f32 %v1586_v6, %v322_v37 }
  0x17   : > { %1306 = vmatprep.mubr.msk.f32.mxu1 %vm396_vm0, %v371_v18  ;;  %v375_v34 = vmul.f32 %v1586_v6, %v336_v30  ;;  %v376_v40 = vmul.f32 %v1586_v6, %v337_v36  ;;  %v377_v42 = vmul.f32 %v1586_v6, %v338_v38  ;;  %v323_v43 = vld [vmem:[%s1584_s11 + $0x48] sm:$0xff]  ;;  %v324_v45 = vld [vmem:[%s1584_s11 + $0x50] sm:$0xff]  ;;  %v325_v51 = vld [vmem:[%s1584_s11 + $0x58] sm:$0xff] }
  0x18   : > { %v339_v44 = vld [vmem:[%s1584_s11 + $0xc8] sm:$0xff]  ;;  %v340_v46 = vld [vmem:[%s1584_s11 + $0xd0] sm:$0xff]  ;;  %v362_v47 = vmul.f32 %v1586_v6, %v323_v43  ;;  %v363_v49 = vmul.f32 %v1586_v6, %v324_v45  ;;  %v341_v52 = vld [vmem:[%s1584_s11 + $0xd8] sm:$0xff]  ;;  %v364_v55 = vmul.f32 %v1586_v6, %v325_v51 }
  0x19   : > { %1283 = vmatmul.mubr.msk.f32.gmra.mrb[2].mxu0 %vm396_vm0, %v356_v23  ;;  %v378_v48 = vmul.f32 %v1586_v6, %v339_v44  ;;  %v379_v50 = vmul.f32 %v1586_v6, %v340_v46  ;;  %v326_v53 = vld [vmem:[%s1584_s11 + $0x60] sm:$0xff]  ;;  %v380_v56 = vmul.f32 %v1586_v6, %v341_v52  ;;  %v327_v59 = vld [vmem:[%s1584_s11 + $0x68] sm:$0xff]  ;;  %v328_v61 = vld [vmem:[%s1584_s11 + $0x70] sm:$0xff] }
  0x1a   : > { %1307 = vmatmul.mubr.msk.f32.gmra.mrb[2].mxu1 %vm396_vm0, %v372_v24  ;;  %1285 = vmatprep.mubr.msk.f32.mxu0 %vm396_vm0, %v357_v25  ;;  %v342_v54 = vld [vmem:[%s1584_s11 + $0xe0] sm:$0xff]  ;;  %v365_v57 = vmul.f32 %v1586_v6, %v326_v53  ;;  %v343_v60 = vld [vmem:[%s1584_s11 + $0xe8] sm:$0xff]  ;;  %v344_v62 = vld [vmem:[%s1584_s11 + $0xf0] sm:$0xff]  ;;  %v366_v63 = vmul.f32 %v1586_v6, %v327_v59  ;;  %v367_v1 = vmul.f32 %v1586_v6, %v328_v61 }
  0x1b   : > { %1309 = vmatprep.mubr.msk.f32.mxu1 %vm396_vm0, %v373_v26  ;;  %v381_v58 = vmul.f32 %v1586_v6, %v342_v54  ;;  %v382_v0 = vmul.f32 %v1586_v6, %v343_v60  ;;  %v383_v2 = vmul.f32 %v1586_v6, %v344_v62  ;;  %v329_v3 = vld [vmem:[%s1584_s11 + $0x78] sm:$0xff]  ;;  %v1687_v8 = vld [vmem:[%s1995_s2] ss:$0 sm:$0xff] }
  0x1c   : > { %v345_v4 = vld [vmem:[%s1584_s11 + $0xf8] sm:$0xff]  ;;  %v368_v5 = vmul.f32 %v1586_v6, %v329_v3 }
  0x1d   : > { %1286 = vmatmul.mubr.msk.f32.gmra.mrb[4].mxu0 %vm396_vm0, %v358_v31  ;;  %v384_v7 = vmul.f32 %v1586_v6, %v345_v4 }
  0x1e   : > { %1310 = vmatmul.mubr.msk.f32.gmra.mrb[4].mxu1 %vm396_vm0, %v374_v32  ;;  %1288 = vmatprep.mubr.msk.f32.mxu0 %vm396_vm0, %v359_v33 }
  0x1f   : > { %1312 = vmatprep.mubr.msk.f32.mxu1 %vm396_vm0, %v375_v34 }
  0x21   : > { %1289 = vmatmul.mubr.msk.f32.gmra.mrb[6].mxu0 %vm396_vm0, %v360_v39 }
  0x22   : > { %1313 = vmatmul.mubr.msk.f32.gmra.mrb[6].mxu1 %vm396_vm0, %v376_v40  ;;  %1291 = vmatprep.mubr.msk.f32.mxu0 %vm396_vm0, %v361_v41 }
  0x23   : > { %1315 = vmatprep.mubr.msk.f32.mxu1 %vm396_vm0, %v377_v42 }
  0x25   : > { %1292 = vmatmul.mubr.msk.f32.gmra.mrb[8].mxu0 %vm396_vm0, %v362_v47 }
  0x26   : > { %1316 = vmatmul.mubr.msk.f32.gmra.mrb[8].mxu1 %vm396_vm0, %v378_v48  ;;  %1294 = vmatprep.mubr.msk.f32.mxu0 %vm396_vm0, %v363_v49 }
  0x27   : > { %1318 = vmatprep.mubr.msk.f32.mxu1 %vm396_vm0, %v379_v50 }
  0x29   : > { %1295 = vmatmul.mubr.msk.f32.gmra.mrb[10].mxu0 %vm396_vm0, %v364_v55 }
  0x2a   : > { %1319 = vmatmul.mubr.msk.f32.gmra.mrb[10].mxu1 %vm396_vm0, %v380_v56  ;;  %1297 = vmatprep.mubr.msk.f32.mxu0 %vm396_vm0, %v365_v57 }
  0x2b   : > { %1321 = vmatprep.mubr.msk.f32.mxu1 %vm396_vm0, %v381_v58 }
  0x2d   : > { %1298 = vmatmul.mubr.msk.f32.gmra.mrb[12].mxu0 %vm396_vm0, %v366_v63 }
  0x2e   : > { %1322 = vmatmul.mubr.msk.f32.gmra.mrb[12].mxu1 %vm396_vm0, %v382_v0  ;;  %1300 = vmatprep.mubr.msk.f32.mxu0 %vm396_vm0, %v367_v1 }
  0x2f   : > { %1324 = vmatprep.mubr.msk.f32.mxu1 %vm396_vm0, %v383_v2 }
  0x31   : > { %1301 = vmatmul.mubr.msk.f32.gmra.mrb[14].mxu0 %vm396_vm0, %v368_v5 }
  0x32   : > { %1325 = vmatmul.mubr.msk.f32.gmra.mrb[14].mxu1 %vm396_vm0, %v384_v7 }
  0xe8   : > { %v1281_v9 = vpop.f32.mrb[0].mxu0 }
  0xe9   : > { %v1305_v10 = vpop.f32.mrb[0].mxu1  ;;  %v1690_v11 = vadd.f32 %v1281_v9, %v1687_v8  ;;  %v559_v12 = vpop.f32.mrb[1].mxu0 }
  0xea   : > { %v1693_v6 = vadd.f32 %v1305_v10, %v1687_v8  ;;  %v639_v13 = vpop.f32.mrb[1].mxu1  ;;  %v1696_v14 = vadd.f32 %v1687_v8, %v559_v12 }
  0xeb   : > { %v1699_v15 = vadd.f32 %v1687_v8, %v639_v13  ;;  %v1199_v16 = vmul.f32 -1.442695, %v1690_v11 }
  0xec   : > { %v1215_v17 = vmul.f32 -1.442695, %v1693_v6  ;;  %v1198_v18 = vmul.f32 -1.442695, %v1696_v14  ;;  %v1284_v20 = vpop.f32.mrb[2].mxu0 }
  0xed   : > { %v1214_v19 = vmul.f32 -1.442695, %v1699_v15  ;;  %v1308_v21 = vpop.f32.mrb[2].mxu1  ;;  %1363 = vpow2.f32 %v1199_v16  ;;  %v1706_v22 = vadd.f32 %v1284_v20, %v1687_v8  ;;  %v569_v24 = vpop.f32.mrb[3].mxu0 }
  0xee   : > { %v1709_v23 = vadd.f32 %v1308_v21, %v1687_v8  ;;  %v649_v25 = vpop.f32.mrb[3].mxu1  ;;  %1365 = vpow2.f32 %v1215_v17  ;;  %v1712_v26 = vadd.f32 %v1687_v8, %v569_v24 }
  0xef   : > { %v1715_v27 = vadd.f32 %v1687_v8, %v649_v25  ;;  %1367 = vpow2.f32 %v1198_v18  ;;  %v1201_v28 = vmul.f32 -1.442695, %v1706_v22 }
  0xf0   : > { %v1217_v29 = vmul.f32 -1.442695, %v1709_v23  ;;  %1369 = vpow2.f32 %v1214_v19  ;;  %v1200_v30 = vmul.f32 -1.442695, %v1712_v26  ;;  %v1287_v32 = vpop.f32.mrb[4].mxu0 }
  0xf1   : > { %v1216_v31 = vmul.f32 -1.442695, %v1715_v27  ;;  %v1311_v33 = vpop.f32.mrb[4].mxu1  ;;  %1371 = vpow2.f32 %v1201_v28  ;;  %v1722_v34 = vadd.f32 %v1287_v32, %v1687_v8  ;;  %v579_v36 = vpop.f32.mrb[5].mxu0 }
  0xf2   : > { %v1725_v35 = vadd.f32 %v1311_v33, %v1687_v8  ;;  %v659_v37 = vpop.f32.mrb[5].mxu1  ;;  %1373 = vpow2.f32 %v1217_v29  ;;  %v1728_v38 = vadd.f32 %v1687_v8, %v579_v36 }
  0xf3   : > { %v1731_v39 = vadd.f32 %v1687_v8, %v659_v37  ;;  %1375 = vpow2.f32 %v1200_v30  ;;  %v1203_v40 = vmul.f32 -1.442695, %v1722_v34 }
  0xf4   : > { %v1219_v41 = vmul.f32 -1.442695, %v1725_v35  ;;  %1377 = vpow2.f32 %v1216_v31  ;;  %v1202_v42 = vmul.f32 -1.442695, %v1728_v38  ;;  %v1290_v44 = vpop.f32.mrb[6].mxu0 }
  0xf5   : > { %v1218_v43 = vmul.f32 -1.442695, %v1731_v39  ;;  %v1314_v45 = vpop.f32.mrb[6].mxu1  ;;  %1379 = vpow2.f32 %v1203_v40  ;;  %v1738_v46 = vadd.f32 %v1290_v44, %v1687_v8  ;;  %v589_v47 = vpop.f32.mrb[7].mxu0  ;;  %v943_v44 = vld [vmem:[%s1756_s16 + $0x8] sm:$0xff] }
  0xf6   : > { %v669_v48 = vpop.f32.mrb[7].mxu1  ;;  %1381 = vpow2.f32 %v1219_v41  ;;  %v1742_v4 = vadd.f32 %v1314_v45, %v1687_v8  ;;  %v1745_v12 = vadd.f32 %v1687_v8, %v589_v47 }
  0xf7   : > { %v1364_v49 = vpop.eup %1363  ;;  %1383 = vpow2.f32 %v1202_v42  ;;  %v1205_v50 = vmul.f32 -1.442695, %v1738_v46  ;;  %v1750_v18 = vadd.f32 %v1687_v8, %v669_v48 }
  0xf8   : > { %v1366_v51 = vpop.eup %1365  ;;  %v815_v52 = vadd.f32 1.0, %v1364_v49  ;;  %1385 = vpow2.f32 %v1218_v43  ;;  %v1293_v53 = vpop.f32.mrb[8].mxu0  ;;  %v1221_v30 = vmul.f32 -1.442695, %v1742_v4  ;;  %v1204_v40 = vmul.f32 -1.442695, %v1745_v12 }
  0xf9   : > { %v1368_v54 = vpop.eup %1367  ;;  %v831_v55 = vadd.f32 1.0, %v1366_v51  ;;  %1387 = vpow2.f32 %v1205_v50  ;;  %v1317_v56 = vpop.f32.mrb[8].mxu1  ;;  %v1759_v21 = vadd.f32 %v1293_v53, %v1687_v8  ;;  %v1220_v47 = vmul.f32 -1.442695, %v1750_v18 }
  0xfa   : > { %v599_v57 = vpop.f32.mrb[9].mxu0  ;;  %v1370_v58 = vpop.eup %1369  ;;  %1389 = vrcp.f32 %v815_v52  ;;  %v814_v59 = vadd.f32 1.0, %v1368_v54  ;;  %v1762_v24 = vadd.f32 %v1317_v56, %v1687_v8  ;;  %v959_v56 = vld [vmem:[%s1756_s16 + $0x88] sm:$0xff] }
  0xfb   : > { %v679_v60 = vpop.f32.mrb[9].mxu1  ;;  %v1372_v61 = vpop.eup %1371  ;;  %1391 = vrcp.f32 %v831_v55  ;;  %v830_v62 = vadd.f32 1.0, %v1370_v58  ;;  %v1768_v31 = vadd.f32 %v1687_v8, %v599_v57  ;;  %v1207_v51 = vmul.f32 -1.442695, %v1759_v21 }
  0xfc   : > { %v1374_v63 = vpop.eup %1373  ;;  %1393 = vrcp.f32 %v814_v59  ;;  %v817_v0 = vadd.f32 1.0, %v1372_v61  ;;  %v1296_v1 = vpop.f32.mrb[10].mxu0  ;;  %v1776_v41 = vadd.f32 %v1687_v8, %v679_v60  ;;  %v1223_v52 = vmul.f32 -1.442695, %v1762_v24 }
  0xfd   : > { %v1376_v2 = vpop.eup %1375  ;;  %1395 = vrcp.f32 %v830_v62  ;;  %v833_v3 = vadd.f32 1.0, %v1374_v63  ;;  %v1320_v5 = vpop.f32.mrb[10].mxu1  ;;  %v1783_v48 = vadd.f32 %v1296_v1, %v1687_v8  ;;  %v1206_v57 = vmul.f32 -1.442695, %v1768_v31  ;;  %v942_v62 = vld [vmem:[%s1756_s16] sm:$0xff] }
  0xfe   : > { %v609_v7 = vpop.f32.mrb[11].mxu0  ;;  %v1378_v9 = vpop.eup %1377  ;;  %1397 = vrcp.f32 %v817_v0  ;;  %v816_v10 = vadd.f32 1.0, %v1376_v2  ;;  %v1793_v58 = vadd.f32 %v1320_v5, %v1687_v8  ;;  %v1222_v63 = vmul.f32 -1.442695, %v1776_v41 }
  0xff   : > { %v1747_v13 = vpop.f32.mrb[11].mxu1  ;;  %v1380_v16 = vpop.eup %1379  ;;  %1399 = vrcp.f32 %v833_v3  ;;  %v832_v17 = vadd.f32 1.0, %v1378_v9  ;;  %v1809_v0 = vadd.f32 %v1687_v8, %v609_v7  ;;  %v958_v9 = vld [vmem:[%s1756_s16 + $0x80] sm:$0xff] }
 0x100   : > { %v1382_v19 = vpop.eup %1381  ;;  %1401 = vrcp.f32 %v816_v10  ;;  %v819_v20 = vadd.f32 1.0, %v1380_v16  ;;  %v1764_v25 = vpop.f32.mrb[12].mxu0  ;;  %v1820_v7 = vadd.f32 %v1687_v8, %v1747_v13 }
 0x101   : > { %v1384_v28 = vpop.eup %1383  ;;  %1403 = vrcp.f32 %v832_v17  ;;  %v835_v29 = vadd.f32 1.0, %v1382_v19  ;;  %v1770_v32 = vpop.f32.mrb[12].mxu1  ;;  %v945_v19 = vld [vmem:[%s1756_s16 + $0x18] sm:$0xff] }
 0x102   : > { %v1772_v33 = vpop.f32.mrb[13].mxu0  ;;  %v1386_v36 = vpop.eup %1385  ;;  %1405 = vrcp.f32 %v819_v20  ;;  %v818_v37 = vadd.f32 1.0, %v1384_v28 }
 0x103   : > { %v1778_v42 = vpop.f32.mrb[13].mxu1  ;;  %v1388_v43 = vpop.eup %1387  ;;  %1407 = vrcp.f32 %v835_v29  ;;  %v834_v45 = vadd.f32 1.0, %v1386_v36  ;;  %v961_v29 = vld [vmem:[%s1756_s16 + $0x98] sm:$0xff] }
 0x104   : > { %v1390_v49 = vpop.eup %1389  ;;  %1409 = vrcp.f32 %v818_v37  ;;  %v821_v50 = vadd.f32 1.0, %v1388_v43  ;;  %v1787_v53 = vpop.f32.mrb[14].mxu0  ;;  %v944_v37 = vld [vmem:[%s1756_s16 + $0x10] sm:$0xff] }
 0x105   : > { %v1392_v54 = vpop.eup %1391  ;;  %v911_v55 = vmul.f32 %v1390_v49, %v1690_v11  ;;  %1411 = vrcp.f32 %v834_v45  ;;  %v1795_v59 = vpop.f32.mrb[14].mxu1  ;;  %v960_v45 = vld [vmem:[%s1756_s16 + $0x90] sm:$0xff] }
 0x106   : > { %v1797_v60 = vpop.f32.mrb[15].mxu0  ;;  %v1394_v61 = vpop.eup %1393  ;;  %v927_v11 = vmul.f32 %v1392_v54, %v1693_v6  ;;  %1413 = vrcp.f32 %v821_v50  ;;  %v1209_v6 = vmul.f32 -1.442695, %v1783_v48  ;;  %v947_v50 = vld [vmem:[%s1756_s16 + $0x28] sm:$0xff] }
 0x107   : > { %v1811_v1 = vpop.f32.mrb[15].mxu1  ;;  %v1396_v2 = vpop.eup %1395  ;;  %v975_v3 = vadd.f32 %v943_v44, %v911_v55  ;;  %v910_v5 = vmul.f32 %v1394_v61, %v1696_v14  ;;  %1415 = vpow2.f32 %v1221_v30  ;;  %v1225_v30 = vmul.f32 -1.442695, %v1793_v58  ;;  %v963_v54 = vld [vmem:[%s1756_s16 + $0xa8] sm:$0xff]  ;;  %v946_v61 = vld [vmem:[%s1756_s16 + $0x20] sm:$0xff] }
 0x108   : > { %v1398_v10 = vpop.eup %1397  ;;  %v991_v16 = vadd.f32 %v959_v56, %v927_v11  ;;  %v926_v17 = vmul.f32 %v1396_v2, %v1699_v15  ;;  %1417 = vpow2.f32 %v1204_v40  ;;  %v1833_v40 = vadd.f32 %v1764_v25, %v1687_v8  ;;  %v962_v2 = vld [vmem:[%s1756_s16 + $0xa0] sm:$0xff] }
 0x109   : > { %v1400_v20 = vpop.eup %1399  ;;  %1008 = vst.msk [vmem:[%s1803_s22 + $0x8] sm:$0xff] %vm1006_vm1, %v975_v3  ;;  %v974_v14 = vadd.f32 %v942_v62, %v910_v5  ;;  %v913_v28 = vmul.f32 %v1398_v10, %v1706_v22  ;;  %1419 = vpow2.f32 %v1220_v47  ;;  %v1841_v47 = vadd.f32 %v1770_v32, %v1687_v8 }
 0x10a   : > { %v1402_v15 = vpop.eup %1401  ;;  %1024 = vst.msk [vmem:[%s1803_s22 + $0x88] sm:$0xff] %vm1006_vm1, %v991_v16  ;;  %v990_v36 = vadd.f32 %v958_v9, %v926_v17  ;;  %v929_v13 = vmul.f32 %v1400_v20, %v1709_v23  ;;  %1421 = vpow2.f32 %v1207_v51  ;;  %v1208_v51 = vmul.f32 -1.442695, %v1809_v0 }
 0x10b   : > { %v1404_v22 = vpop.eup %1403  ;;  %1007 = vst.msk [vmem:[%s1803_s22] sm:$0xff] %vm1006_vm1, %v974_v14  ;;  %v977_v43 = vadd.f32 %v945_v19, %v913_v28  ;;  %v912_v44 = vmul.f32 %v1402_v15, %v1712_v26  ;;  %1423 = vpow2.f32 %v1223_v52  ;;  %v1224_v55 = vmul.f32 -1.442695, %v1820_v7 }
 0x10c   : > { %v1406_v23 = vpop.eup %1405  ;;  %1023 = vst.msk [vmem:[%s1803_s22 + $0x80] sm:$0xff] %vm1006_vm1, %v990_v36  ;;  %v993_v25 = vadd.f32 %v961_v29, %v929_v13  ;;  %v928_v49 = vmul.f32 %v1404_v22, %v1715_v27  ;;  %1425 = vpow2.f32 %v1206_v57  ;;  %v1211_v11 = vmul.f32 -1.442695, %v1833_v40 }
 0x10d   : > { %v1408_v26 = vpop.eup %1407  ;;  %1010 = vst.msk [vmem:[%s1803_s22 + $0x18] sm:$0xff] %vm1006_vm1, %v977_v43  ;;  %v976_v52 = vadd.f32 %v944_v37, %v912_v44  ;;  %v915_v32 = vmul.f32 %v1406_v23, %v1722_v34  ;;  %1427 = vpow2.f32 %v1222_v63  ;;  %v1227_v3 = vmul.f32 -1.442695, %v1841_v47 }
 0x10e   : > { %v1410_v56 = vpop.eup %1409  ;;  %1026 = vst.msk [vmem:[%s1803_s22 + $0x98] sm:$0xff] %vm1006_vm1, %v993_v25  ;;  %v992_v27 = vadd.f32 %v960_v45, %v928_v49  ;;  %v931_v57 = vmul.f32 %v1408_v26, %v1725_v35  ;;  %1429 = vpow2.f32 %v1209_v6  ;;  %v949_v6 = vld [vmem:[%s1756_s16 + $0x38] sm:$0xff]  ;;  %v1880_v25 = vadd.f32 %v1687_v8, %v1772_v33 }
 0x10f   : > { %v1412_v62 = vpop.eup %1411  ;;  %1009 = vst.msk [vmem:[%s1803_s22 + $0x10] sm:$0xff] %vm1006_vm1, %v976_v52  ;;  %v979_v34 = vadd.f32 %v947_v50, %v915_v32  ;;  %v914_v63 = vmul.f32 %v1410_v56, %v1728_v38  ;;  %1431 = vpow2.f32 %v1225_v30  ;;  %v1888_v32 = vadd.f32 %v1787_v53, %v1687_v8 }
 0x110   : > { %v1414_v5 = vpop.eup %1413  ;;  %1025 = vst.msk [vmem:[%s1803_s22 + $0x90] sm:$0xff] %vm1006_vm1, %v992_v27  ;;  %v995_v35 = vadd.f32 %v963_v54, %v931_v57  ;;  %v930_v9 = vmul.f32 %v1412_v62, %v1731_v39  ;;  %1433 = vpow2.f32 %v1208_v51  ;;  %v1884_v51 = vadd.f32 %v1687_v8, %v1778_v42 }
 0x111   : > { %v1416_v10 = vpop.eup %1415  ;;  %1012 = vst.msk [vmem:[%s1803_s22 + $0x28] sm:$0xff] %vm1006_vm1, %v979_v34  ;;  %v978_v16 = vadd.f32 %v946_v61, %v914_v63  ;;  %v917_v38 = vmul.f32 %v1414_v5, %v1738_v46  ;;  %1435 = vpow2.f32 %v1224_v55  ;;  %v1892_v55 = vadd.f32 %v1795_v59, %v1687_v8  ;;  %v965_v61 = vld [vmem:[%s1756_s16 + $0xb8] sm:$0xff] }
 0x112   : > { %v1418_v17 = vpop.eup %1417  ;;  %1028 = vst.msk [vmem:[%s1803_s22 + $0xa8] sm:$0xff] %vm1006_vm1, %v995_v35  ;;  %v994_v19 = vadd.f32 %v962_v2, %v930_v9  ;;  %v837_v20 = vadd.f32 1.0, %v1416_v10  ;;  %1437 = vpow2.f32 %v1211_v11  ;;  %v1210_v42 = vmul.f32 -1.442695, %v1880_v25  ;;  %v948_v2 = vld [vmem:[%s1756_s16 + $0x30] sm:$0xff]  ;;  %v951_v10 = vld [vmem:[%s1756_s16 + $0x48] sm:$0xff] }
 0x113   : > { %v1420_v14 = vpop.eup %1419  ;;  %1011 = vst.msk [vmem:[%s1803_s22 + $0x20] sm:$0xff] %vm1006_vm1, %v978_v16  ;;  %v981_v39 = vadd.f32 %v949_v6, %v917_v38  ;;  %v820_v28 = vadd.f32 1.0, %v1418_v17  ;;  %1439 = vpow2.f32 %v1227_v3  ;;  %v1897_v57 = vadd.f32 %v1687_v8, %v1797_v60  ;;  %v964_v35 = vld [vmem:[%s1756_s16 + $0xb0] sm:$0xff]  ;;  %v967_v17 = vld [vmem:[%s1756_s16 + $0xc8] sm:$0xff] }
 0x114   : > { %v1422_v29 = vpop.eup %1421  ;;  %1027 = vst.msk [vmem:[%s1803_s22 + $0xa0] sm:$0xff] %vm1006_vm1, %v994_v19  ;;  %1441 = vrcp.f32 %v837_v20  ;;  %v836_v30 = vadd.f32 1.0, %v1420_v14  ;;  %v1226_v62 = vmul.f32 -1.442695, %v1884_v51  ;;  %v1903_v59 = vadd.f32 %v1687_v8, %v1811_v1 }
 0x115   : > { %v1424_v46 = vpop.eup %1423  ;;  %1014 = vst.msk [vmem:[%s1803_s22 + $0x38] sm:$0xff] %vm1006_vm1, %v981_v39  ;;  %1443 = vrcp.f32 %v820_v28  ;;  %v823_v15 = vadd.f32 1.0, %v1422_v29  ;;  %v1213_v60 = vmul.f32 -1.442695, %v1888_v32  ;;  %v1229_v9 = vmul.f32 -1.442695, %v1892_v55 }
 0x116   : > { %v1426_v36 = vpop.eup %1425  ;;  %1445 = vrcp.f32 %v836_v30  ;;  %v839_v13 = vadd.f32 1.0, %v1424_v46  ;;  %v1228_v19 = vmul.f32 -1.442695, %v1903_v59  ;;  %v950_v39 = vld [vmem:[%s1756_s16 + $0x40] sm:$0xff] }
 0x117   : > { %v1428_v37 = vpop.eup %1427  ;;  %1447 = vrcp.f32 %v823_v15  ;;  %v822_v22 = vadd.f32 1.0, %v1426_v36  ;;  %v966_v30 = vld [vmem:[%s1756_s16 + $0xc0] sm:$0xff]  ;;  %v953_v36 = vld [vmem:[%s1756_s16 + $0x58] sm:$0xff] }
 0x118   : > { %v1430_v43 = vpop.eup %1429  ;;  %1449 = vrcp.f32 %v839_v13  ;;  %v838_v44 = vadd.f32 1.0, %v1428_v37 }
 0x119   : > { %v1432_v45 = vpop.eup %1431  ;;  %1451 = vrcp.f32 %v822_v22  ;;  %v825_v23 = vadd.f32 1.0, %v1430_v43  ;;  %v969_v22 = vld [vmem:[%s1756_s16 + $0xd8] sm:$0xff] }
 0x11a   : > { %v1434_v49 = vpop.eup %1433  ;;  %1453 = vrcp.f32 %v838_v44  ;;  %v841_v50 = vadd.f32 1.0, %v1432_v45  ;;  %v952_v45 = vld [vmem:[%s1756_s16 + $0x50] sm:$0xff] }
 0x11b   : > { %v1436_v26 = vpop.eup %1435  ;;  %1455 = vrcp.f32 %v825_v23  ;;  %v824_v52 = vadd.f32 1.0, %v1434_v49 }
 0x11c   : > { %v1438_v54 = vpop.eup %1437  ;;  %1457 = vrcp.f32 %v841_v50  ;;  %v840_v33 = vadd.f32 1.0, %v1436_v26 }
 0x11d   : > { %v1440_v56 = vpop.eup %1439  ;;  %1459 = vrcp.f32 %v824_v52  ;;  %v827_v27 = vadd.f32 1.0, %v1438_v54 }
 0x11e   : > { %v1442_v53 = vpop.eup %1441  ;;  %1461 = vrcp.f32 %v840_v33  ;;  %v843_v11 = vadd.f32 1.0, %v1440_v56  ;;  %v955_v33 = vld [vmem:[%s1756_s16 + $0x68] sm:$0xff] }
 0x11f   : > { %v1444_v34 = vpop.eup %1443  ;;  %v933_v63 = vmul.f32 %v1442_v53, %v1742_v4  ;;  %1463 = vrcp.f32 %v827_v27  ;;  %v1212_v4 = vmul.f32 -1.442695, %v1897_v57 }
 0x120   : > { %v1446_v3 = vpop.eup %1445  ;;  %v916_v5 = vmul.f32 %v1444_v34, %v1745_v12  ;;  %1465 = vrcp.f32 %v843_v11 }
 0x121   : > { %v1448_v6 = vpop.eup %1447  ;;  %v997_v8 = vadd.f32 %v965_v61, %v933_v63  ;;  %v932_v1 = vmul.f32 %v1446_v3, %v1750_v18  ;;  %1467 = vpow2.f32 %v1210_v42  ;;  %v971_v42 = vld [vmem:[%s1756_s16 + $0xe8] sm:$0xff] }
 0x122   : > { %v1450_v16 = vpop.eup %1449  ;;  %v980_v38 = vadd.f32 %v948_v2, %v916_v5  ;;  %v919_v12 = vmul.f32 %v1448_v6, %v1759_v21  ;;  %1469 = vpow2.f32 %v1226_v62 }
 0x123   : > { %v1452_v20 = vpop.eup %1451  ;;  %1030 = vst.msk [vmem:[%s1803_s22 + $0xb8] sm:$0xff] %vm1006_vm1, %v997_v8  ;;  %v996_v18 = vadd.f32 %v964_v35, %v932_v1  ;;  %v935_v14 = vmul.f32 %v1450_v16, %v1762_v24  ;;  %1471 = vpow2.f32 %v1213_v60  ;;  %v954_v8 = vld [vmem:[%s1756_s16 + $0x60] sm:$0xff] }
 0x124   : > { %v1454_v28 = vpop.eup %1453  ;;  %1013 = vst.msk [vmem:[%s1803_s22 + $0x30] sm:$0xff] %vm1006_vm1, %v980_v38  ;;  %v983_v21 = vadd.f32 %v951_v10, %v919_v12  ;;  %v918_v29 = vmul.f32 %v1452_v20, %v1768_v31  ;;  %1473 = vpow2.f32 %v1229_v9  ;;  %v957_v12 = vld [vmem:[%s1756_s16 + $0x78] sm:$0xff] }
 0x125   : > { %v1456_v46 = vpop.eup %1455  ;;  %1029 = vst.msk [vmem:[%s1803_s22 + $0xb0] sm:$0xff] %vm1006_vm1, %v996_v18  ;;  %v999_v15 = vadd.f32 %v967_v17, %v935_v14  ;;  %v934_v24 = vmul.f32 %v1454_v28, %v1776_v41  ;;  %1475 = vpow2.f32 %v1212_v4  ;;  %v970_v4 = vld [vmem:[%s1756_s16 + $0xe0] sm:$0xff]  ;;  %v973_v18 = vld [vmem:[%s1756_s16 + $0xf8] sm:$0xff]  ;;  %v956_v28 = vld [vmem:[%s1756_s16 + $0x70] sm:$0xff] }
 0x126   : > { %v1458_v13 = vpop.eup %1457  ;;  %1016 = vst.msk [vmem:[%s1803_s22 + $0x48] sm:$0xff] %vm1006_vm1, %v983_v21  ;;  %v982_v37 = vadd.f32 %v950_v39, %v918_v29  ;;  %v921_v31 = vmul.f32 %v1456_v46, %v1783_v48  ;;  %1477 = vpow2.f32 %v1228_v19  ;;  %v968_v48 = vld [vmem:[%s1756_s16 + $0xd0] sm:$0xff] }
 0x127   : > { %v1460_v43 = vpop.eup %1459  ;;  %1032 = vst.msk [vmem:[%s1803_s22 + $0xc8] sm:$0xff] %vm1006_vm1, %v999_v15  ;;  %v998_v44 = vadd.f32 %v966_v30, %v934_v24  ;;  %v937_v41 = vmul.f32 %v1458_v13, %v1793_v58  ;;  %v972_v30 = vld [vmem:[%s1756_s16 + $0xf0] sm:$0xff] }
 0x128   : > { %v1462_v23 = vpop.eup %1461  ;;  %1015 = vst.msk [vmem:[%s1803_s22 + $0x40] sm:$0xff] %vm1006_vm1, %v982_v37  ;;  %v985_v49 = vadd.f32 %v953_v36, %v921_v31  ;;  %v920_v50 = vmul.f32 %v1460_v43, %v1809_v0 }
 0x129   : > { %v1464_v26 = vpop.eup %1463  ;;  %1031 = vst.msk [vmem:[%s1803_s22 + $0xc0] sm:$0xff] %vm1006_vm1, %v998_v44  ;;  %v1001_v52 = vadd.f32 %v969_v22, %v937_v41  ;;  %v936_v54 = vmul.f32 %v1462_v23, %v1820_v7 }
 0x12a   : > { %v1466_v58 = vpop.eup %1465  ;;  %1018 = vst.msk [vmem:[%s1803_s22 + $0x58] sm:$0xff] %vm1006_vm1, %v985_v49  ;;  %v984_v56 = vadd.f32 %v952_v45, %v920_v50  ;;  %v923_v27 = vmul.f32 %v1464_v26, %v1833_v40 }
 0x12b   : > { %v1468_v53 = vpop.eup %1467  ;;  %1034 = vst.msk [vmem:[%s1803_s22 + $0xd8] sm:$0xff] %vm1006_vm1, %v1001_v52  ;;  %v1000_v0 = vadd.f32 %v968_v48, %v936_v54  ;;  %v939_v61 = vmul.f32 %v1466_v58, %v1841_v47 }
 0x12c   : > { %v1470_v11 = vpop.eup %1469  ;;  %1017 = vst.msk [vmem:[%s1803_s22 + $0x50] sm:$0xff] %vm1006_vm1, %v984_v56  ;;  %v987_v7 = vadd.f32 %v955_v33, %v923_v27  ;;  %v826_v62 = vadd.f32 1.0, %v1468_v53 }
 0x12d   : > { %v1472_v34 = vpop.eup %1471  ;;  %1033 = vst.msk [vmem:[%s1803_s22 + $0xd0] sm:$0xff] %vm1006_vm1, %v1000_v0  ;;  %v1003_v63 = vadd.f32 %v971_v42, %v939_v61  ;;  %v842_v2 = vadd.f32 1.0, %v1470_v11 }
 0x12e   : > { %v1474_v60 = vpop.eup %1473  ;;  %1020 = vst.msk [vmem:[%s1803_s22 + $0x68] sm:$0xff] %vm1006_vm1, %v987_v7  ;;  %1479 = vrcp.f32 %v826_v62  ;;  %v829_v40 = vadd.f32 1.0, %v1472_v34 }
 0x12f   : > { %v1476_v3 = vpop.eup %1475  ;;  %1036 = vst.msk [vmem:[%s1803_s22 + $0xe8] sm:$0xff] %vm1006_vm1, %v1003_v63  ;;  %1481 = vrcp.f32 %v842_v2  ;;  %v845_v47 = vadd.f32 1.0, %v1474_v60 }
 0x130   : > { %v1478_v5 = vpop.eup %1477  ;;  %1483 = vrcp.f32 %v829_v40  ;;  %v828_v35 = vadd.f32 1.0, %v1476_v3 }
 0x131   : > { %1485 = vrcp.f32 %v845_v47  ;;  %v844_v9 = vadd.f32 1.0, %v1478_v5 }
 0x132   : > { %1487 = vrcp.f32 %v828_v35 }
 0x133   : > { %1489 = vrcp.f32 %v844_v9 }
 0x138   : > { %v1480_v6 = vpop.eup %1479 }
 0x139   : > { %v1482_v1 = vpop.eup %1481  ;;  %v922_v10 = vmul.f32 %v1480_v6, %v1880_v25 }
 0x13a   : > { %v1484_v16 = vpop.eup %1483  ;;  %v938_v38 = vmul.f32 %v1482_v1, %v1884_v51 }
 0x13b   : > { %v1486_v17 = vpop.eup %1485  ;;  %v986_v19 = vadd.f32 %v954_v8, %v922_v10  ;;  %v925_v20 = vmul.f32 %v1484_v16, %v1888_v32 }
 0x13c   : > { %v1488_v14 = vpop.eup %1487  ;;  %v1002_v39 = vadd.f32 %v970_v4, %v938_v38  ;;  %v941_v25 = vmul.f32 %v1486_v17, %v1892_v55 }
 0x13d   : > { %v1490_v21 = vpop.eup %1489  ;;  %1019 = vst.msk [vmem:[%s1803_s22 + $0x60] sm:$0xff] %vm1006_vm1, %v986_v19  ;;  %v989_v29 = vadd.f32 %v957_v12, %v925_v20  ;;  %v924_v51 = vmul.f32 %v1488_v14, %v1897_v57 }
 0x13e   : > { %1035 = vst.msk [vmem:[%s1803_s22 + $0xe0] sm:$0xff] %vm1006_vm1, %v1002_v39  ;;  %v1005_v46 = vadd.f32 %v973_v18, %v941_v25  ;;  %v940_v32 = vmul.f32 %v1490_v21, %v1903_v59 }
 0x13f   : > { %1022 = vst.msk [vmem:[%s1803_s22 + $0x78] sm:$0xff] %vm1006_vm1, %v989_v29  ;;  %v988_v15 = vadd.f32 %v956_v28, %v924_v51 }
 0x140   : > { %1038 = vst.msk [vmem:[%s1803_s22 + $0xf8] sm:$0xff] %vm1006_vm1, %v1005_v46  ;;  %v1004_v24 = vadd.f32 %v972_v30, %v940_v32 }
 0x141   : > { %1021 = vst.msk [vmem:[%s1803_s22 + $0x70] sm:$0xff] %vm1006_vm1, %v988_v15 }
 0x142   : > { %1037 = vst.msk [vmem:[%s1803_s22 + $0xf0] sm:$0xff] %vm1006_vm1, %v1004_v24 }
 0x143 PF: > { %s15_s20 = sadd.s32 1, %s1513_s20   ;;  %s1999_s18 = smov %s1509_s19 }
 0x144   : > { %p12_p5 = scmp.ge.s32.totalorder %s15_s20, 4   ;;  %s2000_s19 = smov %s2002_s21 }
 0x146   :  { %14 = sbr.rel (!%p12_p5) target bundleno = 2 (0x2), region = 76 }

// kernel: mbconv_forward.4
= control target key start
LH: loop header
LB: loop body
LE: loop exit
PB: predicated region body
PF: predicated region fallthrough
CT: control target
= control target key end

     0   :  { %s2067_s15 = smov 0   ;;  %s2069_s16 = smov 0   ;;  %s3287_s0 = inlined_call_operand.vmem [shape: f32[2,16,16,32], index: 0, kind: input, shape index: {}]   ;;  %s3288_s1 = inlined_call_operand.vmem [shape: f32[9,32], index: 1, kind: input, shape index: {}]   ;;  %s3289_s2 = inlined_call_operand.vmem [shape: f32[1,32], index: 2, kind: input, shape index: {}]   ;;  %s3290_s3 = inlined_call_operand.vmem [shape: f32[2,16,16,32], index: 3, kind: output, shape index: {0}]   ;;  %s3291_s4 = inlined_call_operand.vmem [shape: f32[2,1,32], index: 4, kind: output, shape index: {1}]  }
   0x1   :  { %s2071_s17 = smov 0  }
   0x2 LB: > { %s27_s18 = sadd.s32 1, %s2035_s16  ;;  %p1819_p0 = scmp.ge.s32.totalorder %s2039_s17, 1  ;;  %s2039_s17 = sphi %s2071_s17, %s15_s17   ;;  %s2035_s16 = sphi %s2069_s16, %s3293_s16   ;;  %s2031_s15 = sphi %s2067_s15, %s3292_s15  }
   0x3   : > { %p29_p1 = scmp.ge.s32.totalorder %s27_s18, 2  ;;  %p203_p2 = scmp.lt.s32.totalorder %s2039_s17, 3 }
   0x5   : > { %s3295_s18 = smov (%p29_p1, %s27_s18), 0  ;;  %p204_p3 = pnand %p1819_p0, %p203_p2 }
   0x6   : > { %vm277_vm0 = vcmask (!%p204_p3), 261120   ;;  %vm280_vm1 = vcmask (!%p204_p3), 254976   ;;  %p248_p4 = scmp.lt.s32.totalorder (!%p204_p3), %s2031_s15, 1  ;;  %v2041_v0 = vmov (!%p204_p3), 0.0   ;;  %v432_v1 = vlaneseq (!%p204_p3)  ;;  %v2175_v12 = vld [vmem:[%s3288_s1] sm:$0xff] (!%p204_p3) }
   0x7   : > { %207 = sbr.rel (%p204_p3) target bundleno = 285 (0x11d), region = 32  ;;  %278 = vst.msk [vmem:[#allocation2] sm:$0xff] (!%p204_p3), %vm277_vm0, %v2041_v0  ;;  %279 = vst.msk [vmem:[#allocation2 + $0x8] sm:$0xff] (!%p204_p3), %vm277_vm0, %v2041_v0  ;;  %v2242_v46 = vld [vmem:[%s3288_s1 + $0x8] ss:$0 sm:$0xff] (!%p204_p3)  ;;  %vm1665_vm2 = vcmask (!%p204_p3), 253952  }
   0x8   : > { %282 = vst.msk [vmem:[#allocation2 + $0x18] sm:$0xff] (!%p204_p3), %vm277_vm0, %v2041_v0  ;;  %283 = vst.msk [vmem:[#allocation2 + $0x20] sm:$0xff] (!%p204_p3), %vm277_vm0, %v2041_v0  ;;  %v2155_v2 = vshrl.u32 (!%p204_p3), %v432_v1, 7 }
   0x9   : > { %285 = vst.msk [vmem:[#allocation2 + $0x30] sm:$0xff] (!%p204_p3), %vm277_vm0, %v2041_v0  ;;  %286 = vst.msk [vmem:[#allocation2 + $0x38] sm:$0xff] (!%p204_p3), %vm277_vm0, %v2041_v0 }
   0xa   : > { %288 = vst.msk [vmem:[#allocation2 + $0x48] sm:$0xff] (!%p204_p3), %vm277_vm0, %v2041_v0  ;;  %289 = vst.msk [vmem:[#allocation2 + $0x50] sm:$0xff] (!%p204_p3), %vm277_vm0, %v2041_v0  ;;  %v434_v16 = vsub.s32 (!%p204_p3), 0, %v2155_v2  ;;  %v534_v20 = vsub.s32 (!%p204_p3), 1, %v2155_v2  ;;  %v634_v21 = vsub.s32 (!%p204_p3), 2, %v2155_v2  ;;  %v734_v22 = vsub.s32 (!%p204_p3), 3, %v2155_v2 }
   0xb   : > { %291 = vst.msk [vmem:[#allocation2 + $0x60] sm:$0xff] (!%p204_p3), %vm277_vm0, %v2041_v0  ;;  %292 = vst.msk [vmem:[#allocation2 + $0x68] sm:$0xff] (!%p204_p3), %vm277_vm0, %v2041_v0  ;;  %v834_v26 = vsub.s32 (!%p204_p3), 4, %v2155_v2  ;;  %v934_v27 = vsub.s32 (!%p204_p3), 5, %v2155_v2  ;;  %v1035_v28 = vsub.s32 (!%p204_p3), 6, %v2155_v2  ;;  %v1135_v32 = vsub.s32 (!%p204_p3), 7, %v2155_v2 }
   0xc   : > { %294 = vst.msk [vmem:[#allocation2 + $0x78] sm:$0xff] (!%p204_p3), %vm277_vm0, %v2041_v0  ;;  %295 = vst.msk [vmem:[#allocation2 + $0x80] sm:$0xff] (!%p204_p3), %vm277_vm0, %v2041_v0  ;;  %v2216_v36 = vrot.slane (!%p204_p3), %v2175_v12, %v434_v16  ;;  %v2225_v40 = vrot.slane (!%p204_p3), %v2175_v12, %v534_v20  ;;  %v2228_v41 = vrot.slane (!%p204_p3), %v2175_v12, %v634_v21 }
   0xd   : > { %297 = vst.msk [vmem:[#allocation2 + $0x90] sm:$0xff] (!%p204_p3), %vm277_vm0, %v2041_v0  ;;  %298 = vst.msk [vmem:[#allocation2 + $0x98] sm:$0xff] (!%p204_p3), %vm277_vm0, %v2041_v0  ;;  %v2231_v42 = vrot.slane (!%p204_p3), %v2175_v12, %v734_v22  ;;  %v2245_v47 = vrot.slane (!%p204_p3), %v2175_v12, %v834_v26  ;;  %v2248_v48 = vrot.slane (!%p204_p3), %v2175_v12, %v934_v27 }
   0xe   : > { %300 = vst.msk [vmem:[#allocation2 + $0xa8] sm:$0xff] %vm277_vm0, %v2041_v0  ;;  %301 = vst.msk [vmem:[#allocation2 + $0xb0] sm:$0xff] %vm277_vm0, %v2041_v0  ;;  %s3297_s15 = smov (!%p248_p4, %s2031_s15), 1  ;;  %v2251_v49 = vrot.slane %v2175_v12, %v1035_v28  ;;  %v400_v52 = vld [vmem:[#allocation2] sm:$0xff]  ;;  %v2259_v53 = vrot.slane %v2175_v12, %v1135_v32 }
   0xf   : > { %303 = vst.msk [vmem:[#allocation2 + $0xc0] sm:$0xff] %vm277_vm0, %v2041_v0  ;;  %304 = vst.msk [vmem:[#allocation2 + $0xc8] sm:$0xff] %vm277_vm0, %v2041_v0  ;;  %s1860_s19 = sshll.u32 %s3297_s15, 8  ;;  %v436_v54 = vmul.f32 %v2216_v36, %v400_v52  ;;  %v500_v55 = vld [vmem:[#allocation2 + $0x1] sm:$0xff]  ;;  %s276_s12 = scalar_lea.vmem %s3291_s4, %s3297_s15 }
  0x10   : > { %306 = vst.msk [vmem:[#allocation2 + $0xd8] sm:$0xff] %vm277_vm0, %v2041_v0  ;;  %307 = vst.msk [vmem:[#allocation2 + $0xe0] sm:$0xff] %vm277_vm0, %v2041_v0  ;;  %s2153_s22 = scalar_lea.vmem %s3287_s0, %s1860_s19  ;;  %v600_v56 = vld [vmem:[#allocation2 + $0x2] sm:$0xff]  ;;  %v536_v58 = vmul.f32 %v2225_v40, %v500_v55  ;;  %s2516_s5 = scalar_lea.vmem %s3290_s3, %s1860_s19 }
  0x11   : > { %309 = vst.msk [vmem:[#allocation2 + $0xf0] sm:$0xff] %vm277_vm0, %v2041_v0  ;;  %310 = vst.msk [vmem:[#allocation2 + $0xf8] sm:$0xff] %vm277_vm0, %v2041_v0  ;;  %v333_v3 = vld [vmem:[%s2153_s22] sm:$0xff]  ;;  %v334_v4 = vld [vmem:[%s2153_s22 + $0x8] sm:$0xff]  ;;  %v636_v59 = vmul.f32 %v2228_v41, %v600_v56 }
  0x12   : > { %312 = vst.msk [vmem:[#allocation2 + $0x108] sm:$0xff] %vm277_vm0, %v2041_v0  ;;  %313 = vst.msk [vmem:[#allocation2 + $0x110] sm:$0xff] %vm277_vm0, %v2041_v0  ;;  %v335_v5 = vld [vmem:[%s2153_s22 + $0x10] sm:$0xff]  ;;  %v336_v6 = vld [vmem:[%s2153_s22 + $0x18] sm:$0xff] }
  0x13   : > { %315 = vst.msk [vmem:[#allocation2 + $0x120] sm:$0xff] %vm277_vm0, %v2041_v0  ;;  %316 = vst.msk [vmem:[#allocation2 + $0x128] sm:$0xff] %vm277_vm0, %v2041_v0  ;;  %v337_v7 = vld [vmem:[%s2153_s22 + $0x20] sm:$0xff]  ;;  %v338_v8 = vld [vmem:[%s2153_s22 + $0x28] sm:$0xff] }
  0x14   : > { %318 = vst.msk [vmem:[#allocation2 + $0x138] sm:$0xff] %vm277_vm0, %v2041_v0  ;;  %319 = vst.msk [vmem:[#allocation2 + $0x140] sm:$0xff] %vm277_vm0, %v2041_v0  ;;  %v339_v9 = vld [vmem:[%s2153_s22 + $0x30] sm:$0xff]  ;;  %v340_v10 = vld [vmem:[%s2153_s22 + $0x38] sm:$0xff] }
  0x15   : > { %321 = vst.msk [vmem:[#allocation2 + $0x150] sm:$0xff] %vm277_vm0, %v2041_v0  ;;  %322 = vst.msk [vmem:[#allocation2 + $0x158] sm:$0xff] %vm277_vm0, %v2041_v0  ;;  %v341_v11 = vld [vmem:[%s2153_s22 + $0x40] sm:$0xff]  ;;  %v342_v13 = vld [vmem:[%s2153_s22 + $0x48] sm:$0xff] }
  0x16   : > { %324 = vst.msk [vmem:[#allocation2 + $0x168] sm:$0xff] %vm277_vm0, %v2041_v0  ;;  %325 = vst.msk [vmem:[#allocation2 + $0x170] sm:$0xff] %vm277_vm0, %v2041_v0  ;;  %v343_v14 = vld [vmem:[%s2153_s22 + $0x50] sm:$0xff]  ;;  %v344_v15 = vld [vmem:[%s2153_s22 + $0x58] sm:$0xff] }
  0x17   : > { %327 = vst.msk [vmem:[#allocation2 + $0x180] sm:$0xff] %vm277_vm0, %v2041_v0  ;;  %328 = vst.msk [vmem:[#allocation2 + $0x188] sm:$0xff] %vm277_vm0, %v2041_v0  ;;  %v345_v17 = vld [vmem:[%s2153_s22 + $0x60] sm:$0xff]  ;;  %v346_v18 = vld [vmem:[%s2153_s22 + $0x68] sm:$0xff] }
  0x18   : > { %330 = vst.msk [vmem:[#allocation2 + $0x198] sm:$0xff] %vm277_vm0, %v2041_v0  ;;  %331 = vst.msk [vmem:[#allocation2 + $0x1a0] sm:$0xff] %vm277_vm0, %v2041_v0  ;;  %v347_v19 = vld [vmem:[%s2153_s22 + $0x70] sm:$0xff]  ;;  %v348_v23 = vld [vmem:[%s2153_s22 + $0x78] sm:$0xff] }
  0x19   : > { %281 = vst.msk [vmem:[#allocation2 + $0x10] sm:$0x3] %vm280_vm1, %v2041_v0  ;;  %284 = vst.msk [vmem:[#allocation2 + $0x28] sm:$0x3] %vm280_vm1, %v2041_v0  ;;  %v349_v24 = vld [vmem:[%s2153_s22 + $0x80] sm:$0xff]  ;;  %v350_v25 = vld [vmem:[%s2153_s22 + $0x88] sm:$0xff] }
  0x1a   : > { %287 = vst.msk [vmem:[#allocation2 + $0x40] sm:$0x3] %vm280_vm1, %v2041_v0  ;;  %290 = vst.msk [vmem:[#allocation2 + $0x58] sm:$0x3] %vm280_vm1, %v2041_v0  ;;  %v351_v29 = vld [vmem:[%s2153_s22 + $0x90] sm:$0xff]  ;;  %v352_v30 = vld [vmem:[%s2153_s22 + $0x98] sm:$0xff] }
  0x1b   : > { %293 = vst.msk [vmem:[#allocation2 + $0x70] sm:$0x3] %vm280_vm1, %v2041_v0  ;;  %296 = vst.msk [vmem:[#allocation2 + $0x88] sm:$0x3] %vm280_vm1, %v2041_v0  ;;  %v353_v31 = vld [vmem:[%s2153_s22 + $0xa0] sm:$0xff]  ;;  %v354_v33 = vld [vmem:[%s2153_s22 + $0xa8] sm:$0xff] }
  0x1c   : > { %299 = vst.msk [vmem:[#allocation2 + $0xa0] sm:$0x3] %vm280_vm1, %v2041_v0  ;;  %302 = vst.msk [vmem:[#allocation2 + $0xb8] sm:$0x3] %vm280_vm1, %v2041_v0  ;;  %v355_v34 = vld [vmem:[%s2153_s22 + $0xb0] sm:$0xff]  ;;  %v356_v35 = vld [vmem:[%s2153_s22 + $0xb8] sm:$0xff] }
  0x1d   : > { %305 = vst.msk [vmem:[#allocation2 + $0xd0] sm:$0x3] %vm280_vm1, %v2041_v0  ;;  %308 = vst.msk [vmem:[#allocation2 + $0xe8] sm:$0x3] %vm280_vm1, %v2041_v0  ;;  %v357_v37 = vld [vmem:[%s2153_s22 + $0xc0] sm:$0xff]  ;;  %v358_v38 = vld [vmem:[%s2153_s22 + $0xc8] sm:$0xff] }
  0x1e   : > { %311 = vst.msk [vmem:[#allocation2 + $0x100] sm:$0x3] %vm280_vm1, %v2041_v0  ;;  %314 = vst.msk [vmem:[#allocation2 + $0x118] sm:$0x3] %vm280_vm1, %v2041_v0  ;;  %v359_v39 = vld [vmem:[%s2153_s22 + $0xd0] sm:$0xff]  ;;  %v360_v43 = vld [vmem:[%s2153_s22 + $0xd8] sm:$0xff] }
  0x1f   : > { %317 = vst.msk [vmem:[#allocation2 + $0x130] sm:$0x3] %vm280_vm1, %v2041_v0  ;;  %320 = vst.msk [vmem:[#allocation2 + $0x148] sm:$0x3] %vm280_vm1, %v2041_v0  ;;  %v361_v44 = vld [vmem:[%s2153_s22 + $0xe0] sm:$0xff]  ;;  %v362_v45 = vld [vmem:[%s2153_s22 + $0xe8] sm:$0xff] }
  0x20   : > { %323 = vst.msk [vmem:[#allocation2 + $0x160] sm:$0x3] %vm280_vm1, %v2041_v0  ;;  %326 = vst.msk [vmem:[#allocation2 + $0x178] sm:$0x3] %vm280_vm1, %v2041_v0  ;;  %v363_v50 = vld [vmem:[%s2153_s22 + $0xf0] sm:$0xff]  ;;  %v364_v51 = vld [vmem:[%s2153_s22 + $0xf8] sm:$0xff] }
  0x21   : > { %329 = vst.msk [vmem:[#allocation2 + $0x190] sm:$0x3] %vm280_vm1, %v2041_v0  ;;  %332 = vst.msk [vmem:[#allocation2 + $0x1a8] sm:$0x3] %vm280_vm1, %v2041_v0  ;;  %v501_v12 = vld [vmem:[#allocation2 + $0x9] sm:$0xff] }
  0x22   : > { %366 = vst.msk [vmem:[#allocation2 + $0x19] sm:$0xff] %vm277_vm0, %v333_v3  ;;  %367 = vst.msk [vmem:[#allocation2 + $0x21] sm:$0xff] %vm277_vm0, %v334_v4 }
  0x23   : > { %368 = vst.msk [vmem:[#allocation2 + $0x31] sm:$0xff] %vm277_vm0, %v335_v5  ;;  %369 = vst.msk [vmem:[#allocation2 + $0x39] sm:$0xff] %vm277_vm0, %v336_v6  ;;  %v401_v6 = vld [vmem:[#allocation2 + $0x8] sm:$0xff] }
  0x24   : > { %370 = vst.msk [vmem:[#allocation2 + $0x49] sm:$0xff] %vm277_vm0, %v337_v7  ;;  %371 = vst.msk [vmem:[#allocation2 + $0x51] sm:$0xff] %vm277_vm0, %v338_v8  ;;  %v568_v8 = vadd.f32 %v536_v58, %v436_v54 }
  0x25   : > { %372 = vst.msk [vmem:[#allocation2 + $0x61] sm:$0xff] %vm277_vm0, %v339_v9  ;;  %373 = vst.msk [vmem:[#allocation2 + $0x69] sm:$0xff] %vm277_vm0, %v340_v10 }
  0x26   : > { %374 = vst.msk [vmem:[#allocation2 + $0x79] sm:$0xff] %vm277_vm0, %v341_v11  ;;  %375 = vst.msk [vmem:[#allocation2 + $0x81] sm:$0xff] %vm277_vm0, %v342_v13  ;;  %v437_v11 = vmul.f32 %v2216_v36, %v401_v6  ;;  %v601_v13 = vld [vmem:[#allocation2 + $0xa] sm:$0xff]  ;;  %v668_v22 = vadd.f32 %v636_v59, %v568_v8 }
  0x27   : > { %376 = vst.msk [vmem:[#allocation2 + $0x91] sm:$0xff] %vm277_vm0, %v343_v14  ;;  %377 = vst.msk [vmem:[#allocation2 + $0x99] sm:$0xff] %vm277_vm0, %v344_v15  ;;  %v537_v15 = vmul.f32 %v2225_v40, %v501_v12  ;;  %v637_v16 = vmul.f32 %v2228_v41, %v601_v13 }
  0x28   : > { %378 = vst.msk [vmem:[#allocation2 + $0xa9] sm:$0xff] %vm277_vm0, %v345_v17  ;;  %379 = vst.msk [vmem:[#allocation2 + $0xb1] sm:$0xff] %vm277_vm0, %v346_v18 }
  0x29   : > { %380 = vst.msk [vmem:[#allocation2 + $0xc1] sm:$0xff] %vm277_vm0, %v347_v19  ;;  %381 = vst.msk [vmem:[#allocation2 + $0xc9] sm:$0xff] %vm277_vm0, %v348_v23  ;;  %v700_v57 = vld [vmem:[#allocation2 + $0x18] sm:$0xff]  ;;  %v701_v14 = vld [vmem:[#allocation2 + $0x20] sm:$0xff]  ;;  %v569_v28 = vadd.f32 %v537_v15, %v437_v11 }
  0x2a   : > { %382 = vst.msk [vmem:[#allocation2 + $0xd9] sm:$0xff] %vm277_vm0, %v349_v24  ;;  %383 = vst.msk [vmem:[#allocation2 + $0xe1] sm:$0xff] %vm277_vm0, %v350_v25  ;;  %v736_v60 = vmul.f32 %v2231_v42, %v700_v57  ;;  %v800_v61 = vld [vmem:[#allocation2 + $0x19] sm:$0xff]  ;;  %v2267_v63 = vld [vmem:[#allocation2 + $0x30] sm:$0xff]  ;;  %v438_v0 = vmul.f32 %v700_v57, %v2216_v36  ;;  %v737_v17 = vmul.f32 %v2231_v42, %v701_v14 }
  0x2b   : > { %384 = vst.msk [vmem:[#allocation2 + $0xf1] sm:$0xff] %vm277_vm0, %v351_v29  ;;  %385 = vst.msk [vmem:[#allocation2 + $0xf9] sm:$0xff] %vm277_vm0, %v352_v30  ;;  %v900_v62 = vld [vmem:[#allocation2 + $0x1a] sm:$0xff]  ;;  %v836_v1 = vmul.f32 %v2245_v47, %v800_v61  ;;  %v1037_v3 = vmul.f32 %v2251_v49, %v2267_v63  ;;  %v2274_v4 = vld [vmem:[#allocation2 + $0x31] sm:$0xff]  ;;  %v538_v7 = vmul.f32 %v800_v61, %v2225_v40 }
  0x2c   : > { %386 = vst.msk [vmem:[#allocation2 + $0x109] sm:$0xff] %vm277_vm0, %v353_v31  ;;  %387 = vst.msk [vmem:[#allocation2 + $0x111] sm:$0xff] %vm277_vm0, %v354_v33  ;;  %v936_v2 = vmul.f32 %v2248_v48, %v900_v62  ;;  %v2276_v5 = vld [vmem:[#allocation2 + $0x32] sm:$0xff]  ;;  %v1137_v9 = vmul.f32 %v2259_v53, %v2274_v4  ;;  %v801_v18 = vld [vmem:[#allocation2 + $0x21] sm:$0xff]  ;;  %v638_v31 = vmul.f32 %v900_v62, %v2228_v41 }
  0x2d   : > { %388 = vst.msk [vmem:[#allocation2 + $0x121] sm:$0xff] %vm277_vm0, %v355_v34  ;;  %389 = vst.msk [vmem:[#allocation2 + $0x129] sm:$0xff] %vm277_vm0, %v356_v35  ;;  %v2283_v10 = vmul.f32 %v2242_v46, %v2276_v5  ;;  %v901_v19 = vld [vmem:[#allocation2 + $0x22] sm:$0xff]  ;;  %v2289_v20 = vld [vmem:[#allocation2 + $0x38] sm:$0xff]  ;;  %v570_v21 = vadd.f32 %v538_v7, %v438_v0  ;;  %v837_v23 = vmul.f32 %v2245_v47, %v801_v18 }
  0x2e   : > { %390 = vst.msk [vmem:[#allocation2 + $0x139] sm:$0xff] %vm277_vm0, %v357_v37  ;;  %391 = vst.msk [vmem:[#allocation2 + $0x141] sm:$0xff] %vm277_vm0, %v358_v38  ;;  %v937_v24 = vmul.f32 %v2248_v48, %v901_v19  ;;  %v1038_v25 = vmul.f32 %v2251_v49, %v2289_v20  ;;  %v2295_v26 = vld [vmem:[#allocation2 + $0x39] sm:$0xff]  ;;  %v768_v32 = vadd.f32 %v736_v60, %v668_v22  ;;  %v2312_v37 = vld [vmem:[#allocation2 + $0x48] sm:$0xff] }
  0x2f   : > { %392 = vst.msk [vmem:[#allocation2 + $0x151] sm:$0xff] %vm277_vm0, %v359_v39  ;;  %393 = vst.msk [vmem:[#allocation2 + $0x159] sm:$0xff] %vm277_vm0, %v360_v43  ;;  %v2297_v27 = vld [vmem:[#allocation2 + $0x3a] sm:$0xff]  ;;  %v1138_v29 = vmul.f32 %v2259_v53, %v2295_v26  ;;  %v738_v33 = vmul.f32 %v2267_v63, %v2231_v42  ;;  %v838_v34 = vmul.f32 %v2274_v4, %v2245_v47  ;;  %v2314_v38 = vld [vmem:[#allocation2 + $0x49] sm:$0xff] }
  0x30   : > { %394 = vst.msk [vmem:[#allocation2 + $0x169] sm:$0xff] %vm277_vm0, %v361_v44  ;;  %395 = vst.msk [vmem:[#allocation2 + $0x171] sm:$0xff] %vm277_vm0, %v362_v45  ;;  %v2303_v30 = vmul.f32 %v2242_v46, %v2297_v27  ;;  %v938_v35 = vmul.f32 %v2276_v5, %v2248_v48  ;;  %v669_v39 = vadd.f32 %v637_v16, %v569_v28  ;;  %v2335_v6 = vld [vmem:[#allocation2 + $0x51] sm:$0xff] }
  0x31   : > { %396 = vst.msk [vmem:[#allocation2 + $0x181] sm:$0xff] %vm277_vm0, %v363_v50  ;;  %397 = vst.msk [vmem:[#allocation2 + $0x189] sm:$0xff] %vm277_vm0, %v364_v51  ;;  %v670_v43 = vadd.f32 %v638_v31, %v570_v21  ;;  %v1039_v44 = vmul.f32 %v2251_v49, %v2312_v37  ;;  %v1139_v45 = vmul.f32 %v2259_v53, %v2314_v38  ;;  %v2320_v50 = vld [vmem:[#allocation2 + $0x4a] sm:$0xff] }
  0x32   : > { %v868_v51 = vadd.f32 %v836_v1, %v768_v32  ;;  %v1239_v52 = vmul.f32 %v2242_v46, %v2320_v50  ;;  %v439_v54 = vmul.f32 %v701_v14, %v2216_v36  ;;  %v539_v55 = vmul.f32 %v801_v18, %v2225_v40  ;;  %v2333_v1 = vld [vmem:[#allocation2 + $0x50] sm:$0xff] }
  0x33   : > { %v769_v56 = vadd.f32 %v737_v17, %v669_v39  ;;  %v770_v57 = vadd.f32 %v738_v33, %v670_v43  ;;  %v639_v58 = vmul.f32 %v901_v19, %v2228_v41  ;;  %v739_v59 = vmul.f32 %v2289_v20, %v2231_v42  ;;  %v2371_v43 = vld [vmem:[#allocation2 + $0x62] sm:$0xff] }
  0x34   : > { %v968_v60 = vadd.f32 %v936_v2, %v868_v51  ;;  %v571_v61 = vadd.f32 %v539_v55, %v439_v54  ;;  %v839_v62 = vmul.f32 %v2295_v26, %v2245_v47  ;;  %v939_v0 = vmul.f32 %v2297_v27, %v2248_v48  ;;  %v2341_v2 = vld [vmem:[#allocation2 + $0x52] sm:$0xff] }
  0x35   : > { %v869_v7 = vadd.f32 %v837_v23, %v769_v56  ;;  %v870_v8 = vadd.f32 %v838_v34, %v770_v57  ;;  %v1040_v11 = vmul.f32 %v2251_v49, %v2333_v1  ;;  %v1140_v12 = vmul.f32 %v2259_v53, %v2335_v6 }
  0x36   : > { %v1069_v13 = vadd.f32 %v1037_v3, %v968_v60  ;;  %v671_v14 = vadd.f32 %v639_v58, %v571_v61  ;;  %v1240_v15 = vmul.f32 %v2242_v46, %v2341_v2  ;;  %v440_v16 = vmul.f32 %v2267_v63, %v2216_v36  ;;  %v2358_v63 = vld [vmem:[%s3289_s2] ss:$0 sm:$0xff] }
  0x37   : > { %v969_v17 = vadd.f32 %v937_v24, %v869_v7  ;;  %v970_v18 = vadd.f32 %v938_v35, %v870_v8  ;;  %v540_v19 = vmul.f32 %v2274_v4, %v2225_v40  ;;  %v640_v21 = vmul.f32 %v2276_v5, %v2228_v41  ;;  %v2362_v5 = vld [vmem:[#allocation2 + $0x60] sm:$0xff] }
  0x38   : > { %v1169_v22 = vadd.f32 %v1137_v9, %v1069_v13  ;;  %v771_v23 = vadd.f32 %v739_v59, %v671_v14  ;;  %v740_v3 = vmul.f32 %v2312_v37, %v2231_v42  ;;  %v840_v28 = vmul.f32 %v2314_v38, %v2245_v47  ;;  %v2364_v9 = vld [vmem:[#allocation2 + $0x61] sm:$0xff] }
  0x39   : > { %v1070_v24 = vadd.f32 %v1038_v25, %v969_v17  ;;  %v1071_v31 = vadd.f32 %v1039_v44, %v970_v18  ;;  %v572_v32 = vadd.f32 %v540_v19, %v440_v16  ;;  %v940_v4 = vmul.f32 %v2320_v50, %v2248_v48  ;;  %v2404_v18 = vld [vmem:[#allocation2 + $0x69] sm:$0xff] }
  0x3a   : > { %v1269_v33 = vadd.f32 %v2283_v10, %v1169_v22  ;;  %v871_v34 = vadd.f32 %v839_v62, %v771_v23  ;;  %v1041_v35 = vmul.f32 %v2251_v49, %v2362_v5  ;;  %v1141_v39 = vmul.f32 %v2259_v53, %v2364_v9  ;;  %v2406_v19 = vld [vmem:[#allocation2 + $0x6a] sm:$0xff] }
  0x3b   : > { %v1170_v25 = vadd.f32 %v1138_v29, %v1070_v24  ;;  %v1171_v44 = vadd.f32 %v1139_v45, %v1071_v31  ;;  %v672_v51 = vadd.f32 %v640_v21, %v572_v32  ;;  %v1241_v54 = vmul.f32 %v2242_v46, %v2371_v43 }
  0x3c   : > { %v2376_v55 = vadd.f32 %v2358_v63, %v1269_v33  ;;  %v971_v56 = vadd.f32 %v939_v0, %v871_v34  ;;  %v441_v10 = vmul.f32 %v2289_v20, %v2216_v36  ;;  %v541_v57 = vmul.f32 %v2295_v26, %v2225_v40 }
  0x3d   : > { %v1270_v58 = vadd.f32 %v2303_v30, %v1170_v25  ;;  %v1271_v59 = vadd.f32 %v1239_v52, %v1171_v44  ;;  %v772_v60 = vadd.f32 %v740_v3, %v672_v51  ;;  %v641_v29 = vmul.f32 %v2297_v27, %v2228_v41 }
  0x3e   : > { %v1826_v45 = vmul.f32 -1.442695, %v2376_v55  ;;  %v1072_v61 = vadd.f32 %v1040_v11, %v971_v56  ;;  %v573_v62 = vadd.f32 %v541_v57, %v441_v10  ;;  %v741_v0 = vmul.f32 %v2333_v1, %v2231_v42  ;;  %v2398_v11 = vld [vmem:[#allocation2 + $0x68] sm:$0xff] }
  0x3f   : > { %v2389_v7 = vadd.f32 %v2358_v63, %v1270_v58  ;;  %v2392_v20 = vadd.f32 %v2358_v63, %v1271_v59  ;;  %v872_v26 = vadd.f32 %v840_v28, %v772_v60  ;;  %v841_v30 = vmul.f32 %v2335_v6, %v2245_v47 }
  0x40   : > { %1887 = vpow2.f32 %v1826_v45  ;;  %v1172_v52 = vadd.f32 %v1140_v12, %v1072_v61  ;;  %v673_v27 = vadd.f32 %v641_v29, %v573_v62  ;;  %v941_v8 = vmul.f32 %v2341_v2, %v2248_v48 }
  0x41   : > { %v1827_v13 = vmul.f32 -1.442695, %v2389_v7  ;;  %v1828_v14 = vmul.f32 -1.442695, %v2392_v20  ;;  %v972_v16 = vadd.f32 %v940_v4, %v872_v26  ;;  %v1042_v17 = vmul.f32 %v2251_v49, %v2398_v11 }
  0x42   : > { %v1272_v21 = vadd.f32 %v1240_v15, %v1172_v52  ;;  %v773_v12 = vadd.f32 %v741_v0, %v673_v27  ;;  %v1142_v22 = vmul.f32 %v2259_v53, %v2404_v18  ;;  %v1242_v23 = vmul.f32 %v2242_v46, %v2406_v19 }
  0x43   : > { %1889 = vpow2.f32 %v1827_v13  ;;  %v1073_v3 = vadd.f32 %v1041_v35, %v972_v16  ;;  %v442_v28 = vmul.f32 %v2312_v37, %v2216_v36  ;;  %v542_v24 = vmul.f32 %v2314_v38, %v2225_v40  ;;  %v2425_v37 = vld [vmem:[#allocation2 + $0x78] sm:$0xff]  ;;  %v2462_v16 = vld [vmem:[#allocation2 + $0x82] sm:$0xff] }
  0x44   : > { %1891 = vpow2.f32 %v1828_v14  ;;  %v2417_v31 = vadd.f32 %v2358_v63, %v1272_v21  ;;  %v873_v15 = vadd.f32 %v841_v30, %v773_v12  ;;  %v642_v32 = vmul.f32 %v2320_v50, %v2228_v41  ;;  %v2432_v50 = vld [vmem:[#allocation2 + $0x79] sm:$0xff]  ;;  %v2460_v14 = vld [vmem:[#allocation2 + $0x81] sm:$0xff] }
  0x45   : > { %v1173_v4 = vadd.f32 %v1141_v39, %v1073_v3  ;;  %v574_v33 = vadd.f32 %v542_v24, %v442_v28  ;;  %v742_v34 = vmul.f32 %v2362_v5, %v2231_v42  ;;  %v842_v35 = vmul.f32 %v2364_v9, %v2245_v47  ;;  %v2434_v39 = vld [vmem:[#allocation2 + $0x7a] sm:$0xff] }
  0x46   : > { %v1829_v38 = vmul.f32 -1.442695, %v2417_v31  ;;  %v973_v25 = vadd.f32 %v941_v8, %v873_v15  ;;  %v942_v44 = vmul.f32 %v2371_v43, %v2248_v48  ;;  %v1043_v51 = vmul.f32 %v2251_v49, %v2425_v37 }
  0x47   : > { %v1273_v56 = vadd.f32 %v1241_v54, %v1173_v4  ;;  %v674_v10 = vadd.f32 %v642_v32, %v574_v33  ;;  %v1143_v57 = vmul.f32 %v2259_v53, %v2432_v50  ;;  %v1243_v58 = vmul.f32 %v2242_v46, %v2434_v39 }
  0x48   : > { %1893 = vpow2.f32 %v1829_v38  ;;  %v1074_v59 = vadd.f32 %v1042_v17, %v973_v25  ;;  %v443_v60 = vmul.f32 %v2333_v1, %v2216_v36  ;;  %v543_v29 = vmul.f32 %v2335_v6, %v2225_v40  ;;  %v2455_v6 = vld [vmem:[#allocation2 + $0x80] sm:$0xff] }
  0x49   : > { %v2445_v45 = vadd.f32 %v2358_v63, %v1273_v56  ;;  %v774_v61 = vadd.f32 %v742_v34, %v674_v10  ;;  %v643_v54 = vmul.f32 %v2341_v2, %v2228_v41  ;;  %v743_v62 = vmul.f32 %v2398_v11, %v2231_v42 }
  0x4a   : > { %v1888_v0 = vpop.eup %1887  ;;  %v1174_v26 = vadd.f32 %v1142_v22, %v1074_v59  ;;  %v575_v30 = vadd.f32 %v543_v29, %v443_v60  ;;  %v843_v52 = vmul.f32 %v2404_v18, %v2245_v47  ;;  %v943_v1 = vmul.f32 %v2406_v19, %v2248_v48  ;;  %v2482_v60 = vld [vmem:[#allocation2 + $0x90] sm:$0xff] }
  0x4b   : > { %v1436_v27 = vadd.f32 1.0, %v1888_v0  ;;  %v1830_v8 = vmul.f32 -1.442695, %v2445_v45  ;;  %v874_v13 = vadd.f32 %v842_v35, %v774_v61  ;;  %v1044_v2 = vmul.f32 %v2251_v49, %v2455_v6 }
  0x4c   : > { %v1274_v17 = vadd.f32 %v1242_v23, %v1174_v26  ;;  %v675_v21 = vadd.f32 %v643_v54, %v575_v30  ;;  %v1144_v12 = vmul.f32 %v2259_v53, %v2460_v14  ;;  %v1244_v22 = vmul.f32 %v2242_v46, %v2462_v16  ;;  %v2488_v54 = vld [vmem:[#allocation2 + $0x91] sm:$0xff] }
  0x4d   : > { %v1890_v3 = vpop.eup %1889  ;;  %1895 = vrcp.f32 %v1436_v27  ;;  %v974_v28 = vadd.f32 %v942_v44, %v874_v13  ;;  %v444_v24 = vmul.f32 %v2362_v5, %v2216_v36  ;;  %v544_v15 = vmul.f32 %v2364_v9, %v2225_v40  ;;  %v2492_v30 = vld [vmem:[#allocation2 + $0x92] sm:$0xff] }
  0x4e   : > { %v1892_v32 = vpop.eup %1891  ;;  %v1437_v4 = vadd.f32 1.0, %v1890_v3  ;;  %1897 = vpow2.f32 %v1830_v8  ;;  %v2473_v23 = vadd.f32 %v2358_v63, %v1274_v17  ;;  %v775_v33 = vadd.f32 %v743_v62, %v675_v21 }
  0x4f   : > { %v1438_v34 = vadd.f32 1.0, %v1892_v32  ;;  %v1075_v35 = vadd.f32 %v1043_v51, %v974_v28  ;;  %v576_v38 = vadd.f32 %v544_v15, %v444_v24  ;;  %v644_v25 = vmul.f32 %v2371_v43, %v2228_v41  ;;  %v2523_v32 = vld [vmem:[#allocation2 + $0x99] sm:$0xff] }
  0x50   : > { %1899 = vrcp.f32 %v1437_v4  ;;  %v1831_v44 = vmul.f32 -1.442695, %v2473_v23  ;;  %v875_v5 = vadd.f32 %v843_v52, %v775_v33  ;;  %v744_v9 = vmul.f32 %v2425_v37, %v2231_v42 }
  0x51   : > { %1901 = vrcp.f32 %v1438_v34  ;;  %v1175_v56 = vadd.f32 %v1143_v57, %v1075_v35  ;;  %v676_v10 = vadd.f32 %v644_v25, %v576_v38  ;;  %v844_v59 = vmul.f32 %v2432_v50, %v2245_v47  ;;  %v2528_v25 = vld [vmem:[#allocation2 + $0x9a] sm:$0xff] }
  0x52   : > { %v1894_v51 = vpop.eup %1893  ;;  %1903 = vpow2.f32 %v1831_v44  ;;  %v975_v29 = vadd.f32 %v943_v1, %v875_v5  ;;  %v944_v43 = vmul.f32 %v2434_v39, %v2248_v48  ;;  %v1045_v61 = vmul.f32 %v2251_v49, %v2482_v60 }
  0x53   : > { %v1439_v62 = vadd.f32 1.0, %v1894_v51  ;;  %v1275_v0 = vadd.f32 %v1243_v58, %v1175_v56  ;;  %v776_v57 = vadd.f32 %v744_v9, %v676_v10  ;;  %v1145_v26 = vmul.f32 %v2259_v53, %v2488_v54 }
  0x54   : > { %v1076_v52 = vadd.f32 %v1044_v2, %v975_v29  ;;  %v1245_v1 = vmul.f32 %v2242_v46, %v2492_v30  ;;  %v445_v27 = vmul.f32 %v2398_v11, %v2216_v36  ;;  %v545_v8 = vmul.f32 %v2404_v18, %v2225_v40  ;;  %v2509_v11 = vld [vmem:[#allocation2 + $0x98] sm:$0xff] }
  0x55   : > { %1905 = vrcp.f32 %v1439_v62  ;;  %v2501_v58 = vadd.f32 %v2358_v63, %v1275_v0  ;;  %v876_v13 = vadd.f32 %v844_v59, %v776_v57  ;;  %v645_v17 = vmul.f32 %v2406_v19, %v2228_v41 }
  0x56   : > { %v1176_v21 = vadd.f32 %v1144_v12, %v1076_v52  ;;  %v577_v3 = vadd.f32 %v545_v8, %v445_v27  ;;  %v745_v2 = vmul.f32 %v2455_v6, %v2231_v42  ;;  %v845_v28 = vmul.f32 %v2460_v14, %v2245_v47 }
  0x57   : > { %v1896_v24 = vpop.eup %1895  ;;  %v1832_v18 = vmul.f32 -1.442695, %v2501_v58  ;;  %v976_v19 = vadd.f32 %v944_v43, %v876_v13  ;;  %v945_v12 = vmul.f32 %v2462_v16, %v2248_v48  ;;  %v1046_v15 = vmul.f32 %v2251_v49, %v2509_v11 }
  0x58   : > { %v1898_v4 = vpop.eup %1897  ;;  %v1532_v33 = vmul.f32 %v1896_v24, %v2376_v55  ;;  %v1276_v34 = vadd.f32 %v1244_v22, %v1176_v21  ;;  %v677_v35 = vadd.f32 %v645_v17, %v577_v3  ;;  %v1146_v38 = vmul.f32 %v2259_v53, %v2523_v32 }
  0x59   : > { %v1440_v44 = vadd.f32 1.0, %v1898_v4  ;;  %1907 = vpow2.f32 %v1832_v18  ;;  %v1077_v5 = vadd.f32 %v1045_v61, %v976_v19  ;;  %v1246_v9 = vmul.f32 %v2242_v46, %v2528_v25  ;;  %v2564_v4 = vld [vmem:[#allocation2 + $0xa8] sm:$0xff] }
  0x5a   : > { %v1900_v56 = vpop.eup %1899  ;;  %1564 = vst.msk [vmem:[%s2516_s5] sm:$0xff] %vm277_vm0, %v1532_v33  ;;  %v1596_v10 = vsel %vm277_vm0, %v1532_v33, 0.0  ;;  %v2536_v55 = vadd.f32 %v2358_v63, %v1276_v34  ;;  %v777_v22 = vadd.f32 %v745_v2, %v677_v35  ;;  %v446_v59 = vmul.f32 %v2425_v37, %v2216_v36 }
  0x5b   : > { %v1902_v51 = vpop.eup %1901  ;;  %v1533_v29 = vmul.f32 %v1900_v56, %v2389_v7  ;;  %1909 = vrcp.f32 %v1440_v44  ;;  %v1177_v43 = vadd.f32 %v1145_v26, %v1077_v5  ;;  %v546_v61 = vmul.f32 %v2432_v50, %v2225_v40 }
  0x5c   : > { %v1904_v62 = vpop.eup %1903  ;;  %v1534_v0 = vmul.f32 %v1902_v51, %v2392_v20  ;;  %v1833_v57 = vmul.f32 -1.442695, %v2536_v55  ;;  %v877_v52 = vadd.f32 %v845_v28, %v777_v22  ;;  %v646_v27 = vmul.f32 %v2434_v39, %v2228_v41  ;;  %v2573_v22 = vld [vmem:[#allocation2 + $0xa9] sm:$0xff] }
  0x5d   : > { %1565 = vst.msk [vmem:[%s2516_s5 + $0x8] sm:$0xff] %vm277_vm0, %v1533_v29  ;;  %v1597_v37 = vsel %vm277_vm0, %v1533_v29, 0.0  ;;  %v1441_v8 = vadd.f32 1.0, %v1904_v62  ;;  %v1277_v7 = vadd.f32 %v1245_v1, %v1177_v43  ;;  %v578_v13 = vadd.f32 %v546_v61, %v446_v59  ;;  %v2575_v59 = vld [vmem:[#allocation2 + $0xaa] sm:$0xff] }
  0x5e   : > { %v1598_v26 = vadd.f32 %v1597_v37, %v1596_v10  ;;  %1566 = vst.msk [vmem:[%s2516_s5 + $0x10] sm:$0xff] %vm277_vm0, %v1534_v0  ;;  %v1599_v50 = vsel %vm277_vm0, %v1534_v0, 0.0  ;;  %1911 = vpow2.f32 %v1833_v57  ;;  %v977_v20 = vadd.f32 %v945_v12, %v877_v52 }
  0x5f   : > { %v1906_v17 = vpop.eup %1905  ;;  %1913 = vrcp.f32 %v1441_v8  ;;  %v2554_v21 = vadd.f32 %v2358_v63, %v1277_v7  ;;  %v678_v39 = vadd.f32 %v646_v27, %v578_v13  ;;  %v746_v3 = vmul.f32 %v2482_v60, %v2231_v42 }
  0x60   : > { %v1600_v2 = vadd.f32 %v1599_v50, %v1598_v26  ;;  %v1535_v1 = vmul.f32 %v1906_v17, %v2417_v31  ;;  %v1078_v28 = vadd.f32 %v1046_v15, %v977_v20  ;;  %v846_v24 = vmul.f32 %v2488_v54, %v2245_v47 }
  0x61   : > { %v1834_v18 = vmul.f32 -1.442695, %v2554_v21  ;;  %v778_v19 = vadd.f32 %v746_v3, %v678_v39  ;;  %v946_v12 = vmul.f32 %v2492_v30, %v2248_v48  ;;  %v1047_v31 = vmul.f32 %v2251_v49, %v2564_v4 }
  0x62   : > { %1567 = vst.msk [vmem:[%s2516_s5 + $0x18] sm:$0xff] %vm277_vm0, %v1535_v1  ;;  %v1601_v33 = vsel %vm277_vm0, %v1535_v1, 0.0  ;;  %v1178_v34 = vadd.f32 %v1146_v38, %v1078_v28  ;;  %v447_v5 = vmul.f32 %v2455_v6, %v2216_v36  ;;  %v547_v51 = vmul.f32 %v2460_v14, %v2225_v40 }
  0x63   : > { %v1908_v15 = vpop.eup %1907  ;;  %v1602_v35 = vadd.f32 %v1601_v33, %v1600_v2  ;;  %1915 = vpow2.f32 %v1834_v18  ;;  %v878_v44 = vadd.f32 %v846_v24, %v778_v19  ;;  %v647_v38 = vmul.f32 %v2462_v16, %v2228_v41  ;;  %v2591_v16 = vld [vmem:[#allocation2 + $0xb0] sm:$0xff] }
  0x64   : > { %v1442_v56 = vadd.f32 1.0, %v1908_v15  ;;  %v1278_v10 = vadd.f32 %v1246_v9, %v1178_v34  ;;  %v1147_v61 = vmul.f32 %v2259_v53, %v2573_v22  ;;  %v1247_v6 = vmul.f32 %v2242_v46, %v2575_v59  ;;  %v2610_v18 = vld [vmem:[#allocation2 + $0xb1] sm:$0xff] }
  0x65   : > { %v1910_v29 = vpop.eup %1909  ;;  %v978_v43 = vadd.f32 %v946_v12, %v878_v44  ;;  %v747_v9 = vmul.f32 %v2509_v11, %v2231_v42  ;;  %v579_v0 = vadd.f32 %v547_v51, %v447_v5  ;;  %v847_v52 = vmul.f32 %v2523_v32, %v2245_v47  ;;  %v2628_v5 = vld [vmem:[#allocation2 + $0xc0] sm:$0xff] }
  0x66   : > { %v1536_v62 = vmul.f32 %v1910_v29, %v2445_v45  ;;  %1917 = vrcp.f32 %v1442_v56  ;;  %v2589_v14 = vadd.f32 %v2358_v63, %v1278_v10  ;;  %v947_v27 = vmul.f32 %v2528_v25, %v2248_v48 }
  0x67   : > { %v1079_v57 = vadd.f32 %v1047_v31, %v978_v43  ;;  %v1048_v37 = vmul.f32 %v2251_v49, %v2591_v16  ;;  %v679_v13 = vadd.f32 %v647_v38, %v579_v0  ;;  %v448_v26 = vmul.f32 %v2482_v60, %v2216_v36  ;;  %v2612_v60 = vld [vmem:[#allocation2 + $0xb2] sm:$0xff] }
  0x68   : > { %v1912_v8 = vpop.eup %1911  ;;  %1568 = vst.msk [vmem:[%s2516_s5 + $0x20] sm:$0xff] %vm277_vm0, %v1536_v62  ;;  %v1603_v45 = vsel %vm277_vm0, %v1536_v62, 0.0  ;;  %v1835_v7 = vmul.f32 -1.442695, %v2589_v14  ;;  %v548_v3 = vmul.f32 %v2488_v54, %v2225_v40  ;;  %v648_v28 = vmul.f32 %v2492_v30, %v2228_v41 }
  0x69   : > { %v1914_v50 = vpop.eup %1913  ;;  %v1604_v20 = vadd.f32 %v1603_v45, %v1602_v35  ;;  %v1443_v17 = vadd.f32 1.0, %v1912_v8  ;;  %v1179_v39 = vadd.f32 %v1147_v61, %v1079_v57  ;;  %v779_v1 = vadd.f32 %v747_v9, %v679_v13  ;;  %v2644_v8 = vld [vmem:[#allocation2 + $0xc1] sm:$0xff] }
  0x6a   : > { %v1537_v2 = vmul.f32 %v1914_v50, %v2473_v23  ;;  %1919 = vpow2.f32 %v1835_v7  ;;  %v580_v19 = vadd.f32 %v548_v3, %v448_v26  ;;  %v748_v12 = vmul.f32 %v2564_v4, %v2231_v42 }
  0x6b   : > { %1921 = vrcp.f32 %v1443_v17  ;;  %v1279_v24 = vadd.f32 %v1247_v6, %v1179_v39  ;;  %v879_v23 = vadd.f32 %v847_v52, %v779_v1  ;;  %v1148_v33 = vmul.f32 %v2259_v53, %v2610_v18 }
  0x6c   : > { %1569 = vst.msk [vmem:[%s2516_s5 + $0x28] sm:$0xff] %vm277_vm0, %v1537_v2  ;;  %v1605_v54 = vsel %vm277_vm0, %v1537_v2, 0.0  ;;  %v1248_v30 = vmul.f32 %v2242_v46, %v2612_v60  ;;  %v680_v35 = vadd.f32 %v648_v28, %v580_v19  ;;  %v848_v44 = vmul.f32 %v2573_v22, %v2245_v47 }
  0x6d   : > { %v1916_v34 = vpop.eup %1915  ;;  %v1606_v31 = vadd.f32 %v1605_v54, %v1604_v20  ;;  %v2624_v15 = vadd.f32 %v2358_v63, %v1279_v24  ;;  %v979_v10 = vadd.f32 %v947_v27, %v879_v23  ;;  %v948_v51 = vmul.f32 %v2575_v59, %v2248_v48  ;;  %v2659_v20 = vld [vmem:[#allocation2 + $0xc8] sm:$0xff] }
  0x6e   : > { %v1444_v56 = vadd.f32 1.0, %v1916_v34  ;;  %v1049_v38 = vmul.f32 %v2251_v49, %v2628_v5  ;;  %v780_v43 = vadd.f32 %v748_v12, %v680_v35  ;;  %v449_v61 = vmul.f32 %v2509_v11, %v2216_v36  ;;  %v2646_v11 = vld [vmem:[#allocation2 + $0xc2] sm:$0xff] }
  0x6f   : > { %v1836_v29 = vmul.f32 -1.442695, %v2624_v15  ;;  %v549_v6 = vmul.f32 %v2523_v32, %v2225_v40  ;;  %v1080_v62 = vadd.f32 %v1048_v37, %v979_v10  ;;  %v649_v0 = vmul.f32 %v2528_v25, %v2228_v41  ;;  %v2675_v35 = vld [vmem:[#allocation2 + $0xc9] sm:$0xff] }
  0x70   : > { %v1918_v9 = vpop.eup %1917  ;;  %1923 = vrcp.f32 %v1444_v56  ;;  %v749_v57 = vmul.f32 %v2591_v16, %v2231_v42  ;;  %v880_v27 = vadd.f32 %v848_v44, %v780_v43  ;;  %v1149_v7 = vmul.f32 %v2259_v53, %v2644_v8 }
  0x71   : > { %v1538_v52 = vmul.f32 %v1918_v9, %v2501_v58  ;;  %1925 = vpow2.f32 %v1836_v29  ;;  %v581_v45 = vadd.f32 %v549_v6, %v449_v61  ;;  %v1180_v32 = vadd.f32 %v1148_v33, %v1080_v62  ;;  %v2685_v29 = vld [vmem:[#allocation2 + $0xca] sm:$0xff]  ;;  %v2687_v61 = vld [vmem:[#allocation2 + $0xd8] sm:$0xff] }
  0x72   : > { %v1249_v37 = vmul.f32 %v2242_v46, %v2646_v11  ;;  %v849_v25 = vmul.f32 %v2610_v18, %v2245_v47  ;;  %v980_v13 = vadd.f32 %v948_v51, %v880_v27  ;;  %v949_v50 = vmul.f32 %v2612_v60, %v2248_v48 }
  0x73   : > { %1570 = vst.msk [vmem:[%s2516_s5 + $0x30] sm:$0xff] %vm277_vm0, %v1538_v52  ;;  %v1607_v58 = vsel %vm277_vm0, %v1538_v52, 0.0  ;;  %v681_v26 = vadd.f32 %v649_v0, %v581_v45  ;;  %v1280_v3 = vadd.f32 %v1248_v30, %v1180_v32  ;;  %v1050_v2 = vmul.f32 %v2251_v49, %v2659_v20 }
  0x74   : > { %v1920_v17 = vpop.eup %1919  ;;  %v1608_v39 = vadd.f32 %v1607_v58, %v1606_v31  ;;  %v450_v1 = vmul.f32 %v2564_v4, %v2216_v36  ;;  %v1081_v19 = vadd.f32 %v1049_v38, %v980_v13  ;;  %v550_v54 = vmul.f32 %v2573_v22, %v2225_v40 }
  0x75   : > { %v1922_v28 = vpop.eup %1921  ;;  %v1445_v24 = vadd.f32 1.0, %v1920_v17  ;;  %v781_v12 = vadd.f32 %v749_v57, %v681_v26  ;;  %v2669_v33 = vadd.f32 %v2358_v63, %v1280_v3  ;;  %v650_v30 = vmul.f32 %v2575_v59, %v2228_v41 }
  0x76   : > { %v1539_v23 = vmul.f32 %v1922_v28, %v2536_v55  ;;  %v750_v34 = vmul.f32 %v2628_v5, %v2231_v42  ;;  %v1181_v4 = vadd.f32 %v1149_v7, %v1081_v19  ;;  %v582_v44 = vadd.f32 %v550_v54, %v450_v1  ;;  %v2715_v1 = vld [vmem:[#allocation2 + $0xda] sm:$0xff] }
  0x77   : > { %1927 = vrcp.f32 %v1445_v24  ;;  %v881_v31 = vadd.f32 %v849_v25, %v781_v12  ;;  %v1837_v55 = vmul.f32 -1.442695, %v2669_v33  ;;  %v1150_v56 = vmul.f32 %v2259_v53, %v2675_v35  ;;  %v2723_v54 = vld [vmem:[#allocation2 + $0xe0] sm:$0xff] }
  0x78   : > { %1571 = vst.msk [vmem:[%s2516_s5 + $0x38] sm:$0xff] %vm277_vm0, %v1539_v23  ;;  %v1609_v22 = vsel %vm277_vm0, %v1539_v23, 0.0  ;;  %v850_v59 = vmul.f32 %v2644_v8, %v2245_v47  ;;  %v1281_v51 = vadd.f32 %v1249_v37, %v1181_v4  ;;  %v682_v43 = vadd.f32 %v650_v30, %v582_v44 }
  0x79   : > { %v1610_v10 = vadd.f32 %v1609_v22, %v1608_v39  ;;  %v981_v38 = vadd.f32 %v949_v50, %v881_v31  ;;  %1929 = vpow2.f32 %v1837_v55  ;;  %v1250_v9 = vmul.f32 %v2242_v46, %v2685_v29  ;;  %v2709_v39 = vld [vmem:[#allocation2 + $0xd9] sm:$0xff]  ;;  %v2733_v55 = vld [vmem:[#allocation2 + $0xe1] sm:$0xff] }
  0x7a   : > { %v1924_v6 = vpop.eup %1923  ;;  %v950_v62 = vmul.f32 %v2646_v11, %v2248_v48  ;;  %v1051_v0 = vmul.f32 %v2251_v49, %v2687_v61  ;;  %v2697_v27 = vadd.f32 %v2358_v63, %v1281_v51  ;;  %v782_v32 = vadd.f32 %v750_v34, %v682_v43 }
  0x7b   : > { %v1926_v57 = vpop.eup %1925  ;;  %v1540_v52 = vmul.f32 %v1924_v6, %v2554_v21  ;;  %v1082_v45 = vadd.f32 %v1050_v2, %v981_v38  ;;  %v451_v37 = vmul.f32 %v2591_v16, %v2216_v36  ;;  %v551_v25 = vmul.f32 %v2610_v18, %v2225_v40 }
  0x7c   : > { %v1446_v7 = vadd.f32 1.0, %v1926_v57  ;;  %v651_v58 = vmul.f32 %v2612_v60, %v2228_v41  ;;  %v1838_v21 = vmul.f32 -1.442695, %v2697_v27  ;;  %v882_v50 = vadd.f32 %v850_v59, %v782_v32 }
  0x7d   : > { %1572 = vst.msk [vmem:[%s2516_s5 + $0x40] sm:$0xff] %vm277_vm0, %v1540_v52  ;;  %v1611_v13 = vsel %vm277_vm0, %v1540_v52, 0.0  ;;  %v1182_v26 = vadd.f32 %v1150_v56, %v1082_v45  ;;  %v583_v3 = vadd.f32 %v551_v25, %v451_v37  ;;  %v751_v16 = vmul.f32 %v2659_v20, %v2231_v42  ;;  %v2735_v56 = vld [vmem:[#allocation2 + $0xe2] sm:$0xff]  ;;  %v2755_v37 = vld [vmem:[#allocation2 + $0xf0] sm:$0xff] }
  0x7e   : > { %v1612_v17 = vadd.f32 %v1611_v13, %v1610_v10  ;;  %1931 = vrcp.f32 %v1446_v7  ;;  %v982_v2 = vadd.f32 %v950_v62, %v882_v50  ;;  %v1151_v60 = vmul.f32 %v2259_v53, %v2709_v39  ;;  %v2762_v13 = vld [vmem:[#allocation2 + $0xf1] sm:$0xff] }
  0x7f   : > { %1933 = vpow2.f32 %v1838_v21  ;;  %v1282_v18 = vadd.f32 %v1250_v9, %v1182_v26  ;;  %v1251_v28 = vmul.f32 %v2242_v46, %v2715_v1  ;;  %v683_v24 = vadd.f32 %v651_v58, %v583_v3 }
  0x80   : > { %v851_v19 = vmul.f32 %v2675_v35, %v2245_v47  ;;  %v951_v12 = vmul.f32 %v2685_v29, %v2248_v48  ;;  %v1083_v34 = vadd.f32 %v1051_v0, %v982_v2  ;;  %v1052_v4 = vmul.f32 %v2251_v49, %v2723_v54 }
  0x81   : > { %v1928_v23 = vpop.eup %1927  ;;  %v2726_v30 = vadd.f32 %v2358_v63, %v1282_v18  ;;  %v452_v31 = vmul.f32 %v2628_v5, %v2216_v36  ;;  %v783_v22 = vadd.f32 %v751_v16, %v683_v24  ;;  %v552_v59 = vmul.f32 %v2644_v8, %v2225_v40  ;;  %v2768_v16 = vld [vmem:[#allocation2 + $0xf2] sm:$0xff] }
  0x82   : > { %v1541_v44 = vmul.f32 %v1928_v23, %v2589_v14  ;;  %v652_v10 = vmul.f32 %v2646_v11, %v2228_v41  ;;  %v1183_v38 = vadd.f32 %v1151_v60, %v1083_v34  ;;  %v1152_v43 = vmul.f32 %v2259_v53, %v2733_v55 }
  0x83   : > { %v1839_v51 = vmul.f32 -1.442695, %v2726_v30  ;;  %v1252_v14 = vmul.f32 %v2242_v46, %v2735_v56  ;;  %v1930_v5 = vpop.eup %1929  ;;  %v883_v9 = vadd.f32 %v851_v19, %v783_v22  ;;  %v584_v62 = vadd.f32 %v552_v59, %v452_v31 }
  0x84   : > { %1573 = vst.msk [vmem:[%s2516_s5 + $0x48] sm:$0xff] %vm277_vm0, %v1541_v44  ;;  %v1613_v6 = vsel %vm277_vm0, %v1541_v44, 0.0  ;;  %v752_v8 = vmul.f32 %v2687_v61, %v2231_v42  ;;  %v1447_v0 = vadd.f32 1.0, %v1930_v5  ;;  %v1283_v57 = vadd.f32 %v1251_v28, %v1183_v38  ;;  %v2796_v5 = vld [vmem:[#allocation2 + $0xf9] sm:$0xff] }
  0x85   : > { %v1614_v11 = vadd.f32 %v1613_v6, %v1612_v17  ;;  %1935 = vpow2.f32 %v1839_v51  ;;  %v983_v52 = vadd.f32 %v951_v12, %v883_v9  ;;  %v684_v45 = vadd.f32 %v652_v10, %v584_v62 }
  0x86   : > { %v852_v32 = vmul.f32 %v2709_v39, %v2245_v47  ;;  %v952_v7 = vmul.f32 %v2715_v1, %v2248_v48  ;;  %1937 = vrcp.f32 %v1447_v0  ;;  %v2758_v25 = vadd.f32 %v2358_v63, %v1283_v57 }
  0x87   : > { %v1053_v58 = vmul.f32 %v2251_v49, %v2755_v37  ;;  %v453_v21 = vmul.f32 %v2659_v20, %v2216_v36  ;;  %v1084_v50 = vadd.f32 %v1052_v4, %v983_v52  ;;  %v784_v17 = vadd.f32 %v752_v8, %v684_v45 }
  0x88   : > { %v1932_v26 = vpop.eup %1931  ;;  %v1153_v3 = vmul.f32 %v2259_v53, %v2762_v13  ;;  %v553_v18 = vmul.f32 %v2675_v35, %v2225_v40  ;;  %v1840_v28 = vmul.f32 -1.442695, %v2758_v25  ;;  %v1253_v20 = vmul.f32 %v2242_v46, %v2768_v16 }
  0x89   : > { %v1934_v2 = vpop.eup %1933  ;;  %v1542_v60 = vmul.f32 %v1932_v26, %v2624_v15  ;;  %v653_v24 = vmul.f32 %v2685_v29, %v2228_v41  ;;  %v1184_v12 = vadd.f32 %v1152_v43, %v1084_v50  ;;  %v884_v23 = vadd.f32 %v852_v32, %v784_v17  ;;  %v2785_v29 = vld [vmem:[#allocation2 + $0xf8] sm:$0xff]  ;;  %v2816_v32 = vld [vmem:[#allocation2 + $0x108] sm:$0xff] }
  0x8a   : > { %v1448_v19 = vadd.f32 1.0, %v1934_v2  ;;  %v585_v34 = vadd.f32 %v553_v18, %v453_v21  ;;  %1939 = vpow2.f32 %v1840_v28  ;;  %v753_v15 = vmul.f32 %v2723_v54, %v2231_v42 }
  0x8b   : > { %1574 = vst.msk [vmem:[%s2516_s5 + $0x50] sm:$0xff] %vm277_vm0, %v1542_v60  ;;  %v1615_v4 = vsel %vm277_vm0, %v1542_v60, 0.0  ;;  %v853_v35 = vmul.f32 %v2733_v55, %v2245_v47  ;;  %v1284_v46 = vadd.f32 %v1252_v14, %v1184_v12  ;;  %v984_v44 = vadd.f32 %v952_v7, %v884_v23  ;;  %v2798_v14 = vld [vmem:[#allocation2 + $0xfa] sm:$0xff] }
  0x8c   : > { %v1616_v31 = vadd.f32 %v1615_v4, %v1614_v11  ;;  %1941 = vrcp.f32 %v1448_v19  ;;  %v685_v22 = vadd.f32 %v653_v24, %v585_v34  ;;  %v953_v59 = vmul.f32 %v2735_v56, %v2248_v48  ;;  %v2837_v4 = vld [vmem:[#allocation2 + $0x109] sm:$0xff] }
  0x8d   : > { %v1054_v10 = vmul.f32 %v2251_v49, %v2785_v29  ;;  %v454_v51 = vmul.f32 %v2687_v61, %v2216_v36  ;;  %v2794_v38 = vadd.f32 %v2358_v63, %v1284_v46  ;;  %v1085_v43 = vadd.f32 %v1053_v58, %v984_v44  ;;  %v2809_v61 = vld [vmem:[%s3288_s1 + $0x8] ss:$0 sm:$0xff] }
  0x8e   : > { %v554_v6 = vmul.f32 %v2709_v39, %v2225_v40  ;;  %v654_v9 = vmul.f32 %v2715_v1, %v2228_v41  ;;  %v785_v8 = vadd.f32 %v753_v15, %v685_v22  ;;  %v1154_v11 = vmul.f32 %v2259_v53, %v2796_v5 }
  0x8f   : > { %v1936_v62 = vpop.eup %1935  ;;  %v1254_v0 = vmul.f32 %v2809_v61, %v2798_v14  ;;  %v754_v57 = vmul.f32 %v2755_v37, %v2231_v42  ;;  %v1841_v52 = vmul.f32 -1.442695, %v2794_v38  ;;  %v1185_v1 = vadd.f32 %v1153_v3, %v1085_v43 }
  0x90   : > { %v1449_v39 = vadd.f32 1.0, %v1936_v62  ;;  %v586_v45 = vadd.f32 %v554_v6, %v454_v51  ;;  %v1938_v7 = vpop.eup %1937  ;;  %v885_v58 = vadd.f32 %v853_v35, %v785_v8  ;;  %v854_v21 = vmul.f32 %v2762_v13, %v2245_v47 }
  0x91   : > { %v954_v26 = vmul.f32 %v2768_v16, %v2248_v48  ;;  %v1055_v50 = vmul.f32 %v2251_v49, %v2816_v32  ;;  %v1543_v17 = vmul.f32 %v1938_v7, %v2669_v33  ;;  %v1285_v18 = vadd.f32 %v1253_v20, %v1185_v1 }
  0x92   : > { %1943 = vrcp.f32 %v1449_v39  ;;  %v686_v3 = vadd.f32 %v654_v9, %v586_v45  ;;  %v985_v2 = vadd.f32 %v953_v59, %v885_v58  ;;  %v455_v60 = vmul.f32 %v2723_v54, %v2216_v36  ;;  %v2865_v58 = vld [vmem:[#allocation2 + $0x111] sm:$0xff] }
  0x93   : > { %1945 = vpow2.f32 %v1841_v52  ;;  %v555_v28 = vmul.f32 %v2733_v55, %v2225_v40  ;;  %1575 = vst.msk [vmem:[%s2516_s5 + $0x58] sm:$0xff] %vm277_vm0, %v1543_v17  ;;  %v1617_v24 = vsel %vm277_vm0, %v1543_v17, 0.0  ;;  %v2833_v19 = vadd.f32 %v2358_v63, %v1285_v18 }
  0x94   : > { %v786_v12 = vadd.f32 %v754_v57, %v686_v3  ;;  %v655_v33 = vmul.f32 %v2735_v56, %v2228_v41  ;;  %v1940_v20 = vpop.eup %1939  ;;  %v1618_v23 = vadd.f32 %v1617_v24, %v1616_v31  ;;  %v1086_v34 = vadd.f32 %v1054_v10, %v985_v2  ;;  %v2845_v31 = vld [vmem:[#allocation2 + $0x10a] sm:$0xff] }
  0x95   : > { %v587_v54 = vadd.f32 %v555_v28, %v455_v60  ;;  %v755_v55 = vmul.f32 %v2785_v29, %v2231_v42  ;;  %v1450_v35 = vadd.f32 1.0, %v1940_v20  ;;  %v1842_v46 = vmul.f32 -1.442695, %v2833_v19 }
  0x96   : > { %v1942_v15 = vpop.eup %1941  ;;  %v886_v44 = vadd.f32 %v854_v21, %v786_v12  ;;  %v1155_v22 = vmul.f32 %v2259_v53, %v2837_v4  ;;  %v1186_v59 = vadd.f32 %v1154_v11, %v1086_v34  ;;  %v855_v51 = vmul.f32 %v2796_v5, %v2245_v47  ;;  %v2856_v11 = vld [vmem:[#allocation2 + $0x110] sm:$0xff] }
  0x97   : > { %v1544_v56 = vmul.f32 %v1942_v15, %v2697_v27  ;;  %v687_v10 = vadd.f32 %v655_v33, %v587_v54  ;;  %1947 = vrcp.f32 %v1450_v35  ;;  %v1255_v6 = vmul.f32 %v2809_v61, %v2845_v31  ;;  %v2867_v21 = vld [vmem:[#allocation2 + $0x112] sm:$0xff] }
  0x98   : > { %v986_v43 = vadd.f32 %v954_v26, %v886_v44  ;;  %v955_v9 = vmul.f32 %v2798_v14, %v2248_v48  ;;  %1949 = vpow2.f32 %v1842_v46  ;;  %v1286_v27 = vadd.f32 %v1254_v0, %v1186_v59 }
  0x99   : > { %1576 = vst.msk [vmem:[%s2516_s5 + $0x60] sm:$0xff] %vm277_vm0, %v1544_v56  ;;  %v1619_v62 = vsel %vm277_vm0, %v1544_v56, 0.0  ;;  %v787_v8 = vadd.f32 %v755_v55, %v687_v10  ;;  %v1056_v52 = vmul.f32 %v2251_v49, %v2856_v11  ;;  %v456_v1 = vmul.f32 %v2755_v37, %v2216_v36 }
  0x9a   : > { %v1620_v57 = vadd.f32 %v1619_v62, %v1618_v23  ;;  %v1087_v39 = vadd.f32 %v1055_v50, %v986_v43  ;;  %v2863_v45 = vadd.f32 %v2358_v63, %v1286_v27  ;;  %v556_v0 = vmul.f32 %v2762_v13, %v2225_v40 }
  0x9b   : > { %v887_v7 = vadd.f32 %v855_v51, %v787_v8  ;;  %v656_v26 = vmul.f32 %v2768_v16, %v2228_v41  ;;  %v1156_v37 = vmul.f32 %v2259_v53, %v2865_v58  ;;  %v1256_v18 = vmul.f32 %v2809_v61, %v2867_v21  ;;  %v2909_v8 = vld [vmem:[#allocation2 + $0x122] sm:$0xff] }
  0x9c   : > { %v1944_v50 = vpop.eup %1943  ;;  %v1187_v17 = vadd.f32 %v1155_v22, %v1087_v39  ;;  %v756_v3 = vmul.f32 %v2816_v32, %v2231_v42  ;;  %v1843_v13 = vmul.f32 -1.442695, %v2863_v45  ;;  %v588_v24 = vadd.f32 %v556_v0, %v456_v1  ;;  %v2895_v22 = vld [vmem:[#allocation2 + $0x121] sm:$0xff] }
  0x9d   : > { %v1946_v2 = vpop.eup %1945  ;;  %v1545_v60 = vmul.f32 %v1944_v50, %v2726_v30  ;;  %v987_v28 = vadd.f32 %v955_v9, %v887_v7  ;;  %v856_v33 = vmul.f32 %v2837_v4, %v2245_v47  ;;  %v956_v20 = vmul.f32 %v2845_v31, %v2248_v48  ;;  %v2888_v30 = vld [vmem:[#allocation2 + $0x120] sm:$0xff] }
  0x9e   : > { %v1451_v12 = vadd.f32 1.0, %v1946_v2  ;;  %v1287_v16 = vadd.f32 %v1255_v6, %v1187_v17  ;;  %1951 = vpow2.f32 %v1843_v13  ;;  %v688_v54 = vadd.f32 %v656_v26, %v588_v24  ;;  %v2926_v26 = vld [vmem:[#allocation2 + $0x128] sm:$0xff] }
  0x9f   : > { %1577 = vst.msk [vmem:[%s2516_s5 + $0x68] sm:$0xff] %vm277_vm0, %v1545_v60  ;;  %v1621_v23 = vsel %vm277_vm0, %v1545_v60, 0.0  ;;  %v1088_v34 = vadd.f32 %v1056_v52, %v987_v28  ;;  %v1057_v35 = vmul.f32 %v2251_v49, %v2888_v30  ;;  %v457_v56 = vmul.f32 %v2785_v29, %v2216_v36  ;;  %v2933_v60 = vld [vmem:[#allocation2 + $0x129] sm:$0xff] }
  0xa0   : > { %v1622_v55 = vadd.f32 %v1621_v23, %v1620_v57  ;;  %1953 = vrcp.f32 %v1451_v12  ;;  %v2891_v15 = vadd.f32 %v2358_v63, %v1287_v16  ;;  %v788_v44 = vadd.f32 %v756_v3, %v688_v54  ;;  %v2935_v13 = vld [vmem:[#allocation2 + $0x12a] sm:$0xff] }
  0xa1   : > { %v1188_v46 = vadd.f32 %v1156_v37, %v1088_v34  ;;  %v557_v59 = vmul.f32 %v2796_v5, %v2225_v40  ;;  %v1948_v10 = vpop.eup %1947  ;;  %v1157_v63 = vmul.f32 %v2259_v53, %v2895_v22  ;;  %v657_v43 = vmul.f32 %v2798_v14, %v2228_v41 }
  0xa2   : > { %v1844_v51 = vmul.f32 -1.442695, %v2891_v15  ;;  %v757_v6 = vmul.f32 %v2856_v11, %v2231_v42  ;;  %v1950_v9 = vpop.eup %1949  ;;  %v1546_v62 = vmul.f32 %v1948_v10, %v2758_v25  ;;  %v888_v27 = vadd.f32 %v856_v33, %v788_v44  ;;  %v2921_v25 = vld [vmem:[%s3289_s2] ss:$0 sm:$0xff]  ;;  %v2953_v44 = vld [vmem:[#allocation2 + $0x138] sm:$0xff] }
  0xa3   : > { %v1288_v29 = vadd.f32 %v1256_v18, %v1188_v46  ;;  %v589_v5 = vadd.f32 %v557_v59, %v457_v56  ;;  %v1452_v57 = vadd.f32 1.0, %v1950_v9  ;;  %v1257_v39 = vmul.f32 %v2809_v61, %v2909_v8 }
  0xa4   : > { %1955 = vpow2.f32 %v1844_v51  ;;  %v857_v52 = vmul.f32 %v2865_v58, %v2245_v47  ;;  %1578 = vst.msk [vmem:[%s2516_s5 + $0x70] sm:$0xff] %vm277_vm0, %v1546_v62  ;;  %v1623_v14 = vsel %vm277_vm0, %v1546_v62, 0.0  ;;  %v988_v7 = vadd.f32 %v956_v20, %v888_v27 }
  0xa5   : > { %v2924_v1 = vadd.f32 %v2921_v25, %v1288_v29  ;;  %v689_v0 = vadd.f32 %v657_v43, %v589_v5  ;;  %v1624_v50 = vadd.f32 %v1623_v14, %v1622_v55  ;;  %1957 = vrcp.f32 %v1452_v57  ;;  %v2970_v57 = vld [vmem:[#allocation2 + $0x139] sm:$0xff] }
  0xa6   : > { %v957_v17 = vmul.f32 %v2867_v21, %v2248_v48  ;;  %v1058_v37 = vmul.f32 %v2251_v49, %v2926_v26  ;;  %v1089_v3 = vadd.f32 %v1057_v35, %v988_v7  ;;  %v458_v28 = vmul.f32 %v2816_v32, %v2216_v36 }
  0xa7   : > { %v1845_v18 = vmul.f32 -1.442695, %v2924_v1  ;;  %v789_v2 = vadd.f32 %v757_v6, %v689_v0  ;;  %v1158_v24 = vmul.f32 %v2259_v53, %v2933_v60  ;;  %v1258_v12 = vmul.f32 %v2809_v61, %v2935_v13  ;;  %v2977_v0 = vld [vmem:[#allocation2 + $0x13a] sm:$0xff] }
  0xa8   : > { %v558_v16 = vmul.f32 %v2837_v4, %v2225_v40  ;;  %v658_v33 = vmul.f32 %v2845_v31, %v2228_v41  ;;  %v1952_v20 = vpop.eup %1951  ;;  %v1189_v23 = vadd.f32 %v1157_v63, %v1089_v3  ;;  %v758_v32 = vmul.f32 %v2888_v30, %v2231_v42 }
  0xa9   : > { %1959 = vpow2.f32 %v1845_v18  ;;  %v889_v34 = vadd.f32 %v857_v52, %v789_v2  ;;  %v1453_v55 = vadd.f32 1.0, %v1952_v20  ;;  %v858_v46 = vmul.f32 %v2895_v22, %v2245_v47 }
  0xaa   : > { %v1954_v54 = vpop.eup %1953  ;;  %v590_v35 = vadd.f32 %v558_v16, %v458_v28  ;;  %v958_v4 = vmul.f32 %v2909_v8, %v2248_v48  ;;  %v1289_v56 = vadd.f32 %v1257_v39, %v1189_v23  ;;  %v1059_v10 = vmul.f32 %v2251_v49, %v2953_v44 }
  0xab   : > { %v1547_v31 = vmul.f32 %v1954_v54, %v2794_v38  ;;  %v989_v59 = vadd.f32 %v957_v17, %v889_v34  ;;  %1961 = vrcp.f32 %v1453_v55  ;;  %v459_v63 = vmul.f32 %v2856_v11, %v2216_v36 }
  0xac   : > { %v690_v51 = vadd.f32 %v658_v33, %v590_v35  ;;  %v559_v43 = vmul.f32 %v2865_v58, %v2225_v40  ;;  %v2966_v9 = vadd.f32 %v2921_v25, %v1289_v56  ;;  %v659_v62 = vmul.f32 %v2867_v21, %v2228_v41 }
  0xad   : > { %1579 = vst.msk [vmem:[%s2516_s5 + $0x78] sm:$0xff] %vm277_vm0, %v1547_v31  ;;  %v1625_v6 = vsel %vm277_vm0, %v1547_v31, 0.0  ;;  %v1090_v38 = vadd.f32 %v1058_v37, %v989_v59  ;;  %v759_v58 = vmul.f32 %v2926_v26, %v2231_v42  ;;  %v1159_v7 = vmul.f32 %v2259_v53, %v2970_v57  ;;  %v3003_v31 = vld [vmem:[#allocation2 + $0x141] sm:$0xff] }
  0xae   : > { %v1956_v29 = vpop.eup %1955  ;;  %v1626_v27 = vadd.f32 %v1625_v6, %v1624_v50  ;;  %v790_v5 = vadd.f32 %v758_v32, %v690_v51  ;;  %v591_v11 = vadd.f32 %v559_v43, %v459_v63  ;;  %v1846_v52 = vmul.f32 -1.442695, %v2966_v9  ;;  %v3012_v6 = vld [vmem:[#allocation2 + $0x142] sm:$0xff] }
  0xaf   : > { %v1454_v39 = vadd.f32 1.0, %v1956_v29  ;;  %v1190_v14 = vadd.f32 %v1158_v24, %v1090_v38  ;;  %v1958_v21 = vpop.eup %1957  ;;  %v1259_v50 = vmul.f32 %v2809_v61, %v2977_v0  ;;  %v859_v18 = vmul.f32 %v2933_v60, %v2245_v47  ;;  %v2986_v24 = vld [vmem:[#allocation2 + $0x140] sm:$0xff] }
  0xb0   : > { %v890_v17 = vadd.f32 %v858_v46, %v790_v5  ;;  %v691_v37 = vadd.f32 %v659_v62, %v591_v11  ;;  %v1548_v3 = vmul.f32 %v1958_v21, %v2833_v19  ;;  %v959_v28 = vmul.f32 %v2935_v13, %v2248_v48 }
  0xb1   : > { %1963 = vrcp.f32 %v1454_v39  ;;  %v1290_v2 = vadd.f32 %v1258_v12, %v1190_v14  ;;  %v1060_v20 = vmul.f32 %v2251_v49, %v2986_v24  ;;  %v460_v12 = vmul.f32 %v2888_v30, %v2216_v36 }
  0xb2   : > { %1965 = vpow2.f32 %v1846_v52  ;;  %v990_v16 = vadd.f32 %v958_v4, %v890_v17  ;;  %v791_v33 = vadd.f32 %v759_v58, %v691_v37  ;;  %1580 = vst.msk [vmem:[%s2516_s5 + $0x80] sm:$0xff] %vm277_vm0, %v1548_v3  ;;  %v1627_v34 = vsel %vm277_vm0, %v1548_v3, 0.0  ;;  %v3027_v52 = vld [vmem:[#allocation2 + $0x150] sm:$0xff] }
  0xb3   : > { %v1960_v23 = vpop.eup %1959  ;;  %v2994_v19 = vadd.f32 %v2921_v25, %v1290_v2  ;;  %v560_v32 = vmul.f32 %v2895_v22, %v2225_v40  ;;  %v3000_v54 = vadd.f32 %v1627_v34, %v1626_v27  ;;  %v660_v59 = vmul.f32 %v2909_v8, %v2228_v41 }
  0xb4   : > { %v1455_v55 = vadd.f32 1.0, %v1960_v23  ;;  %v1091_v35 = vadd.f32 %v1059_v10, %v990_v16  ;;  %v891_v46 = vadd.f32 %v859_v18, %v791_v33  ;;  %v760_v30 = vmul.f32 %v2953_v44, %v2231_v42 }
  0xb5   : > { %v1847_v4 = vmul.f32 -1.442695, %v2994_v19  ;;  %v592_v56 = vadd.f32 %v560_v32, %v460_v12  ;;  %v1962_v51 = vpop.eup %1961  ;;  %v1160_v10 = vmul.f32 %v2259_v53, %v3003_v31  ;;  %v860_v62 = vmul.f32 %v2970_v57, %v2245_v47 }
  0xb6   : > { %1967 = vrcp.f32 %v1455_v55  ;;  %v1191_v22 = vadd.f32 %v1159_v7, %v1091_v35  ;;  %v991_v63 = vadd.f32 %v959_v28, %v891_v46  ;;  %v1549_v43 = vmul.f32 %v1962_v51, %v2863_v45  ;;  %v3041_v28 = vld [vmem:[#allocation2 + $0x151] sm:$0xff] }
  0xb7   : > { %1969 = vpow2.f32 %v1847_v4  ;;  %v692_v38 = vadd.f32 %v660_v59, %v592_v56  ;;  %v1260_v27 = vmul.f32 %v2809_v61, %v3012_v6  ;;  %v960_v11 = vmul.f32 %v2977_v0, %v2248_v48 }
  0xb8   : > { %v1291_v8 = vadd.f32 %v1259_v50, %v1191_v22  ;;  %v1092_v29 = vadd.f32 %v1060_v20, %v991_v63  ;;  %1581 = vst.msk [vmem:[%s2516_s5 + $0x88] sm:$0xff] %vm277_vm0, %v1549_v43  ;;  %v461_v45 = vmul.f32 %v2926_v26, %v2216_v36  ;;  %v561_v14 = vmul.f32 %v2933_v60, %v2225_v40  ;;  %v3065_v22 = vld [vmem:[#allocation2 + $0x158] sm:$0xff] }
  0xb9   : > { %v792_v5 = vadd.f32 %v760_v30, %v692_v38  ;;  %v1061_v17 = vmul.f32 %v2251_v49, %v3027_v52  ;;  %v661_v50 = vmul.f32 %v2935_v13, %v2228_v41  ;;  %v761_v26 = vmul.f32 %v2986_v24, %v2231_v42 }
  0xba   : > { %v3025_v58 = vadd.f32 %v2921_v25, %v1291_v8  ;;  %v1192_v39 = vadd.f32 %v1160_v10, %v1092_v29  ;;  %v593_v60 = vadd.f32 %v561_v14, %v461_v45  ;;  %v1161_v20 = vmul.f32 %v2259_v53, %v3041_v28  ;;  %v3086_v45 = vld [vmem:[#allocation2 + $0x15a] sm:$0xff] }
  0xbb   : > { %v1964_v7 = vpop.eup %1963  ;;  %v892_v21 = vadd.f32 %v860_v62, %v792_v5  ;;  %v861_v34 = vmul.f32 %v3003_v31, %v2245_v47  ;;  %v961_v4 = vmul.f32 %v3012_v6, %v2248_v48  ;;  %v462_v56 = vmul.f32 %v2953_v44, %v2216_v36  ;;  %v3076_v44 = vld [vmem:[#allocation2 + $0x159] sm:$0xff] }
  0xbc   : > { %v1966_v37 = vpop.eup %1965  ;;  %v3038_v18 = vmul.f32 %v1964_v7, %v2891_v15  ;;  %v1848_v3 = vmul.f32 -1.442695, %v3025_v58  ;;  %v1292_v2 = vadd.f32 %v1260_v27, %v1192_v39  ;;  %v3051_v15 = vld [vmem:[#allocation2 + $0x152] sm:$0xff]  ;;  %v693_v23 = vadd.f32 %v661_v50, %v593_v60 }
  0xbd   : > { %v1456_v16 = vadd.f32 1.0, %v1966_v37  ;;  %v992_v33 = vadd.f32 %v960_v11, %v892_v21  ;;  %v1261_v32 = vmul.f32 %v2809_v61, %v3051_v15  ;;  %v562_v63 = vmul.f32 %v2970_v57, %v2225_v40 }
  0xbe   : > { %1582 = vst.msk [vmem:[%s2516_s5 + $0x90] sm:$0xff] %vm277_vm0, %v3038_v18  ;;  %1971 = vpow2.f32 %v1848_v3  ;;  %v3049_v13 = vadd.f32 %v2921_v25, %v1292_v2  ;;  %v793_v46 = vadd.f32 %v761_v26, %v693_v23  ;;  %v662_v10 = vmul.f32 %v2977_v0, %v2228_v41  ;;  %v3099_v3 = vld [vmem:[#allocation2 + $0x168] sm:$0xff] }
  0xbf   : > { %1973 = vrcp.f32 %v1456_v16  ;;  %v1093_v12 = vadd.f32 %v1061_v17, %v992_v33  ;;  %v1062_v8 = vmul.f32 %v2251_v49, %v3065_v22  ;;  %v594_v29 = vadd.f32 %v562_v63, %v462_v56 }
  0xc0   : > { %v1968_v55 = vpop.eup %1967  ;;  %v1849_v35 = vmul.f32 -1.442695, %v3049_v13  ;;  %v893_v62 = vadd.f32 %v861_v34, %v793_v46  ;;  %v762_v27 = vmul.f32 %v3027_v52, %v2231_v42  ;;  %v1162_v0 = vmul.f32 %v2259_v53, %v3076_v44 }
  0xc1   : > { %v1970_v59 = vpop.eup %1969  ;;  %v3063_v30 = vmul.f32 %v1968_v55, %v2924_v1  ;;  %v1193_v51 = vadd.f32 %v1161_v20, %v1093_v12  ;;  %v1629_v5 = vsel %vm277_vm0, %v1549_v43, 0.0  ;;  %v694_v39 = vadd.f32 %v662_v10, %v594_v29 }
  0xc2   : > { %v1457_v38 = vadd.f32 1.0, %v1970_v59  ;;  %1975 = vpow2.f32 %v1849_v35  ;;  %v993_v57 = vadd.f32 %v961_v4, %v893_v62  ;;  %v862_v14 = vmul.f32 %v3041_v28, %v2245_v47  ;;  %v3114_v35 = vld [vmem:[#allocation2 + $0x16a] sm:$0xff] }
  0xc3   : > { %1583 = vst.msk [vmem:[%s2516_s5 + $0x98] sm:$0xff] %vm277_vm0, %v3063_v30  ;;  %v1293_v1 = vadd.f32 %v1261_v32, %v1193_v51  ;;  %v1262_v21 = vmul.f32 %v2809_v61, %v3086_v45  ;;  %v463_v17 = vmul.f32 %v2986_v24, %v2216_v36  ;;  %v563_v50 = vmul.f32 %v3003_v31, %v2225_v40  ;;  %v3105_v24 = vld [vmem:[#allocation2 + $0x169] sm:$0xff] }
  0xc4   : > { %1977 = vrcp.f32 %v1457_v38  ;;  %v1094_v7 = vadd.f32 %v1062_v8, %v993_v57  ;;  %v794_v26 = vadd.f32 %v762_v27, %v694_v39  ;;  %v962_v37 = vmul.f32 %v3051_v15, %v2248_v48  ;;  %v3130_v62 = vld [vmem:[#allocation2 + $0x170] sm:$0xff] }
  0xc5   : > { %v3084_v11 = vadd.f32 %v2921_v25, %v1293_v1  ;;  %v663_v2 = vmul.f32 %v3012_v6, %v2228_v41  ;;  %v1063_v33 = vmul.f32 %v2251_v49, %v3099_v3  ;;  %v595_v20 = vadd.f32 %v563_v50, %v463_v17 }
  0xc6   : > { %v1194_v16 = vadd.f32 %v1162_v0, %v1094_v7  ;;  %v763_v31 = vmul.f32 %v3065_v22, %v2231_v42  ;;  %v894_v12 = vadd.f32 %v862_v14, %v794_v26  ;;  %v1163_v32 = vmul.f32 %v2259_v53, %v3105_v24  ;;  %v3139_v14 = vld [vmem:[#allocation2 + $0x171] sm:$0xff] }
  0xc7   : > { %v1850_v43 = vmul.f32 -1.442695, %v3084_v11  ;;  %v695_v46 = vadd.f32 %v663_v2, %v595_v20  ;;  %v863_v4 = vmul.f32 %v3076_v44, %v2245_v47  ;;  %v1263_v59 = vmul.f32 %v2809_v61, %v3114_v35 }
  0xc8   : > { %v1972_v60 = vpop.eup %1971  ;;  %v1294_v55 = vadd.f32 %v1262_v21, %v1194_v16  ;;  %v994_v56 = vadd.f32 %v962_v37, %v894_v12  ;;  %v464_v51 = vmul.f32 %v3027_v52, %v2216_v36  ;;  %v963_v38 = vmul.f32 %v3086_v45, %v2248_v48 }
  0xc9   : > { %v1974_v23 = vpop.eup %1973  ;;  %v1458_v34 = vadd.f32 1.0, %v1972_v60  ;;  %1979 = vpow2.f32 %v1850_v43  ;;  %v795_v10 = vadd.f32 %v763_v31, %v695_v46  ;;  %v564_v8 = vmul.f32 %v3041_v28, %v2225_v40  ;;  %v3154_v60 = vld [vmem:[#allocation2 + $0x172] sm:$0xff] }
  0xca   : > { %v3112_v6 = vmul.f32 %v1974_v23, %v2966_v9  ;;  %v3126_v9 = vadd.f32 %v2921_v25, %v1294_v55  ;;  %v1095_v29 = vadd.f32 %v1063_v33, %v994_v56  ;;  %v1064_v52 = vmul.f32 %v2251_v49, %v3130_v62  ;;  %v1129_v23 = vld [vmem:[#allocation2 + $0x181] sm:$0xff] }
  0xcb   : > { %1981 = vrcp.f32 %v1458_v34  ;;  %v664_v27 = vmul.f32 %v3051_v15, %v2228_v41  ;;  %v895_v39 = vadd.f32 %v863_v4, %v795_v10  ;;  %v596_v7 = vadd.f32 %v564_v8, %v464_v51  ;;  %v1229_v10 = vld [vmem:[#allocation2 + $0x182] sm:$0xff] }
  0xcc   : > { %v1976_v63 = vpop.eup %1975  ;;  %1584 = vst.msk [vmem:[%s2516_s5 + $0xa0] sm:$0xff] %vm277_vm0, %v3112_v6  ;;  %v1851_v0 = vmul.f32 -1.442695, %v3126_v9  ;;  %v764_v21 = vmul.f32 %v3099_v3, %v2231_v42  ;;  %v1195_v17 = vadd.f32 %v1163_v32, %v1095_v29  ;;  %v1164_v50 = vmul.f32 %v2259_v53, %v3139_v14 }
  0xcd   : > { %v1459_v1 = vadd.f32 1.0, %v1976_v63  ;;  %v995_v15 = vadd.f32 %v963_v38, %v895_v39  ;;  %v696_v43 = vadd.f32 %v664_v27, %v596_v7  ;;  %v864_v26 = vmul.f32 %v3105_v24, %v2245_v47 }
  0xce   : > { %v1978_v57 = vpop.eup %1977  ;;  %v1630_v37 = vadd.f32 %v1629_v5, %v3000_v54  ;;  %v1295_v2 = vadd.f32 %v1263_v59, %v1195_v17  ;;  %v1264_v33 = vmul.f32 %v2809_v61, %v3154_v60  ;;  %v964_v31 = vmul.f32 %v3114_v35, %v2248_v48  ;;  %v1130_v17 = vld [vmem:[#allocation2 + $0x189] sm:$0xff] }
  0xcf   : > { %v3144_v28 = vmul.f32 %v1978_v57, %v2994_v19  ;;  %1983 = vrcp.f32 %v1459_v1  ;;  %v1029_v19 = vld [vmem:[#allocation2 + $0x180] sm:$0xff]  ;;  %v1096_v16 = vadd.f32 %v1064_v52, %v995_v15  ;;  %v796_v20 = vadd.f32 %v764_v21, %v696_v43  ;;  %v1030_v1 = vld [vmem:[#allocation2 + $0x188] sm:$0xff] }
  0xd0   : > { %1985 = vpow2.f32 %v1851_v0  ;;  %v3161_v12 = vadd.f32 %v2921_v25, %v1295_v2  ;;  %v465_v54 = vmul.f32 %v3065_v22, %v2216_v36  ;;  %v565_v5 = vmul.f32 %v3076_v44, %v2225_v40 }
  0xd1   : > { %1585 = vst.msk [vmem:[%s2516_s5 + $0xa8] sm:$0xff] %vm277_vm0, %v3144_v28  ;;  %v665_v32 = vmul.f32 %v3086_v45, %v2228_v41  ;;  %v1196_v46 = vadd.f32 %v1164_v50, %v1096_v16  ;;  %v896_v4 = vadd.f32 %v864_v26, %v796_v20  ;;  %v1065_v56 = vmul.f32 %v2251_v49, %v1029_v19 }
  0xd2   : > { %v1852_v51 = vmul.f32 -1.442695, %v3161_v12  ;;  %v1165_v63 = vmul.f32 %v2259_v53, %v1129_v23  ;;  %v597_v38 = vadd.f32 %v565_v5, %v465_v54  ;;  %v765_v22 = vmul.f32 %v3130_v62, %v2231_v42 }
  0xd3   : > { %v1980_v34 = vpop.eup %1979  ;;  %v1296_v45 = vadd.f32 %v1264_v33, %v1196_v46  ;;  %v996_v8 = vadd.f32 %v964_v31, %v896_v4  ;;  %v1631_v29 = vsel %vm277_vm0, %v3038_v18, 0.0  ;;  %v865_v27 = vmul.f32 %v3139_v14, %v2245_v47 }
  0xd4   : > { %v1460_v55 = vadd.f32 1.0, %v1980_v34  ;;  %v697_v52 = vadd.f32 %v665_v32, %v597_v38  ;;  %v1265_v0 = vmul.f32 %v2809_v61, %v1229_v10  ;;  %v965_v39 = vmul.f32 %v3154_v60, %v2248_v48  ;;  %v1230_v34 = vld [vmem:[#allocation2 + $0x18a] sm:$0xff] }
  0xd5   : > { %v1982_v59 = vpop.eup %1981  ;;  %v3185_v57 = vadd.f32 %v2921_v25, %v1296_v45  ;;  %v1066_v18 = vmul.f32 %v2251_v49, %v1030_v1  ;;  %v466_v50 = vmul.f32 %v3099_v3, %v2216_v36  ;;  %v566_v15 = vmul.f32 %v3105_v24, %v2225_v40  ;;  %v1131_v45 = vld [vmem:[#allocation2 + $0x199] sm:$0xff] }
  0xd6   : > { %v3175_v44 = vmul.f32 %v1982_v59, %v3025_v58  ;;  %1987 = vrcp.f32 %v1460_v55  ;;  %v1097_v58 = vadd.f32 %v1065_v56, %v996_v8  ;;  %v797_v21 = vadd.f32 %v765_v22, %v697_v52 }
  0xd7   : > { %1989 = vpow2.f32 %v1852_v51  ;;  %v1853_v2 = vmul.f32 -1.442695, %v3185_v57  ;;  %v666_v33 = vmul.f32 %v3114_v35, %v2228_v41  ;;  %v598_v54 = vadd.f32 %v566_v15, %v466_v50 }
  0xd8   : > { %1586 = vst.msk [vmem:[%s2516_s5 + $0xb0] sm:$0xff] %vm277_vm0, %v3175_v44  ;;  %v1197_v16 = vadd.f32 %v1165_v63, %v1097_v58  ;;  %v897_v31 = vadd.f32 %v865_v27, %v797_v21  ;;  %v766_v5 = vmul.f32 %v1029_v19, %v2231_v42  ;;  %v1632_v3 = vadd.f32 %v1631_v29, %v1630_v37  ;;  %v1031_v19 = vld [vmem:[#allocation2 + $0x198] sm:$0xff] }
  0xd9   : > { %v1984_v7 = vpop.eup %1983  ;;  %1991 = vpow2.f32 %v1853_v2  ;;  %v698_v55 = vadd.f32 %v666_v33, %v598_v54  ;;  %v866_v46 = vmul.f32 %v1129_v23, %v2245_v47  ;;  %v1633_v35 = vsel %vm277_vm0, %v3063_v30, 0.0 }
  0xda   : > { %v1986_v43 = vpop.eup %1985  ;;  %v3196_v26 = vmul.f32 %v1984_v7, %v3049_v13  ;;  %v1297_v24 = vadd.f32 %v1265_v0, %v1197_v16  ;;  %v1166_v13 = vmul.f32 %v2259_v53, %v1130_v17  ;;  %v997_v32 = vadd.f32 %v965_v39, %v897_v31  ;;  %v1132_v31 = vld [vmem:[#allocation2 + $0x1a1] sm:$0xff] }
  0xdb   : > { %v1461_v20 = vadd.f32 1.0, %v1986_v43  ;;  %v1266_v37 = vmul.f32 %v2809_v61, %v1230_v34  ;;  %v798_v59 = vadd.f32 %v766_v5, %v698_v55  ;;  %v966_v51 = vmul.f32 %v1229_v10, %v2248_v48 }
  0xdc   : > { %1587 = vst.msk [vmem:[%s2516_s5 + $0xb8] sm:$0xff] %vm277_vm0, %v3196_v26  ;;  %v3210_v4 = vadd.f32 %v2921_v25, %v1297_v24  ;;  %v1098_v56 = vadd.f32 %v1066_v18, %v997_v32  ;;  %v467_v63 = vmul.f32 %v3130_v62, %v2216_v36  ;;  %v1634_v22 = vadd.f32 %v1633_v35, %v1632_v3  ;;  %v1231_v62 = vld [vmem:[#allocation2 + $0x19a] sm:$0xff] }
  0xdd   : > { %1993 = vrcp.f32 %v1461_v20  ;;  %v567_v30 = vmul.f32 %v3139_v14, %v2225_v40  ;;  %v667_v8 = vmul.f32 %v3154_v60, %v2228_v41  ;;  %v898_v10 = vadd.f32 %v866_v46, %v798_v59 }
  0xde   : > { %v1854_v23 = vmul.f32 -1.442695, %v3210_v4  ;;  %v1198_v27 = vadd.f32 %v1166_v13, %v1098_v56  ;;  %v1067_v58 = vmul.f32 %v2251_v49, %v1031_v19  ;;  %v767_v39 = vmul.f32 %v1030_v1, %v2231_v42  ;;  %v1032_v1 = vld [vmem:[#allocation2 + $0x1a0] sm:$0xff] }
  0xdf   : > { %v599_v0 = vadd.f32 %v567_v30, %v467_v63  ;;  %v998_v40 = vadd.f32 %v966_v51, %v898_v10  ;;  %v1167_v14 = vmul.f32 %v2259_v53, %v1131_v45  ;;  %v1635_v41 = vsel %vm277_vm0, %v3112_v6, 0.0  ;;  %v1232_v13 = vld [vmem:[#allocation2 + $0x1a2] sm:$0xff] }
  0xe0   : > { %v1988_v38 = vpop.eup %1987  ;;  %1995 = vpow2.f32 %v1854_v23  ;;  %v1298_v7 = vadd.f32 %v1266_v37, %v1198_v27  ;;  %v867_v60 = vmul.f32 %v1130_v17, %v2245_v47  ;;  %v1636_v21 = vadd.f32 %v1635_v41, %v1634_v22 }
  0xe1   : > { %v1990_v29 = vpop.eup %1989  ;;  %v1556_v52 = vmul.f32 %v1988_v38, %v3084_v11  ;;  %v699_v11 = vadd.f32 %v667_v8, %v599_v0  ;;  %v1099_v50 = vadd.f32 %v1067_v58, %v998_v40  ;;  %v1267_v42 = vmul.f32 %v2809_v61, %v1231_v62 }
  0xe2   : > { %v1462_v36 = vadd.f32 1.0, %v1990_v29  ;;  %v3231_v18 = vadd.f32 %v2921_v25, %v1298_v7  ;;  %v967_v2 = vmul.f32 %v1230_v34, %v2248_v48  ;;  %v1637_v47 = vsel %vm277_vm0, %v3144_v28, 0.0 }
  0xe3   : > { %1588 = vst.msk [vmem:[%s2516_s5 + $0xc0] sm:$0xff] %vm277_vm0, %v1556_v52  ;;  %v1992_v15 = vpop.eup %1991  ;;  %v799_v43 = vadd.f32 %v767_v39, %v699_v11  ;;  %v1199_v20 = vadd.f32 %v1167_v14, %v1099_v50  ;;  %v1068_v5 = vmul.f32 %v2251_v49, %v1032_v1  ;;  %v1638_v3 = vadd.f32 %v1637_v47, %v1636_v21 }
  0xe4   : > { %1997 = vrcp.f32 %v1462_v36  ;;  %v1463_v33 = vadd.f32 1.0, %v1992_v15  ;;  %v1855_v6 = vmul.f32 -1.442695, %v3231_v18  ;;  %v1168_v34 = vmul.f32 %v2259_v53, %v1132_v31 }
  0xe5   : > { %v899_v54 = vadd.f32 %v867_v60, %v799_v43  ;;  %v1299_v24 = vadd.f32 %v1267_v42, %v1199_v20  ;;  %v1268_v49 = vmul.f32 %v2809_v61, %v1232_v13  ;;  %v1641_v53 = vsel %vm277_vm0, %v3196_v26, 0.0 }
  0xe6   : > { %1999 = vrcp.f32 %v1463_v33  ;;  %v1643_v22 = vsel %vm277_vm0, %v1556_v52, 0.0 }
  0xe7   : > { %v1994_v16 = vpop.eup %1993  ;;  %2001 = vpow2.f32 %v1855_v6  ;;  %v999_v48 = vadd.f32 %v967_v2, %v899_v54  ;;  %v1338_v32 = vadd.f32 %v2921_v25, %v1299_v24 }
  0xe8   : > { %v1557_v17 = vmul.f32 %v1994_v16, %v3126_v9  ;;  %v1639_v9 = vsel %vm277_vm0, %v3175_v44, 0.0 }
  0xe9   : > { %v1100_v28 = vadd.f32 %v1068_v5, %v999_v48  ;;  %v1640_v46 = vadd.f32 %v1639_v9, %v1638_v3  ;;  %v1856_v37 = vmul.f32 -1.442695, %v1338_v32 }
  0xea   : > { %1589 = vst.msk [vmem:[%s2516_s5 + $0xc8] sm:$0xff] %vm277_vm0, %v1557_v17  ;;  %v1996_v55 = vpop.eup %1995  ;;  %v1645_v26 = vsel %vm277_vm0, %v1557_v17, 0.0 }
  0xeb   : > { %v1464_v35 = vadd.f32 1.0, %v1996_v55  ;;  %v1200_v56 = vadd.f32 %v1168_v34, %v1100_v28  ;;  %v1642_v63 = vadd.f32 %v1641_v53, %v1640_v46 }
  0xed   : > { %2003 = vrcp.f32 %v1464_v35  ;;  %v1300_v51 = vadd.f32 %v1268_v49, %v1200_v56 }
  0xee   : > { %v1998_v19 = vpop.eup %1997  ;;  %2005 = vpow2.f32 %v1856_v37 }
  0xef   : > { %v1558_v59 = vmul.f32 %v1998_v19, %v3161_v12  ;;  %v1339_v44 = vadd.f32 %v2921_v25, %v1300_v51  ;;  %v1644_v12 = vadd.f32 %v1643_v22, %v1642_v63 }
  0xf0   : > { %v2000_v61 = vpop.eup %1999 }
  0xf1   : > { %1590 = vst.msk [vmem:[%s2516_s5 + $0xd0] sm:$0xff] %vm277_vm0, %v1558_v59  ;;  %v2002_v38 = vpop.eup %2001  ;;  %v1559_v23 = vmul.f32 %v2000_v61, %v3185_v57  ;;  %v1857_v45 = vmul.f32 -1.442695, %v1339_v44  ;;  %v1646_v29 = vadd.f32 %v1645_v26, %v1644_v12  ;;  %v1647_v52 = vsel %vm277_vm0, %v1558_v59, 0.0 }
  0xf2   : > { %v1465_v30 = vadd.f32 1.0, %v2002_v38 }
  0xf3   : > { %1591 = vst.msk [vmem:[%s2516_s5 + $0xd8] sm:$0xff] %vm277_vm0, %v1559_v23  ;;  %2007 = vpow2.f32 %v1857_v45  ;;  %v1648_v57 = vadd.f32 %v1647_v52, %v1646_v29  ;;  %v1649_v36 = vsel %vm277_vm0, %v1559_v23, 0.0 }
  0xf4   : > { %2009 = vrcp.f32 %v1465_v30 }
  0xf5   : > { %v1650_v0 = vadd.f32 %v1649_v36, %v1648_v57 }
  0xf7   : > { %v2004_v8 = vpop.eup %2003 }
  0xf8   : > { %v2006_v25 = vpop.eup %2005  ;;  %v1560_v27 = vmul.f32 %v2004_v8, %v3210_v4 }
  0xf9   : > { %v1466_v10 = vadd.f32 1.0, %v2006_v25 }
  0xfa   : > { %1592 = vst.msk [vmem:[%s2516_s5 + $0xe0] sm:$0xff] %vm277_vm0, %v1560_v27  ;;  %v1651_v4 = vsel %vm277_vm0, %v1560_v27, 0.0 }
  0xfb   : > { %2011 = vrcp.f32 %v1466_v10  ;;  %v1652_v40 = vadd.f32 %v1651_v4, %v1650_v0 }
  0xfd   : > { %v2008_v58 = vpop.eup %2007 }
  0xfe   : > { %v2010_v62 = vpop.eup %2009  ;;  %v1467_v39 = vadd.f32 1.0, %v2008_v58 }
  0xff   : > { %v1561_v7 = vmul.f32 %v2010_v62, %v3231_v18 }
 0x100   : > { %2013 = vrcp.f32 %v1467_v39 }
 0x101   : > { %1593 = vst.msk [vmem:[%s2516_s5 + $0xe8] sm:$0xff] %vm277_vm0, %v1561_v7  ;;  %v1653_v41 = vsel %vm277_vm0, %v1561_v7, 0.0 }
 0x102   : > { %v1654_v60 = vadd.f32 %v1653_v41, %v1652_v40 }
 0x105   : > { %v2012_v14 = vpop.eup %2011 }
 0x106   : > { %v1562_v11 = vmul.f32 %v2012_v14, %v1338_v32 }
 0x108   : > { %1594 = vst.msk [vmem:[%s2516_s5 + $0xf0] sm:$0xff] %vm277_vm0, %v1562_v11  ;;  %v1655_v21 = vsel %vm277_vm0, %v1562_v11, 0.0 }
 0x109   : > { %v1656_v42 = vadd.f32 %v1655_v21, %v1654_v60 }
 0x10a   : > { %v2014_v50 = vpop.eup %2013 }
 0x10b   : > { %v1563_v1 = vmul.f32 %v2014_v50, %v1339_v44 }
 0x10d   : > { %1595 = vst.msk [vmem:[%s2516_s5 + $0xf8] sm:$0xff] %vm277_vm0, %v1563_v1  ;;  %v1657_v18 = vsel %vm277_vm0, %v1563_v1, 0.0 }
 0x10e   : > { %v1658_v15 = vadd.f32 %v1657_v18, %v1656_v42 }
 0x110   : > { %v1659_v43 = vrot.slane %v1658_v15, 4 }
 0x112   : > { %v1660_v2 = vadd.f32 %v1659_v43, %v1658_v15 }
 0x114   : > { %v1661_v16 = vrot.slane %v1660_v2, 2 }
 0x116   : > { %v1662_v33 = vadd.f32 %v1661_v16, %v1660_v2 }
 0x118   : > { %v1663_v6 = vrot.slane %v1662_v33, 1 }
 0x11a   : > { %v1664_v20 = vadd.f32 %v1663_v6, %v1662_v33 }
 0x11c   : > { %1666 = vst.msk [vmem:[%s276_s12] sm:$0x1] %vm1665_vm2, %v1664_v20 }
 0x11d PF: > { %s15_s17 = sadd.s32 1, %s2039_s17   ;;  %s3292_s15 = smov %s2035_s16 }
 0x11e   : > { %p12_p5 = scmp.ge.s32.totalorder %s15_s17, 4   ;;  %s3293_s16 = smov %s3295_s18 }
 0x120   :  { %14 = sbr.rel (!%p12_p5) target bundleno = 2 (0x2), region = 82 }

</bundles_post_ra>
